<compile_context>
chip_gen: v7x
topology: tpu7x:2x2x1
jax: 0.10.0
libtpu: 0.0.40
codegen_flags: <defaults>
</compile_context>

<pallas_src>
import functools

import jax
import jax.numpy as jnp
from jax.experimental import pallas as pl
from jax.experimental.pallas import tpu as pltpu  # noqa: F401  (TPU backend)


# ----------------------------- Pallas kernel ------------------------------- #

def _gru_recurrence_kernel(
    gi0_ref,      # (T, B, 3H)  precomputed layer-0 input gates (biases folded in)
    h_init_ref,   # (2, B, H)   initial hidden state
    whh0_ref,     # (H, 3H)     layer-0 hidden->hidden weights (transposed)
    wih1_ref,     # (H, 3H)     layer-1 input->hidden weights (transposed)
    whh1_ref,     # (H, 3H)     layer-1 hidden->hidden weights (transposed)
    b1_ref,       # (1, 3H)     layer-1 combined bias (bih1 + [bhr1, bhz1, 0])
    bhn0_ref,     # (1, H)      layer-0 n-gate hidden bias
    bhn1_ref,     # (1, H)      layer-1 n-gate hidden bias
    out_ref,      # (T, B, H)   output: top-layer hidden per timestep (lane-dense)
    h_final_ref,  # (2, B, H)   output: final hidden state
    *,
    hidden_dim: int,
    seq_len: int,
):
    H = hidden_dim

    # Weights / biases loaded once, reused across the unrolled time loop.
    whh0 = whh0_ref[...]
    wih1 = wih1_ref[...]
    whh1 = whh1_ref[...]
    b1 = b1_ref[...]
    bhn0 = bhn0_ref[...]
    bhn1 = bhn1_ref[...]

    def step(t, carry):
        h0, h1 = carry                                     # each (B, H), in vregs

        # ---- layer 0 (input gates precomputed; only hidden matmul here) ----
        gi0 = gi0_ref[t]                                   # (B, 3H)
        gh0 = jnp.dot(h0, whh0, preferred_element_type=jnp.float32)
        r0 = jax.nn.sigmoid(gi0[:, 0:H] + gh0[:, 0:H])
        z0 = jax.nn.sigmoid(gi0[:, H:2 * H] + gh0[:, H:2 * H])
        n0 = jnp.tanh(gi0[:, 2 * H:3 * H] + r0 * (gh0[:, 2 * H:3 * H] + bhn0))
        h0_new = (1.0 - z0) * n0 + z0 * h0

        # ---- layer 1 (input is layer-0 output) ----
        gi1 = jnp.dot(h0_new, wih1, preferred_element_type=jnp.float32) + b1
        gh1 = jnp.dot(h1, whh1, preferred_element_type=jnp.float32)
        r1 = jax.nn.sigmoid(gi1[:, 0:H] + gh1[:, 0:H])
        z1 = jax.nn.sigmoid(gi1[:, H:2 * H] + gh1[:, H:2 * H])
        n1 = jnp.tanh(gi1[:, 2 * H:3 * H] + r1 * (gh1[:, 2 * H:3 * H] + bhn1))
        h1_new = (1.0 - z1) * n1 + z1 * h1

        out_ref[t] = h1_new                                # lane-dense (B, H) store
        return (h0_new, h1_new)

    h0_f, h1_f = jax.lax.fori_loop(
        0, seq_len, step, (h_init_ref[0], h_init_ref[1]), unroll=True)

    h_final_ref[0] = h0_f
    h_final_ref[1] = h1_f


# ------------------------------ JAX wrapper -------------------------------- #

def gru_decoder_forward(x, hidden, params):
    """x: (B, T, D_in) float32, hidden: (2, B, H) float32 (batch_first=True)."""
    B, T, D_in = x.shape
    num_layers, _, H = hidden.shape
    assert num_layers == 2
    D_out = params["w_fc"].shape[0]

    zeros_h = jnp.zeros((H,), jnp.float32)

    # ---- hoisted, non-recurrent layer-0 input projection (batched over T*B) ----
    # Fold bih0 and the r/z parts of bhh0 into the precomputed gates; the n-gate
    # hidden bias must stay inside the recurrence (it is gated by r).
    b0_combined = params["b_ih_l0"] + jnp.concatenate(
        [params["b_hh_l0"][:2 * H], zeros_h])
    x_tm = jnp.transpose(x, (1, 0, 2))                      # (T, B, D_in)
    gi0 = (x_tm.reshape(T * B, D_in) @ params["w_ih_l0"].T
           + b0_combined).reshape(T, B, 3 * H)              # (T, B, 3H)

    # Layer-1 combined bias (bih1 + r/z parts of bhh1) and n-gate hidden biases.
    b1_combined = (params["b_ih_l1"] + jnp.concatenate(
        [params["b_hh_l1"][:2 * H], zeros_h])).reshape(1, 3 * H)
    bhn0 = params["b_hh_l0"][2 * H:].reshape(1, H)
    bhn1 = params["b_hh_l1"][2 * H:].reshape(1, H)

    # Matmul-friendly weight layouts.
    whh0 = params["w_hh_l0"].T                              # (H, 3H)
    wih1 = params["w_ih_l1"].T                              # (H, 3H)
    whh1 = params["w_hh_l1"].T                              # (H, 3H)

    kernel = functools.partial(_gru_recurrence_kernel, hidden_dim=H, seq_len=T)

    # Single invocation: every array is a full resident VMEM block (all tiny),
    # no grid, no per-step DMA / pipelining bookkeeping.
    out_tm, h_final = pl.pallas_call(
        kernel,
        out_shape=(
            jax.ShapeDtypeStruct((T, B, H), jnp.float32),
            jax.ShapeDtypeStruct((num_layers, B, H), jnp.float32),
        ),
    )(gi0, hidden, whh0, wih1, whh1, b1_combined, bhn0, bhn1)

    # ---- hoisted fc head: one (T*B, H) @ (H, D_out) matmul ----
    pred_tm = (out_tm.reshape(T * B, H) @ params["w_fc"].T
               + params["b_fc"]).reshape(T, B, D_out)
    prediction = jnp.transpose(pred_tm, (1, 0, 2))          # (B, T, D_out)
    return prediction, h_final


# --------------------------- pure-JAX reference ----------------------------- #

def gru_decoder_reference(x, hidden, params):
    B, T, D_in = x.shape
    _, _, H = hidden.shape

    def cell(x_t, h_prev, wih, whh, bih, bhh):
        gi = x_t @ wih.T + bih
        gh = h_prev @ whh.T + bhh
        r = jax.nn.sigmoid(gi[:, :H] + gh[:, :H])
        z = jax.nn.sigmoid(gi[:, H:2 * H] + gh[:, H:2 * H])
        n = jnp.tanh(gi[:, 2 * H:] + r * gh[:, 2 * H:])
        return (1.0 - z) * n + z * h_prev

    h = [hidden[0], hidden[1]]
    outs = []
    for t in range(T):
        inp = x[:, t, :]
        h[0] = cell(inp, h[0], params["w_ih_l0"], params["w_hh_l0"],
                    params["b_ih_l0"], params["b_hh_l0"])
        h[1] = cell(h[0], h[1], params["w_ih_l1"], params["w_hh_l1"],
                    params["b_ih_l1"], params["b_hh_l1"])
        outs.append(h[1])
    out = jnp.stack(outs, axis=1)                           # (B, T, H)
    pred = out @ params["w_fc"].T + params["b_fc"]
    return pred, jnp.stack(h, axis=0)


# --------------------------------- main ------------------------------------ #

if __name__ == "__main__":
    # Module hyperparameters (from GRUDecoder.__init__ defaults)
    INPUT_DIM, HIDDEN_DIM, OUTPUT_DIM, NUM_LAYERS = 2, 128, 2, 2
    B, T = 8, 8

    key = jax.random.PRNGKey(0)
    ks = jax.random.split(key, 16)
    bound = 1.0 / jnp.sqrt(HIDDEN_DIM)
    u = lambda k, shape: jax.random.uniform(k, shape, jnp.float32, -bound, bound)

    # Deterministic synthetic parameters (PyTorch nn.GRU / nn.Linear shapes)
    params = {
        "w_ih_l0": u(ks[0], (3 * HIDDEN_DIM, INPUT_DIM)),
        "w_hh_l0": u(ks[1], (3 * HIDDEN_DIM, HIDDEN_DIM)),
        "b_ih_l0": u(ks[2], (3 * HIDDEN_DIM,)),
        "b_hh_l0": u(ks[3], (3 * HIDDEN_DIM,)),
        "w_ih_l1": u(ks[4], (3 * HIDDEN_DIM, HIDDEN_DIM)),
        "w_hh_l1": u(ks[5], (3 * HIDDEN_DIM, HIDDEN_DIM)),
        "b_ih_l1": u(ks[6], (3 * HIDDEN_DIM,)),
        "b_hh_l1": u(ks[7], (3 * HIDDEN_DIM,)),
        "w_fc": u(ks[8], (OUTPUT_DIM, HIDDEN_DIM)),
        "b_fc": u(ks[9], (OUTPUT_DIM,)),
    }

    x = jax.random.normal(ks[10], (B, T, INPUT_DIM), jnp.float32)
    hidden = jax.random.normal(ks[11], (NUM_LAYERS, B, HIDDEN_DIM), jnp.float32)

    pred, h_out = jax.jit(gru_decoder_forward)(x, hidden, params)
    jax.block_until_ready((pred, h_out))

    pred_ref, h_ref = gru_decoder_reference(x, hidden, params)
    assert pred.shape == (B, T, OUTPUT_DIM)
    assert h_out.shape == (NUM_LAYERS, B, HIDDEN_DIM)
    assert jnp.allclose(pred, pred_ref, atol=1e-4, rtol=1e-4)
    assert jnp.allclose(h_out, h_ref, atol=1e-4, rtol=1e-4)

    print("KERNEL_OK")
</pallas_src>

<mosaic_0001>
module attributes {stable_mosaic.version = 11 : i64} {
  func.func @_gru_recurrence_kernel(%arg0: memref<8x8x384xf32, #tpu.memory_space<vmem>>, %arg1: memref<2x8x128xf32, #tpu.memory_space<vmem>>, %arg2: memref<128x384xf32, #tpu.memory_space<vmem>>, %arg3: memref<128x384xf32, #tpu.memory_space<vmem>>, %arg4: memref<128x384xf32, #tpu.memory_space<vmem>>, %arg5: memref<1x384xf32, #tpu.memory_space<vmem>>, %arg6: memref<1x128xf32, #tpu.memory_space<vmem>>, %arg7: memref<1x128xf32, #tpu.memory_space<vmem>>, %arg8: memref<8x8x128xf32, #tpu.memory_space<vmem>>, %arg9: memref<2x8x128xf32, #tpu.memory_space<vmem>>) attributes {dimension_semantics = [], scalar_prefetch = 0 : i64, scratch_operands = 0 : i64, tpu.core_type = #tpu.core_type<tc>} {
    %c0 = arith.constant 0 : index
    %c0_0 = arith.constant 0 : index
    %0 = vector.load %arg2[%c0, %c0_0] : memref<128x384xf32, #tpu.memory_space<vmem>>, vector<128x384xf32>
    %c0_1 = arith.constant 0 : index
    %c0_2 = arith.constant 0 : index
    %1 = vector.load %arg3[%c0_1, %c0_2] : memref<128x384xf32, #tpu.memory_space<vmem>>, vector<128x384xf32>
    %c0_3 = arith.constant 0 : index
    %c0_4 = arith.constant 0 : index
    %2 = vector.load %arg4[%c0_3, %c0_4] : memref<128x384xf32, #tpu.memory_space<vmem>>, vector<128x384xf32>
    %c0_5 = arith.constant 0 : index
    %c0_6 = arith.constant 0 : index
    %3 = vector.load %arg5[%c0_5, %c0_6] : memref<1x384xf32, #tpu.memory_space<vmem>>, vector<1x384xf32>
    %c0_7 = arith.constant 0 : index
    %c0_8 = arith.constant 0 : index
    %4 = vector.load %arg6[%c0_7, %c0_8] : memref<1x128xf32, #tpu.memory_space<vmem>>, vector<1x128xf32>
    %c0_9 = arith.constant 0 : index
    %c0_10 = arith.constant 0 : index
    %5 = vector.load %arg7[%c0_9, %c0_10] : memref<1x128xf32, #tpu.memory_space<vmem>>, vector<1x128xf32>
    %c0_11 = arith.constant 0 : index
    %c0_12 = arith.constant 0 : index
    %c0_13 = arith.constant 0 : index
    %6 = vector.load %arg1[%c0_11, %c0_12, %c0_13] : memref<2x8x128xf32, #tpu.memory_space<vmem>>, vector<1x8x128xf32>
    %7 = vector.shape_cast %6 : vector<1x8x128xf32> to vector<8x128xf32>
    %c1 = arith.constant 1 : index
    %c0_14 = arith.constant 0 : index
    %c0_15 = arith.constant 0 : index
    %8 = vector.load %arg1[%c1, %c0_14, %c0_15] : memref<2x8x128xf32, #tpu.memory_space<vmem>>, vector<1x8x128xf32>
    %9 = vector.shape_cast %8 : vector<1x8x128xf32> to vector<8x128xf32>
    %c0_i32 = arith.constant 0 : i32
    %10 = arith.index_cast %c0_i32 : i32 to index
    %c0_16 = arith.constant 0 : index
    %c0_17 = arith.constant 0 : index
    %11 = vector.load %arg0[%10, %c0_16, %c0_17] : memref<8x8x384xf32, #tpu.memory_space<vmem>>, vector<1x8x384xf32>
    %12 = vector.shape_cast %11 : vector<1x8x384xf32> to vector<8x384xf32>
    %cst = arith.constant dense<0.000000e+00> : vector<8x384xf32>
    %13 = tpu.matmul %7, %0, %cst {dimension_numbers = #tpu.dot_dimension_numbers<[1], [0], [0], [1], [0, 0, 1, 1], [], []>} : vector<8x128xf32>, vector<128x384xf32>, vector<8x384xf32> -> vector<8x384xf32>
    %14 = vector.extract_strided_slice %12 {offsets = [0, 0], sizes = [8, 128], strides = [1, 1]} : vector<8x384xf32> to vector<8x128xf32>
    %15 = vector.extract_strided_slice %13 {offsets = [0, 0], sizes = [8, 128], strides = [1, 1]} : vector<8x384xf32> to vector<8x128xf32>
    %16 = arith.addf %14, %15 : vector<8x128xf32>
    %17 = arith.negf %16 : vector<8x128xf32>
    %18 = math.exp %17 : vector<8x128xf32>
    %cst_18 = arith.constant 1.000000e+00 : f32
    %19 = vector.broadcast %cst_18 : f32 to vector<8x128xf32>
    %20 = arith.addf %19, %18 : vector<8x128xf32>
    %21 = arith.divf %19, %20 : vector<8x128xf32>
    %22 = vector.extract_strided_slice %12 {offsets = [0, 128], sizes = [8, 128], strides = [1, 1]} : vector<8x384xf32> to vector<8x128xf32>
    %23 = vector.extract_strided_slice %13 {offsets = [0, 128], sizes = [8, 128], strides = [1, 1]} : vector<8x384xf32> to vector<8x128xf32>
    %24 = arith.addf %22, %23 : vector<8x128xf32>
    %25 = arith.negf %24 : vector<8x128xf32>
    %26 = math.exp %25 : vector<8x128xf32>
    %cst_19 = arith.constant 1.000000e+00 : f32
    %27 = vector.broadcast %cst_19 : f32 to vector<8x128xf32>
    %28 = arith.addf %27, %26 : vector<8x128xf32>
    %29 = arith.divf %27, %28 : vector<8x128xf32>
    %30 = vector.extract_strided_slice %12 {offsets = [0, 256], sizes = [8, 128], strides = [1, 1]} : vector<8x384xf32> to vector<8x128xf32>
    %31 = vector.extract_strided_slice %13 {offsets = [0, 256], sizes = [8, 128], strides = [1, 1]} : vector<8x384xf32> to vector<8x128xf32>
    %32 = vector.broadcast %4 : vector<1x128xf32> to vector<8x128xf32>
    %33 = arith.addf %31, %32 : vector<8x128xf32>
    %34 = arith.mulf %21, %33 : vector<8x128xf32>
    %35 = arith.addf %30, %34 : vector<8x128xf32>
    %36 = math.tanh %35 : vector<8x128xf32>
    %cst_20 = arith.constant 1.000000e+00 : f32
    %37 = vector.broadcast %cst_20 : f32 to vector<8x128xf32>
    %38 = arith.subf %37, %29 : vector<8x128xf32>
    %39 = arith.mulf %38, %36 : vector<8x128xf32>
    %40 = arith.mulf %29, %7 : vector<8x128xf32>
    %41 = arith.addf %39, %40 : vector<8x128xf32>
    %cst_21 = arith.constant dense<0.000000e+00> : vector<8x384xf32>
    %42 = tpu.matmul %41, %1, %cst_21 {dimension_numbers = #tpu.dot_dimension_numbers<[1], [0], [0], [1], [0, 0, 1, 1], [], []>} : vector<8x128xf32>, vector<128x384xf32>, vector<8x384xf32> -> vector<8x384xf32>
    %43 = vector.broadcast %3 : vector<1x384xf32> to vector<8x384xf32>
    %44 = arith.addf %42, %43 : vector<8x384xf32>
    %cst_22 = arith.constant dense<0.000000e+00> : vector<8x384xf32>
    %45 = tpu.matmul %9, %2, %cst_22 {dimension_numbers = #tpu.dot_dimension_numbers<[1], [0], [0], [1], [0, 0, 1, 1], [], []>} : vector<8x128xf32>, vector<128x384xf32>, vector<8x384xf32> -> vector<8x384xf32>
    %46 = vector.extract_strided_slice %44 {offsets = [0, 0], sizes = [8, 128], strides = [1, 1]} : vector<8x384xf32> to vector<8x128xf32>
    %47 = vector.extract_strided_slice %45 {offsets = [0, 0], sizes = [8, 128], strides = [1, 1]} : vector<8x384xf32> to vector<8x128xf32>
    %48 = arith.addf %46, %47 : vector<8x128xf32>
    %49 = arith.negf %48 : vector<8x128xf32>
    %50 = math.exp %49 : vector<8x128xf32>
    %cst_23 = arith.constant 1.000000e+00 : f32
    %51 = vector.broadcast %cst_23 : f32 to vector<8x128xf32>
    %52 = arith.addf %51, %50 : vector<8x128xf32>
    %53 = arith.divf %51, %52 : vector<8x128xf32>
    %54 = vector.extract_strided_slice %44 {offsets = [0, 128], sizes = [8, 128], strides = [1, 1]} : vector<8x384xf32> to vector<8x128xf32>
    %55 = vector.extract_strided_slice %45 {offsets = [0, 128], sizes = [8, 128], strides = [1, 1]} : vector<8x384xf32> to vector<8x128xf32>
    %56 = arith.addf %54, %55 : vector<8x128xf32>
    %57 = arith.negf %56 : vector<8x128xf32>
    %58 = math.exp %57 : vector<8x128xf32>
    %cst_24 = arith.constant 1.000000e+00 : f32
    %59 = vector.broadcast %cst_24 : f32 to vector<8x128xf32>
    %60 = arith.addf %59, %58 : vector<8x128xf32>
    %61 = arith.divf %59, %60 : vector<8x128xf32>
    %62 = vector.extract_strided_slice %44 {offsets = [0, 256], sizes = [8, 128], strides = [1, 1]} : vector<8x384xf32> to vector<8x128xf32>
    %63 = vector.extract_strided_slice %45 {offsets = [0, 256], sizes = [8, 128], strides = [1, 1]} : vector<8x384xf32> to vector<8x128xf32>
    %64 = vector.broadcast %5 : vector<1x128xf32> to vector<8x128xf32>
    %65 = arith.addf %63, %64 : vector<8x128xf32>
    %66 = arith.mulf %53, %65 : vector<8x128xf32>
    %67 = arith.addf %62, %66 : vector<8x128xf32>
    %68 = math.tanh %67 : vector<8x128xf32>
    %cst_25 = arith.constant 1.000000e+00 : f32
    %69 = vector.broadcast %cst_25 : f32 to vector<8x128xf32>
    %70 = arith.subf %69, %61 : vector<8x128xf32>
    %71 = arith.mulf %70, %68 : vector<8x128xf32>
    %72 = arith.mulf %61, %9 : vector<8x128xf32>
    %73 = arith.addf %71, %72 : vector<8x128xf32>
    %74 = arith.index_cast %c0_i32 : i32 to index
    %c0_26 = arith.constant 0 : index
    %c0_27 = arith.constant 0 : index
    %75 = vector.load %arg8[%74, %c0_26, %c0_27] : memref<8x8x128xf32, #tpu.memory_space<vmem>>, vector<1x8x128xf32>
    %76 = vector.shape_cast %75 : vector<1x8x128xf32> to vector<8x128xf32>
    %77 = vector.shape_cast %73 : vector<8x128xf32> to vector<1x8x128xf32>
    tpu.vector_store %arg8[%74, %c0_26, %c0_27], %77 {strides = array<i32>} : memref<8x8x128xf32, #tpu.memory_space<vmem>>, vector<1x8x128xf32>,
    %c1_i32 = arith.constant 1 : i32
    %78 = arith.index_cast %c1_i32 : i32 to index
    %c0_28 = arith.constant 0 : index
    %c0_29 = arith.constant 0 : index
    %79 = vector.load %arg0[%78, %c0_28, %c0_29] : memref<8x8x384xf32, #tpu.memory_space<vmem>>, vector<1x8x384xf32>
    %80 = vector.shape_cast %79 : vector<1x8x384xf32> to vector<8x384xf32>
    %cst_30 = arith.constant dense<0.000000e+00> : vector<8x384xf32>
    %81 = tpu.matmul %41, %0, %cst_30 {dimension_numbers = #tpu.dot_dimension_numbers<[1], [0], [0], [1], [0, 0, 1, 1], [], []>} : vector<8x128xf32>, vector<128x384xf32>, vector<8x384xf32> -> vector<8x384xf32>
    %82 = vector.extract_strided_slice %80 {offsets = [0, 0], sizes = [8, 128], strides = [1, 1]} : vector<8x384xf32> to vector<8x128xf32>
    %83 = vector.extract_strided_slice %81 {offsets = [0, 0], sizes = [8, 128], strides = [1, 1]} : vector<8x384xf32> to vector<8x128xf32>
    %84 = arith.addf %82, %83 : vector<8x128xf32>
    %85 = arith.negf %84 : vector<8x128xf32>
    %86 = math.exp %85 : vector<8x128xf32>
    %cst_31 = arith.constant 1.000000e+00 : f32
    %87 = vector.broadcast %cst_31 : f32 to vector<8x128xf32>
    %88 = arith.addf %87, %86 : vector<8x128xf32>
    %89 = arith.divf %87, %88 : vector<8x128xf32>
    %90 = vector.extract_strided_slice %80 {offsets = [0, 128], sizes = [8, 128], strides = [1, 1]} : vector<8x384xf32> to vector<8x128xf32>
    %91 = vector.extract_strided_slice %81 {offsets = [0, 128], sizes = [8, 128], strides = [1, 1]} : vector<8x384xf32> to vector<8x128xf32>
    %92 = arith.addf %90, %91 : vector<8x128xf32>
    %93 = arith.negf %92 : vector<8x128xf32>
    %94 = math.exp %93 : vector<8x128xf32>
    %cst_32 = arith.constant 1.000000e+00 : f32
    %95 = vector.broadcast %cst_32 : f32 to vector<8x128xf32>
    %96 = arith.addf %95, %94 : vector<8x128xf32>
    %97 = arith.divf %95, %96 : vector<8x128xf32>
    %98 = vector.extract_strided_slice %80 {offsets = [0, 256], sizes = [8, 128], strides = [1, 1]} : vector<8x384xf32> to vector<8x128xf32>
    %99 = vector.extract_strided_slice %81 {offsets = [0, 256], sizes = [8, 128], strides = [1, 1]} : vector<8x384xf32> to vector<8x128xf32>
    %100 = vector.broadcast %4 : vector<1x128xf32> to vector<8x128xf32>
    %101 = arith.addf %99, %100 : vector<8x128xf32>
    %102 = arith.mulf %89, %101 : vector<8x128xf32>
    %103 = arith.addf %98, %102 : vector<8x128xf32>
    %104 = math.tanh %103 : vector<8x128xf32>
    %cst_33 = arith.constant 1.000000e+00 : f32
    %105 = vector.broadcast %cst_33 : f32 to vector<8x128xf32>
    %106 = arith.subf %105, %97 : vector<8x128xf32>
    %107 = arith.mulf %106, %104 : vector<8x128xf32>
    %108 = arith.mulf %97, %41 : vector<8x128xf32>
    %109 = arith.addf %107, %108 : vector<8x128xf32>
    %cst_34 = arith.constant dense<0.000000e+00> : vector<8x384xf32>
    %110 = tpu.matmul %109, %1, %cst_34 {dimension_numbers = #tpu.dot_dimension_numbers<[1], [0], [0], [1], [0, 0, 1, 1], [], []>} : vector<8x128xf32>, vector<128x384xf32>, vector<8x384xf32> -> vector<8x384xf32>
    %111 = vector.broadcast %3 : vector<1x384xf32> to vector<8x384xf32>
    %112 = arith.addf %110, %111 : vector<8x384xf32>
    %cst_35 = arith.constant dense<0.000000e+00> : vector<8x384xf32>
    %113 = tpu.matmul %73, %2, %cst_35 {dimension_numbers = #tpu.dot_dimension_numbers<[1], [0], [0], [1], [0, 0, 1, 1], [], []>} : vector<8x128xf32>, vector<128x384xf32>, vector<8x384xf32> -> vector<8x384xf32>
    %114 = vector.extract_strided_slice %112 {offsets = [0, 0], sizes = [8, 128], strides = [1, 1]} : vector<8x384xf32> to vector<8x128xf32>
    %115 = vector.extract_strided_slice %113 {offsets = [0, 0], sizes = [8, 128], strides = [1, 1]} : vector<8x384xf32> to vector<8x128xf32>
    %116 = arith.addf %114, %115 : vector<8x128xf32>
    %117 = arith.negf %116 : vector<8x128xf32>
    %118 = math.exp %117 : vector<8x128xf32>
    %cst_36 = arith.constant 1.000000e+00 : f32
    %119 = vector.broadcast %cst_36 : f32 to vector<8x128xf32>
    %120 = arith.addf %119, %118 : vector<8x128xf32>
    %121 = arith.divf %119, %120 : vector<8x128xf32>
    %122 = vector.extract_strided_slice %112 {offsets = [0, 128], sizes = [8, 128], strides = [1, 1]} : vector<8x384xf32> to vector<8x128xf32>
    %123 = vector.extract_strided_slice %113 {offsets = [0, 128], sizes = [8, 128], strides = [1, 1]} : vector<8x384xf32> to vector<8x128xf32>
    %124 = arith.addf %122, %123 : vector<8x128xf32>
    %125 = arith.negf %124 : vector<8x128xf32>
    %126 = math.exp %125 : vector<8x128xf32>
    %cst_37 = arith.constant 1.000000e+00 : f32
    %127 = vector.broadcast %cst_37 : f32 to vector<8x128xf32>
    %128 = arith.addf %127, %126 : vector<8x128xf32>
    %129 = arith.divf %127, %128 : vector<8x128xf32>
    %130 = vector.extract_strided_slice %112 {offsets = [0, 256], sizes = [8, 128], strides = [1, 1]} : vector<8x384xf32> to vector<8x128xf32>
    %131 = vector.extract_strided_slice %113 {offsets = [0, 256], sizes = [8, 128], strides = [1, 1]} : vector<8x384xf32> to vector<8x128xf32>
    %132 = vector.broadcast %5 : vector<1x128xf32> to vector<8x128xf32>
    %133 = arith.addf %131, %132 : vector<8x128xf32>
    %134 = arith.mulf %121, %133 : vector<8x128xf32>
    %135 = arith.addf %130, %134 : vector<8x128xf32>
    %136 = math.tanh %135 : vector<8x128xf32>
    %cst_38 = arith.constant 1.000000e+00 : f32
    %137 = vector.broadcast %cst_38 : f32 to vector<8x128xf32>
    %138 = arith.subf %137, %129 : vector<8x128xf32>
    %139 = arith.mulf %138, %136 : vector<8x128xf32>
    %140 = arith.mulf %129, %73 : vector<8x128xf32>
    %141 = arith.addf %139, %140 : vector<8x128xf32>
    %142 = arith.index_cast %c1_i32 : i32 to index
    %c0_39 = arith.constant 0 : index
    %c0_40 = arith.constant 0 : index
    %143 = vector.load %arg8[%142, %c0_39, %c0_40] : memref<8x8x128xf32, #tpu.memory_space<vmem>>, vector<1x8x128xf32>
    %144 = vector.shape_cast %143 : vector<1x8x128xf32> to vector<8x128xf32>
    %145 = vector.shape_cast %141 : vector<8x128xf32> to vector<1x8x128xf32>
    tpu.vector_store %arg8[%142, %c0_39, %c0_40], %145 {strides = array<i32>} : memref<8x8x128xf32, #tpu.memory_space<vmem>>, vector<1x8x128xf32>,
    %c2_i32 = arith.constant 2 : i32
    %146 = arith.index_cast %c2_i32 : i32 to index
    %c0_41 = arith.constant 0 : index
    %c0_42 = arith.constant 0 : index
    %147 = vector.load %arg0[%146, %c0_41, %c0_42] : memref<8x8x384xf32, #tpu.memory_space<vmem>>, vector<1x8x384xf32>
    %148 = vector.shape_cast %147 : vector<1x8x384xf32> to vector<8x384xf32>
    %cst_43 = arith.constant dense<0.000000e+00> : vector<8x384xf32>
    %149 = tpu.matmul %109, %0, %cst_43 {dimension_numbers = #tpu.dot_dimension_numbers<[1], [0], [0], [1], [0, 0, 1, 1], [], []>} : vector<8x128xf32>, vector<128x384xf32>, vector<8x384xf32> -> vector<8x384xf32>
    %150 = vector.extract_strided_slice %148 {offsets = [0, 0], sizes = [8, 128], strides = [1, 1]} : vector<8x384xf32> to vector<8x128xf32>
    %151 = vector.extract_strided_slice %149 {offsets = [0, 0], sizes = [8, 128], strides = [1, 1]} : vector<8x384xf32> to vector<8x128xf32>
    %152 = arith.addf %150, %151 : vector<8x128xf32>
    %153 = arith.negf %152 : vector<8x128xf32>
    %154 = math.exp %153 : vector<8x128xf32>
    %cst_44 = arith.constant 1.000000e+00 : f32
    %155 = vector.broadcast %cst_44 : f32 to vector<8x128xf32>
    %156 = arith.addf %155, %154 : vector<8x128xf32>
    %157 = arith.divf %155, %156 : vector<8x128xf32>
    %158 = vector.extract_strided_slice %148 {offsets = [0, 128], sizes = [8, 128], strides = [1, 1]} : vector<8x384xf32> to vector<8x128xf32>
    %159 = vector.extract_strided_slice %149 {offsets = [0, 128], sizes = [8, 128], strides = [1, 1]} : vector<8x384xf32> to vector<8x128xf32>
    %160 = arith.addf %158, %159 : vector<8x128xf32>
    %161 = arith.negf %160 : vector<8x128xf32>
    %162 = math.exp %161 : vector<8x128xf32>
    %cst_45 = arith.constant 1.000000e+00 : f32
    %163 = vector.broadcast %cst_45 : f32 to vector<8x128xf32>
    %164 = arith.addf %163, %162 : vector<8x128xf32>
    %165 = arith.divf %163, %164 : vector<8x128xf32>
    %166 = vector.extract_strided_slice %148 {offsets = [0, 256], sizes = [8, 128], strides = [1, 1]} : vector<8x384xf32> to vector<8x128xf32>
    %167 = vector.extract_strided_slice %149 {offsets = [0, 256], sizes = [8, 128], strides = [1, 1]} : vector<8x384xf32> to vector<8x128xf32>
    %168 = vector.broadcast %4 : vector<1x128xf32> to vector<8x128xf32>
    %169 = arith.addf %167, %168 : vector<8x128xf32>
    %170 = arith.mulf %157, %169 : vector<8x128xf32>
    %171 = arith.addf %166, %170 : vector<8x128xf32>
    %172 = math.tanh %171 : vector<8x128xf32>
    %cst_46 = arith.constant 1.000000e+00 : f32
    %173 = vector.broadcast %cst_46 : f32 to vector<8x128xf32>
    %174 = arith.subf %173, %165 : vector<8x128xf32>
    %175 = arith.mulf %174, %172 : vector<8x128xf32>
    %176 = arith.mulf %165, %109 : vector<8x128xf32>
    %177 = arith.addf %175, %176 : vector<8x128xf32>
    %cst_47 = arith.constant dense<0.000000e+00> : vector<8x384xf32>
    %178 = tpu.matmul %177, %1, %cst_47 {dimension_numbers = #tpu.dot_dimension_numbers<[1], [0], [0], [1], [0, 0, 1, 1], [], []>} : vector<8x128xf32>, vector<128x384xf32>, vector<8x384xf32> -> vector<8x384xf32>
    %179 = vector.broadcast %3 : vector<1x384xf32> to vector<8x384xf32>
    %180 = arith.addf %178, %179 : vector<8x384xf32>
    %cst_48 = arith.constant dense<0.000000e+00> : vector<8x384xf32>
    %181 = tpu.matmul %141, %2, %cst_48 {dimension_numbers = #tpu.dot_dimension_numbers<[1], [0], [0], [1], [0, 0, 1, 1], [], []>} : vector<8x128xf32>, vector<128x384xf32>, vector<8x384xf32> -> vector<8x384xf32>
    %182 = vector.extract_strided_slice %180 {offsets = [0, 0], sizes = [8, 128], strides = [1, 1]} : vector<8x384xf32> to vector<8x128xf32>
    %183 = vector.extract_strided_slice %181 {offsets = [0, 0], sizes = [8, 128], strides = [1, 1]} : vector<8x384xf32> to vector<8x128xf32>
    %184 = arith.addf %182, %183 : vector<8x128xf32>
    %185 = arith.negf %184 : vector<8x128xf32>
    %186 = math.exp %185 : vector<8x128xf32>
    %cst_49 = arith.constant 1.000000e+00 : f32
    %187 = vector.broadcast %cst_49 : f32 to vector<8x128xf32>
    %188 = arith.addf %187, %186 : vector<8x128xf32>
    %189 = arith.divf %187, %188 : vector<8x128xf32>
    %190 = vector.extract_strided_slice %180 {offsets = [0, 128], sizes = [8, 128], strides = [1, 1]} : vector<8x384xf32> to vector<8x128xf32>
    %191 = vector.extract_strided_slice %181 {offsets = [0, 128], sizes = [8, 128], strides = [1, 1]} : vector<8x384xf32> to vector<8x128xf32>
    %192 = arith.addf %190, %191 : vector<8x128xf32>
    %193 = arith.negf %192 : vector<8x128xf32>
    %194 = math.exp %193 : vector<8x128xf32>
    %cst_50 = arith.constant 1.000000e+00 : f32
    %195 = vector.broadcast %cst_50 : f32 to vector<8x128xf32>
    %196 = arith.addf %195, %194 : vector<8x128xf32>
    %197 = arith.divf %195, %196 : vector<8x128xf32>
    %198 = vector.extract_strided_slice %180 {offsets = [0, 256], sizes = [8, 128], strides = [1, 1]} : vector<8x384xf32> to vector<8x128xf32>
    %199 = vector.extract_strided_slice %181 {offsets = [0, 256], sizes = [8, 128], strides = [1, 1]} : vector<8x384xf32> to vector<8x128xf32>
    %200 = vector.broadcast %5 : vector<1x128xf32> to vector<8x128xf32>
    %201 = arith.addf %199, %200 : vector<8x128xf32>
    %202 = arith.mulf %189, %201 : vector<8x128xf32>
    %203 = arith.addf %198, %202 : vector<8x128xf32>
    %204 = math.tanh %203 : vector<8x128xf32>
    %cst_51 = arith.constant 1.000000e+00 : f32
    %205 = vector.broadcast %cst_51 : f32 to vector<8x128xf32>
    %206 = arith.subf %205, %197 : vector<8x128xf32>
    %207 = arith.mulf %206, %204 : vector<8x128xf32>
    %208 = arith.mulf %197, %141 : vector<8x128xf32>
    %209 = arith.addf %207, %208 : vector<8x128xf32>
    %210 = arith.index_cast %c2_i32 : i32 to index
    %c0_52 = arith.constant 0 : index
    %c0_53 = arith.constant 0 : index
    %211 = vector.load %arg8[%210, %c0_52, %c0_53] : memref<8x8x128xf32, #tpu.memory_space<vmem>>, vector<1x8x128xf32>
    %212 = vector.shape_cast %211 : vector<1x8x128xf32> to vector<8x128xf32>
    %213 = vector.shape_cast %209 : vector<8x128xf32> to vector<1x8x128xf32>
    tpu.vector_store %arg8[%210, %c0_52, %c0_53], %213 {strides = array<i32>} : memref<8x8x128xf32, #tpu.memory_space<vmem>>, vector<1x8x128xf32>,
    %c3_i32 = arith.constant 3 : i32
    %214 = arith.index_cast %c3_i32 : i32 to index
    %c0_54 = arith.constant 0 : index
    %c0_55 = arith.constant 0 : index
    %215 = vector.load %arg0[%214, %c0_54, %c0_55] : memref<8x8x384xf32, #tpu.memory_space<vmem>>, vector<1x8x384xf32>
    %216 = vector.shape_cast %215 : vector<1x8x384xf32> to vector<8x384xf32>
    %cst_56 = arith.constant dense<0.000000e+00> : vector<8x384xf32>
    %217 = tpu.matmul %177, %0, %cst_56 {dimension_numbers = #tpu.dot_dimension_numbers<[1], [0], [0], [1], [0, 0, 1, 1], [], []>} : vector<8x128xf32>, vector<128x384xf32>, vector<8x384xf32> -> vector<8x384xf32>
    %218 = vector.extract_strided_slice %216 {offsets = [0, 0], sizes = [8, 128], strides = [1, 1]} : vector<8x384xf32> to vector<8x128xf32>
    %219 = vector.extract_strided_slice %217 {offsets = [0, 0], sizes = [8, 128], strides = [1, 1]} : vector<8x384xf32> to vector<8x128xf32>
    %220 = arith.addf %218, %219 : vector<8x128xf32>
    %221 = arith.negf %220 : vector<8x128xf32>
    %222 = math.exp %221 : vector<8x128xf32>
    %cst_57 = arith.constant 1.000000e+00 : f32
    %223 = vector.broadcast %cst_57 : f32 to vector<8x128xf32>
    %224 = arith.addf %223, %222 : vector<8x128xf32>
    %225 = arith.divf %223, %224 : vector<8x128xf32>
    %226 = vector.extract_strided_slice %216 {offsets = [0, 128], sizes = [8, 128], strides = [1, 1]} : vector<8x384xf32> to vector<8x128xf32>
    %227 = vector.extract_strided_slice %217 {offsets = [0, 128], sizes = [8, 128], strides = [1, 1]} : vector<8x384xf32> to vector<8x128xf32>
    %228 = arith.addf %226, %227 : vector<8x128xf32>
    %229 = arith.negf %228 : vector<8x128xf32>
    %230 = math.exp %229 : vector<8x128xf32>
    %cst_58 = arith.constant 1.000000e+00 : f32
    %231 = vector.broadcast %cst_58 : f32 to vector<8x128xf32>
    %232 = arith.addf %231, %230 : vector<8x128xf32>
    %233 = arith.divf %231, %232 : vector<8x128xf32>
    %234 = vector.extract_strided_slice %216 {offsets = [0, 256], sizes = [8, 128], strides = [1, 1]} : vector<8x384xf32> to vector<8x128xf32>
    %235 = vector.extract_strided_slice %217 {offsets = [0, 256], sizes = [8, 128], strides = [1, 1]} : vector<8x384xf32> to vector<8x128xf32>
    %236 = vector.broadcast %4 : vector<1x128xf32> to vector<8x128xf32>
    %237 = arith.addf %235, %236 : vector<8x128xf32>
    %238 = arith.mulf %225, %237 : vector<8x128xf32>
    %239 = arith.addf %234, %238 : vector<8x128xf32>
    %240 = math.tanh %239 : vector<8x128xf32>
    %cst_59 = arith.constant 1.000000e+00 : f32
    %241 = vector.broadcast %cst_59 : f32 to vector<8x128xf32>
    %242 = arith.subf %241, %233 : vector<8x128xf32>
    %243 = arith.mulf %242, %240 : vector<8x128xf32>
    %244 = arith.mulf %233, %177 : vector<8x128xf32>
    %245 = arith.addf %243, %244 : vector<8x128xf32>
    %cst_60 = arith.constant dense<0.000000e+00> : vector<8x384xf32>
    %246 = tpu.matmul %245, %1, %cst_60 {dimension_numbers = #tpu.dot_dimension_numbers<[1], [0], [0], [1], [0, 0, 1, 1], [], []>} : vector<8x128xf32>, vector<128x384xf32>, vector<8x384xf32> -> vector<8x384xf32>
    %247 = vector.broadcast %3 : vector<1x384xf32> to vector<8x384xf32>
    %248 = arith.addf %246, %247 : vector<8x384xf32>
    %cst_61 = arith.constant dense<0.000000e+00> : vector<8x384xf32>
    %249 = tpu.matmul %209, %2, %cst_61 {dimension_numbers = #tpu.dot_dimension_numbers<[1], [0], [0], [1], [0, 0, 1, 1], [], []>} : vector<8x128xf32>, vector<128x384xf32>, vector<8x384xf32> -> vector<8x384xf32>
    %250 = vector.extract_strided_slice %248 {offsets = [0, 0], sizes = [8, 128], strides = [1, 1]} : vector<8x384xf32> to vector<8x128xf32>
    %251 = vector.extract_strided_slice %249 {offsets = [0, 0], sizes = [8, 128], strides = [1, 1]} : vector<8x384xf32> to vector<8x128xf32>
    %252 = arith.addf %250, %251 : vector<8x128xf32>
    %253 = arith.negf %252 : vector<8x128xf32>
    %254 = math.exp %253 : vector<8x128xf32>
    %cst_62 = arith.constant 1.000000e+00 : f32
    %255 = vector.broadcast %cst_62 : f32 to vector<8x128xf32>
    %256 = arith.addf %255, %254 : vector<8x128xf32>
    %257 = arith.divf %255, %256 : vector<8x128xf32>
    %258 = vector.extract_strided_slice %248 {offsets = [0, 128], sizes = [8, 128], strides = [1, 1]} : vector<8x384xf32> to vector<8x128xf32>
    %259 = vector.extract_strided_slice %249 {offsets = [0, 128], sizes = [8, 128], strides = [1, 1]} : vector<8x384xf32> to vector<8x128xf32>
    %260 = arith.addf %258, %259 : vector<8x128xf32>
    %261 = arith.negf %260 : vector<8x128xf32>
    %262 = math.exp %261 : vector<8x128xf32>
    %cst_63 = arith.constant 1.000000e+00 : f32
    %263 = vector.broadcast %cst_63 : f32 to vector<8x128xf32>
    %264 = arith.addf %263, %262 : vector<8x128xf32>
    %265 = arith.divf %263, %264 : vector<8x128xf32>
    %266 = vector.extract_strided_slice %248 {offsets = [0, 256], sizes = [8, 128], strides = [1, 1]} : vector<8x384xf32> to vector<8x128xf32>
    %267 = vector.extract_strided_slice %249 {offsets = [0, 256], sizes = [8, 128], strides = [1, 1]} : vector<8x384xf32> to vector<8x128xf32>
    %268 = vector.broadcast %5 : vector<1x128xf32> to vector<8x128xf32>
    %269 = arith.addf %267, %268 : vector<8x128xf32>
    %270 = arith.mulf %257, %269 : vector<8x128xf32>
    %271 = arith.addf %266, %270 : vector<8x128xf32>
    %272 = math.tanh %271 : vector<8x128xf32>
    %cst_64 = arith.constant 1.000000e+00 : f32
    %273 = vector.broadcast %cst_64 : f32 to vector<8x128xf32>
    %274 = arith.subf %273, %265 : vector<8x128xf32>
    %275 = arith.mulf %274, %272 : vector<8x128xf32>
    %276 = arith.mulf %265, %209 : vector<8x128xf32>
    %277 = arith.addf %275, %276 : vector<8x128xf32>
    %278 = arith.index_cast %c3_i32 : i32 to index
    %c0_65 = arith.constant 0 : index
    %c0_66 = arith.constant 0 : index
    %279 = vector.load %arg8[%278, %c0_65, %c0_66] : memref<8x8x128xf32, #tpu.memory_space<vmem>>, vector<1x8x128xf32>
    %280 = vector.shape_cast %279 : vector<1x8x128xf32> to vector<8x128xf32>
    %281 = vector.shape_cast %277 : vector<8x128xf32> to vector<1x8x128xf32>
    tpu.vector_store %arg8[%278, %c0_65, %c0_66], %281 {strides = array<i32>} : memref<8x8x128xf32, #tpu.memory_space<vmem>>, vector<1x8x128xf32>,
    %c4_i32 = arith.constant 4 : i32
    %282 = arith.index_cast %c4_i32 : i32 to index
    %c0_67 = arith.constant 0 : index
    %c0_68 = arith.constant 0 : index
    %283 = vector.load %arg0[%282, %c0_67, %c0_68] : memref<8x8x384xf32, #tpu.memory_space<vmem>>, vector<1x8x384xf32>
    %284 = vector.shape_cast %283 : vector<1x8x384xf32> to vector<8x384xf32>
    %cst_69 = arith.constant dense<0.000000e+00> : vector<8x384xf32>
    %285 = tpu.matmul %245, %0, %cst_69 {dimension_numbers = #tpu.dot_dimension_numbers<[1], [0], [0], [1], [0, 0, 1, 1], [], []>} : vector<8x128xf32>, vector<128x384xf32>, vector<8x384xf32> -> vector<8x384xf32>
    %286 = vector.extract_strided_slice %284 {offsets = [0, 0], sizes = [8, 128], strides = [1, 1]} : vector<8x384xf32> to vector<8x128xf32>
    %287 = vector.extract_strided_slice %285 {offsets = [0, 0], sizes = [8, 128], strides = [1, 1]} : vector<8x384xf32> to vector<8x128xf32>
    %288 = arith.addf %286, %287 : vector<8x128xf32>
    %289 = arith.negf %288 : vector<8x128xf32>
    %290 = math.exp %289 : vector<8x128xf32>
    %cst_70 = arith.constant 1.000000e+00 : f32
    %291 = vector.broadcast %cst_70 : f32 to vector<8x128xf32>
    %292 = arith.addf %291, %290 : vector<8x128xf32>
    %293 = arith.divf %291, %292 : vector<8x128xf32>
    %294 = vector.extract_strided_slice %284 {offsets = [0, 128], sizes = [8, 128], strides = [1, 1]} : vector<8x384xf32> to vector<8x128xf32>
    %295 = vector.extract_strided_slice %285 {offsets = [0, 128], sizes = [8, 128], strides = [1, 1]} : vector<8x384xf32> to vector<8x128xf32>
    %296 = arith.addf %294, %295 : vector<8x128xf32>
    %297 = arith.negf %296 : vector<8x128xf32>
    %298 = math.exp %297 : vector<8x128xf32>
    %cst_71 = arith.constant 1.000000e+00 : f32
    %299 = vector.broadcast %cst_71 : f32 to vector<8x128xf32>
    %300 = arith.addf %299, %298 : vector<8x128xf32>
    %301 = arith.divf %299, %300 : vector<8x128xf32>
    %302 = vector.extract_strided_slice %284 {offsets = [0, 256], sizes = [8, 128], strides = [1, 1]} : vector<8x384xf32> to vector<8x128xf32>
    %303 = vector.extract_strided_slice %285 {offsets = [0, 256], sizes = [8, 128], strides = [1, 1]} : vector<8x384xf32> to vector<8x128xf32>
    %304 = vector.broadcast %4 : vector<1x128xf32> to vector<8x128xf32>
    %305 = arith.addf %303, %304 : vector<8x128xf32>
    %306 = arith.mulf %293, %305 : vector<8x128xf32>
    %307 = arith.addf %302, %306 : vector<8x128xf32>
    %308 = math.tanh %307 : vector<8x128xf32>
    %cst_72 = arith.constant 1.000000e+00 : f32
    %309 = vector.broadcast %cst_72 : f32 to vector<8x128xf32>
    %310 = arith.subf %309, %301 : vector<8x128xf32>
    %311 = arith.mulf %310, %308 : vector<8x128xf32>
    %312 = arith.mulf %301, %245 : vector<8x128xf32>
    %313 = arith.addf %311, %312 : vector<8x128xf32>
    %cst_73 = arith.constant dense<0.000000e+00> : vector<8x384xf32>
    %314 = tpu.matmul %313, %1, %cst_73 {dimension_numbers = #tpu.dot_dimension_numbers<[1], [0], [0], [1], [0, 0, 1, 1], [], []>} : vector<8x128xf32>, vector<128x384xf32>, vector<8x384xf32> -> vector<8x384xf32>
    %315 = vector.broadcast %3 : vector<1x384xf32> to vector<8x384xf32>
    %316 = arith.addf %314, %315 : vector<8x384xf32>
    %cst_74 = arith.constant dense<0.000000e+00> : vector<8x384xf32>
    %317 = tpu.matmul %277, %2, %cst_74 {dimension_numbers = #tpu.dot_dimension_numbers<[1], [0], [0], [1], [0, 0, 1, 1], [], []>} : vector<8x128xf32>, vector<128x384xf32>, vector<8x384xf32> -> vector<8x384xf32>
    %318 = vector.extract_strided_slice %316 {offsets = [0, 0], sizes = [8, 128], strides = [1, 1]} : vector<8x384xf32> to vector<8x128xf32>
    %319 = vector.extract_strided_slice %317 {offsets = [0, 0], sizes = [8, 128], strides = [1, 1]} : vector<8x384xf32> to vector<8x128xf32>
    %320 = arith.addf %318, %319 : vector<8x128xf32>
    %321 = arith.negf %320 : vector<8x128xf32>
    %322 = math.exp %321 : vector<8x128xf32>
    %cst_75 = arith.constant 1.000000e+00 : f32
    %323 = vector.broadcast %cst_75 : f32 to vector<8x128xf32>
    %324 = arith.addf %323, %322 : vector<8x128xf32>
    %325 = arith.divf %323, %324 : vector<8x128xf32>
    %326 = vector.extract_strided_slice %316 {offsets = [0, 128], sizes = [8, 128], strides = [1, 1]} : vector<8x384xf32> to vector<8x128xf32>
    %327 = vector.extract_strided_slice %317 {offsets = [0, 128], sizes = [8, 128], strides = [1, 1]} : vector<8x384xf32> to vector<8x128xf32>
    %328 = arith.addf %326, %327 : vector<8x128xf32>
    %329 = arith.negf %328 : vector<8x128xf32>
    %330 = math.exp %329 : vector<8x128xf32>
    %cst_76 = arith.constant 1.000000e+00 : f32
    %331 = vector.broadcast %cst_76 : f32 to vector<8x128xf32>
    %332 = arith.addf %331, %330 : vector<8x128xf32>
    %333 = arith.divf %331, %332 : vector<8x128xf32>
    %334 = vector.extract_strided_slice %316 {offsets = [0, 256], sizes = [8, 128], strides = [1, 1]} : vector<8x384xf32> to vector<8x128xf32>
    %335 = vector.extract_strided_slice %317 {offsets = [0, 256], sizes = [8, 128], strides = [1, 1]} : vector<8x384xf32> to vector<8x128xf32>
    %336 = vector.broadcast %5 : vector<1x128xf32> to vector<8x128xf32>
    %337 = arith.addf %335, %336 : vector<8x128xf32>
    %338 = arith.mulf %325, %337 : vector<8x128xf32>
    %339 = arith.addf %334, %338 : vector<8x128xf32>
    %340 = math.tanh %339 : vector<8x128xf32>
    %cst_77 = arith.constant 1.000000e+00 : f32
    %341 = vector.broadcast %cst_77 : f32 to vector<8x128xf32>
    %342 = arith.subf %341, %333 : vector<8x128xf32>
    %343 = arith.mulf %342, %340 : vector<8x128xf32>
    %344 = arith.mulf %333, %277 : vector<8x128xf32>
    %345 = arith.addf %343, %344 : vector<8x128xf32>
    %346 = arith.index_cast %c4_i32 : i32 to index
    %c0_78 = arith.constant 0 : index
    %c0_79 = arith.constant 0 : index
    %347 = vector.load %arg8[%346, %c0_78, %c0_79] : memref<8x8x128xf32, #tpu.memory_space<vmem>>, vector<1x8x128xf32>
    %348 = vector.shape_cast %347 : vector<1x8x128xf32> to vector<8x128xf32>
    %349 = vector.shape_cast %345 : vector<8x128xf32> to vector<1x8x128xf32>
    tpu.vector_store %arg8[%346, %c0_78, %c0_79], %349 {strides = array<i32>} : memref<8x8x128xf32, #tpu.memory_space<vmem>>, vector<1x8x128xf32>,
    %c5_i32 = arith.constant 5 : i32
    %350 = arith.index_cast %c5_i32 : i32 to index
    %c0_80 = arith.constant 0 : index
    %c0_81 = arith.constant 0 : index
    %351 = vector.load %arg0[%350, %c0_80, %c0_81] : memref<8x8x384xf32, #tpu.memory_space<vmem>>, vector<1x8x384xf32>
    %352 = vector.shape_cast %351 : vector<1x8x384xf32> to vector<8x384xf32>
    %cst_82 = arith.constant dense<0.000000e+00> : vector<8x384xf32>
    %353 = tpu.matmul %313, %0, %cst_82 {dimension_numbers = #tpu.dot_dimension_numbers<[1], [0], [0], [1], [0, 0, 1, 1], [], []>} : vector<8x128xf32>, vector<128x384xf32>, vector<8x384xf32> -> vector<8x384xf32>
    %354 = vector.extract_strided_slice %352 {offsets = [0, 0], sizes = [8, 128], strides = [1, 1]} : vector<8x384xf32> to vector<8x128xf32>
    %355 = vector.extract_strided_slice %353 {offsets = [0, 0], sizes = [8, 128], strides = [1, 1]} : vector<8x384xf32> to vector<8x128xf32>
    %356 = arith.addf %354, %355 : vector<8x128xf32>
    %357 = arith.negf %356 : vector<8x128xf32>
    %358 = math.exp %357 : vector<8x128xf32>
    %cst_83 = arith.constant 1.000000e+00 : f32
    %359 = vector.broadcast %cst_83 : f32 to vector<8x128xf32>
    %360 = arith.addf %359, %358 : vector<8x128xf32>
    %361 = arith.divf %359, %360 : vector<8x128xf32>
    %362 = vector.extract_strided_slice %352 {offsets = [0, 128], sizes = [8, 128], strides = [1, 1]} : vector<8x384xf32> to vector<8x128xf32>
    %363 = vector.extract_strided_slice %353 {offsets = [0, 128], sizes = [8, 128], strides = [1, 1]} : vector<8x384xf32> to vector<8x128xf32>
    %364 = arith.addf %362, %363 : vector<8x128xf32>
    %365 = arith.negf %364 : vector<8x128xf32>
    %366 = math.exp %365 : vector<8x128xf32>
    %cst_84 = arith.constant 1.000000e+00 : f32
    %367 = vector.broadcast %cst_84 : f32 to vector<8x128xf32>
    %368 = arith.addf %367, %366 : vector<8x128xf32>
    %369 = arith.divf %367, %368 : vector<8x128xf32>
    %370 = vector.extract_strided_slice %352 {offsets = [0, 256], sizes = [8, 128], strides = [1, 1]} : vector<8x384xf32> to vector<8x128xf32>
    %371 = vector.extract_strided_slice %353 {offsets = [0, 256], sizes = [8, 128], strides = [1, 1]} : vector<8x384xf32> to vector<8x128xf32>
    %372 = vector.broadcast %4 : vector<1x128xf32> to vector<8x128xf32>
    %373 = arith.addf %371, %372 : vector<8x128xf32>
    %374 = arith.mulf %361, %373 : vector<8x128xf32>
    %375 = arith.addf %370, %374 : vector<8x128xf32>
    %376 = math.tanh %375 : vector<8x128xf32>
    %cst_85 = arith.constant 1.000000e+00 : f32
    %377 = vector.broadcast %cst_85 : f32 to vector<8x128xf32>
    %378 = arith.subf %377, %369 : vector<8x128xf32>
    %379 = arith.mulf %378, %376 : vector<8x128xf32>
    %380 = arith.mulf %369, %313 : vector<8x128xf32>
    %381 = arith.addf %379, %380 : vector<8x128xf32>
    %cst_86 = arith.constant dense<0.000000e+00> : vector<8x384xf32>
    %382 = tpu.matmul %381, %1, %cst_86 {dimension_numbers = #tpu.dot_dimension_numbers<[1], [0], [0], [1], [0, 0, 1, 1], [], []>} : vector<8x128xf32>, vector<128x384xf32>, vector<8x384xf32> -> vector<8x384xf32>
    %383 = vector.broadcast %3 : vector<1x384xf32> to vector<8x384xf32>
    %384 = arith.addf %382, %383 : vector<8x384xf32>
    %cst_87 = arith.constant dense<0.000000e+00> : vector<8x384xf32>
    %385 = tpu.matmul %345, %2, %cst_87 {dimension_numbers = #tpu.dot_dimension_numbers<[1], [0], [0], [1], [0, 0, 1, 1], [], []>} : vector<8x128xf32>, vector<128x384xf32>, vector<8x384xf32> -> vector<8x384xf32>
    %386 = vector.extract_strided_slice %384 {offsets = [0, 0], sizes = [8, 128], strides = [1, 1]} : vector<8x384xf32> to vector<8x128xf32>
    %387 = vector.extract_strided_slice %385 {offsets = [0, 0], sizes = [8, 128], strides = [1, 1]} : vector<8x384xf32> to vector<8x128xf32>
    %388 = arith.addf %386, %387 : vector<8x128xf32>
    %389 = arith.negf %388 : vector<8x128xf32>
    %390 = math.exp %389 : vector<8x128xf32>
    %cst_88 = arith.constant 1.000000e+00 : f32
    %391 = vector.broadcast %cst_88 : f32 to vector<8x128xf32>
    %392 = arith.addf %391, %390 : vector<8x128xf32>
    %393 = arith.divf %391, %392 : vector<8x128xf32>
    %394 = vector.extract_strided_slice %384 {offsets = [0, 128], sizes = [8, 128], strides = [1, 1]} : vector<8x384xf32> to vector<8x128xf32>
    %395 = vector.extract_strided_slice %385 {offsets = [0, 128], sizes = [8, 128], strides = [1, 1]} : vector<8x384xf32> to vector<8x128xf32>
    %396 = arith.addf %394, %395 : vector<8x128xf32>
    %397 = arith.negf %396 : vector<8x128xf32>
    %398 = math.exp %397 : vector<8x128xf32>
    %cst_89 = arith.constant 1.000000e+00 : f32
    %399 = vector.broadcast %cst_89 : f32 to vector<8x128xf32>
    %400 = arith.addf %399, %398 : vector<8x128xf32>
    %401 = arith.divf %399, %400 : vector<8x128xf32>
    %402 = vector.extract_strided_slice %384 {offsets = [0, 256], sizes = [8, 128], strides = [1, 1]} : vector<8x384xf32> to vector<8x128xf32>
    %403 = vector.extract_strided_slice %385 {offsets = [0, 256], sizes = [8, 128], strides = [1, 1]} : vector<8x384xf32> to vector<8x128xf32>
    %404 = vector.broadcast %5 : vector<1x128xf32> to vector<8x128xf32>
    %405 = arith.addf %403, %404 : vector<8x128xf32>
    %406 = arith.mulf %393, %405 : vector<8x128xf32>
    %407 = arith.addf %402, %406 : vector<8x128xf32>
    %408 = math.tanh %407 : vector<8x128xf32>
    %cst_90 = arith.constant 1.000000e+00 : f32
    %409 = vector.broadcast %cst_90 : f32 to vector<8x128xf32>
    %410 = arith.subf %409, %401 : vector<8x128xf32>
    %411 = arith.mulf %410, %408 : vector<8x128xf32>
    %412 = arith.mulf %401, %345 : vector<8x128xf32>
    %413 = arith.addf %411, %412 : vector<8x128xf32>
    %414 = arith.index_cast %c5_i32 : i32 to index
    %c0_91 = arith.constant 0 : index
    %c0_92 = arith.constant 0 : index
    %415 = vector.load %arg8[%414, %c0_91, %c0_92] : memref<8x8x128xf32, #tpu.memory_space<vmem>>, vector<1x8x128xf32>
    %416 = vector.shape_cast %415 : vector<1x8x128xf32> to vector<8x128xf32>
    %417 = vector.shape_cast %413 : vector<8x128xf32> to vector<1x8x128xf32>
    tpu.vector_store %arg8[%414, %c0_91, %c0_92], %417 {strides = array<i32>} : memref<8x8x128xf32, #tpu.memory_space<vmem>>, vector<1x8x128xf32>,
    %c6_i32 = arith.constant 6 : i32
    %418 = arith.index_cast %c6_i32 : i32 to index
    %c0_93 = arith.constant 0 : index
    %c0_94 = arith.constant 0 : index
    %419 = vector.load %arg0[%418, %c0_93, %c0_94] : memref<8x8x384xf32, #tpu.memory_space<vmem>>, vector<1x8x384xf32>
    %420 = vector.shape_cast %419 : vector<1x8x384xf32> to vector<8x384xf32>
    %cst_95 = arith.constant dense<0.000000e+00> : vector<8x384xf32>
    %421 = tpu.matmul %381, %0, %cst_95 {dimension_numbers = #tpu.dot_dimension_numbers<[1], [0], [0], [1], [0, 0, 1, 1], [], []>} : vector<8x128xf32>, vector<128x384xf32>, vector<8x384xf32> -> vector<8x384xf32>
    %422 = vector.extract_strided_slice %420 {offsets = [0, 0], sizes = [8, 128], strides = [1, 1]} : vector<8x384xf32> to vector<8x128xf32>
    %423 = vector.extract_strided_slice %421 {offsets = [0, 0], sizes = [8, 128], strides = [1, 1]} : vector<8x384xf32> to vector<8x128xf32>
    %424 = arith.addf %422, %423 : vector<8x128xf32>
    %425 = arith.negf %424 : vector<8x128xf32>
    %426 = math.exp %425 : vector<8x128xf32>
    %cst_96 = arith.constant 1.000000e+00 : f32
    %427 = vector.broadcast %cst_96 : f32 to vector<8x128xf32>
    %428 = arith.addf %427, %426 : vector<8x128xf32>
    %429 = arith.divf %427, %428 : vector<8x128xf32>
    %430 = vector.extract_strided_slice %420 {offsets = [0, 128], sizes = [8, 128], strides = [1, 1]} : vector<8x384xf32> to vector<8x128xf32>
    %431 = vector.extract_strided_slice %421 {offsets = [0, 128], sizes = [8, 128], strides = [1, 1]} : vector<8x384xf32> to vector<8x128xf32>
    %432 = arith.addf %430, %431 : vector<8x128xf32>
    %433 = arith.negf %432 : vector<8x128xf32>
    %434 = math.exp %433 : vector<8x128xf32>
    %cst_97 = arith.constant 1.000000e+00 : f32
    %435 = vector.broadcast %cst_97 : f32 to vector<8x128xf32>
    %436 = arith.addf %435, %434 : vector<8x128xf32>
    %437 = arith.divf %435, %436 : vector<8x128xf32>
    %438 = vector.extract_strided_slice %420 {offsets = [0, 256], sizes = [8, 128], strides = [1, 1]} : vector<8x384xf32> to vector<8x128xf32>
    %439 = vector.extract_strided_slice %421 {offsets = [0, 256], sizes = [8, 128], strides = [1, 1]} : vector<8x384xf32> to vector<8x128xf32>
    %440 = vector.broadcast %4 : vector<1x128xf32> to vector<8x128xf32>
    %441 = arith.addf %439, %440 : vector<8x128xf32>
    %442 = arith.mulf %429, %441 : vector<8x128xf32>
    %443 = arith.addf %438, %442 : vector<8x128xf32>
    %444 = math.tanh %443 : vector<8x128xf32>
    %cst_98 = arith.constant 1.000000e+00 : f32
    %445 = vector.broadcast %cst_98 : f32 to vector<8x128xf32>
    %446 = arith.subf %445, %437 : vector<8x128xf32>
    %447 = arith.mulf %446, %444 : vector<8x128xf32>
    %448 = arith.mulf %437, %381 : vector<8x128xf32>
    %449 = arith.addf %447, %448 : vector<8x128xf32>
    %cst_99 = arith.constant dense<0.000000e+00> : vector<8x384xf32>
    %450 = tpu.matmul %449, %1, %cst_99 {dimension_numbers = #tpu.dot_dimension_numbers<[1], [0], [0], [1], [0, 0, 1, 1], [], []>} : vector<8x128xf32>, vector<128x384xf32>, vector<8x384xf32> -> vector<8x384xf32>
    %451 = vector.broadcast %3 : vector<1x384xf32> to vector<8x384xf32>
    %452 = arith.addf %450, %451 : vector<8x384xf32>
    %cst_100 = arith.constant dense<0.000000e+00> : vector<8x384xf32>
    %453 = tpu.matmul %413, %2, %cst_100 {dimension_numbers = #tpu.dot_dimension_numbers<[1], [0], [0], [1], [0, 0, 1, 1], [], []>} : vector<8x128xf32>, vector<128x384xf32>, vector<8x384xf32> -> vector<8x384xf32>
    %454 = vector.extract_strided_slice %452 {offsets = [0, 0], sizes = [8, 128], strides = [1, 1]} : vector<8x384xf32> to vector<8x128xf32>
    %455 = vector.extract_strided_slice %453 {offsets = [0, 0], sizes = [8, 128], strides = [1, 1]} : vector<8x384xf32> to vector<8x128xf32>
    %456 = arith.addf %454, %455 : vector<8x128xf32>
    %457 = arith.negf %456 : vector<8x128xf32>
    %458 = math.exp %457 : vector<8x128xf32>
    %cst_101 = arith.constant 1.000000e+00 : f32
    %459 = vector.broadcast %cst_101 : f32 to vector<8x128xf32>
    %460 = arith.addf %459, %458 : vector<8x128xf32>
    %461 = arith.divf %459, %460 : vector<8x128xf32>
    %462 = vector.extract_strided_slice %452 {offsets = [0, 128], sizes = [8, 128], strides = [1, 1]} : vector<8x384xf32> to vector<8x128xf32>
    %463 = vector.extract_strided_slice %453 {offsets = [0, 128], sizes = [8, 128], strides = [1, 1]} : vector<8x384xf32> to vector<8x128xf32>
    %464 = arith.addf %462, %463 : vector<8x128xf32>
    %465 = arith.negf %464 : vector<8x128xf32>
    %466 = math.exp %465 : vector<8x128xf32>
    %cst_102 = arith.constant 1.000000e+00 : f32
    %467 = vector.broadcast %cst_102 : f32 to vector<8x128xf32>
    %468 = arith.addf %467, %466 : vector<8x128xf32>
    %469 = arith.divf %467, %468 : vector<8x128xf32>
    %470 = vector.extract_strided_slice %452 {offsets = [0, 256], sizes = [8, 128], strides = [1, 1]} : vector<8x384xf32> to vector<8x128xf32>
    %471 = vector.extract_strided_slice %453 {offsets = [0, 256], sizes = [8, 128], strides = [1, 1]} : vector<8x384xf32> to vector<8x128xf32>
    %472 = vector.broadcast %5 : vector<1x128xf32> to vector<8x128xf32>
    %473 = arith.addf %471, %472 : vector<8x128xf32>
    %474 = arith.mulf %461, %473 : vector<8x128xf32>
    %475 = arith.addf %470, %474 : vector<8x128xf32>
    %476 = math.tanh %475 : vector<8x128xf32>
    %cst_103 = arith.constant 1.000000e+00 : f32
    %477 = vector.broadcast %cst_103 : f32 to vector<8x128xf32>
    %478 = arith.subf %477, %469 : vector<8x128xf32>
    %479 = arith.mulf %478, %476 : vector<8x128xf32>
    %480 = arith.mulf %469, %413 : vector<8x128xf32>
    %481 = arith.addf %479, %480 : vector<8x128xf32>
    %482 = arith.index_cast %c6_i32 : i32 to index
    %c0_104 = arith.constant 0 : index
    %c0_105 = arith.constant 0 : index
    %483 = vector.load %arg8[%482, %c0_104, %c0_105] : memref<8x8x128xf32, #tpu.memory_space<vmem>>, vector<1x8x128xf32>
    %484 = vector.shape_cast %483 : vector<1x8x128xf32> to vector<8x128xf32>
    %485 = vector.shape_cast %481 : vector<8x128xf32> to vector<1x8x128xf32>
    tpu.vector_store %arg8[%482, %c0_104, %c0_105], %485 {strides = array<i32>} : memref<8x8x128xf32, #tpu.memory_space<vmem>>, vector<1x8x128xf32>,
    %c7_i32 = arith.constant 7 : i32
    %486 = arith.index_cast %c7_i32 : i32 to index
    %c0_106 = arith.constant 0 : index
    %c0_107 = arith.constant 0 : index
    %487 = vector.load %arg0[%486, %c0_106, %c0_107] : memref<8x8x384xf32, #tpu.memory_space<vmem>>, vector<1x8x384xf32>
    %488 = vector.shape_cast %487 : vector<1x8x384xf32> to vector<8x384xf32>
    %cst_108 = arith.constant dense<0.000000e+00> : vector<8x384xf32>
    %489 = tpu.matmul %449, %0, %cst_108 {dimension_numbers = #tpu.dot_dimension_numbers<[1], [0], [0], [1], [0, 0, 1, 1], [], []>} : vector<8x128xf32>, vector<128x384xf32>, vector<8x384xf32> -> vector<8x384xf32>
    %490 = vector.extract_strided_slice %488 {offsets = [0, 0], sizes = [8, 128], strides = [1, 1]} : vector<8x384xf32> to vector<8x128xf32>
    %491 = vector.extract_strided_slice %489 {offsets = [0, 0], sizes = [8, 128], strides = [1, 1]} : vector<8x384xf32> to vector<8x128xf32>
    %492 = arith.addf %490, %491 : vector<8x128xf32>
    %493 = arith.negf %492 : vector<8x128xf32>
    %494 = math.exp %493 : vector<8x128xf32>
    %cst_109 = arith.constant 1.000000e+00 : f32
    %495 = vector.broadcast %cst_109 : f32 to vector<8x128xf32>
    %496 = arith.addf %495, %494 : vector<8x128xf32>
    %497 = arith.divf %495, %496 : vector<8x128xf32>
    %498 = vector.extract_strided_slice %488 {offsets = [0, 128], sizes = [8, 128], strides = [1, 1]} : vector<8x384xf32> to vector<8x128xf32>
    %499 = vector.extract_strided_slice %489 {offsets = [0, 128], sizes = [8, 128], strides = [1, 1]} : vector<8x384xf32> to vector<8x128xf32>
    %500 = arith.addf %498, %499 : vector<8x128xf32>
    %501 = arith.negf %500 : vector<8x128xf32>
    %502 = math.exp %501 : vector<8x128xf32>
    %cst_110 = arith.constant 1.000000e+00 : f32
    %503 = vector.broadcast %cst_110 : f32 to vector<8x128xf32>
    %504 = arith.addf %503, %502 : vector<8x128xf32>
    %505 = arith.divf %503, %504 : vector<8x128xf32>
    %506 = vector.extract_strided_slice %488 {offsets = [0, 256], sizes = [8, 128], strides = [1, 1]} : vector<8x384xf32> to vector<8x128xf32>
    %507 = vector.extract_strided_slice %489 {offsets = [0, 256], sizes = [8, 128], strides = [1, 1]} : vector<8x384xf32> to vector<8x128xf32>
    %508 = vector.broadcast %4 : vector<1x128xf32> to vector<8x128xf32>
    %509 = arith.addf %507, %508 : vector<8x128xf32>
    %510 = arith.mulf %497, %509 : vector<8x128xf32>
    %511 = arith.addf %506, %510 : vector<8x128xf32>
    %512 = math.tanh %511 : vector<8x128xf32>
    %cst_111 = arith.constant 1.000000e+00 : f32
    %513 = vector.broadcast %cst_111 : f32 to vector<8x128xf32>
    %514 = arith.subf %513, %505 : vector<8x128xf32>
    %515 = arith.mulf %514, %512 : vector<8x128xf32>
    %516 = arith.mulf %505, %449 : vector<8x128xf32>
    %517 = arith.addf %515, %516 : vector<8x128xf32>
    %cst_112 = arith.constant dense<0.000000e+00> : vector<8x384xf32>
    %518 = tpu.matmul %517, %1, %cst_112 {dimension_numbers = #tpu.dot_dimension_numbers<[1], [0], [0], [1], [0, 0, 1, 1], [], []>} : vector<8x128xf32>, vector<128x384xf32>, vector<8x384xf32> -> vector<8x384xf32>
    %519 = vector.broadcast %3 : vector<1x384xf32> to vector<8x384xf32>
    %520 = arith.addf %518, %519 : vector<8x384xf32>
    %cst_113 = arith.constant dense<0.000000e+00> : vector<8x384xf32>
    %521 = tpu.matmul %481, %2, %cst_113 {dimension_numbers = #tpu.dot_dimension_numbers<[1], [0], [0], [1], [0, 0, 1, 1], [], []>} : vector<8x128xf32>, vector<128x384xf32>, vector<8x384xf32> -> vector<8x384xf32>
    %522 = vector.extract_strided_slice %520 {offsets = [0, 0], sizes = [8, 128], strides = [1, 1]} : vector<8x384xf32> to vector<8x128xf32>
    %523 = vector.extract_strided_slice %521 {offsets = [0, 0], sizes = [8, 128], strides = [1, 1]} : vector<8x384xf32> to vector<8x128xf32>
    %524 = arith.addf %522, %523 : vector<8x128xf32>
    %525 = arith.negf %524 : vector<8x128xf32>
    %526 = math.exp %525 : vector<8x128xf32>
    %cst_114 = arith.constant 1.000000e+00 : f32
    %527 = vector.broadcast %cst_114 : f32 to vector<8x128xf32>
    %528 = arith.addf %527, %526 : vector<8x128xf32>
    %529 = arith.divf %527, %528 : vector<8x128xf32>
    %530 = vector.extract_strided_slice %520 {offsets = [0, 128], sizes = [8, 128], strides = [1, 1]} : vector<8x384xf32> to vector<8x128xf32>
    %531 = vector.extract_strided_slice %521 {offsets = [0, 128], sizes = [8, 128], strides = [1, 1]} : vector<8x384xf32> to vector<8x128xf32>
    %532 = arith.addf %530, %531 : vector<8x128xf32>
    %533 = arith.negf %532 : vector<8x128xf32>
    %534 = math.exp %533 : vector<8x128xf32>
    %cst_115 = arith.constant 1.000000e+00 : f32
    %535 = vector.broadcast %cst_115 : f32 to vector<8x128xf32>
    %536 = arith.addf %535, %534 : vector<8x128xf32>
    %537 = arith.divf %535, %536 : vector<8x128xf32>
    %538 = vector.extract_strided_slice %520 {offsets = [0, 256], sizes = [8, 128], strides = [1, 1]} : vector<8x384xf32> to vector<8x128xf32>
    %539 = vector.extract_strided_slice %521 {offsets = [0, 256], sizes = [8, 128], strides = [1, 1]} : vector<8x384xf32> to vector<8x128xf32>
    %540 = vector.broadcast %5 : vector<1x128xf32> to vector<8x128xf32>
    %541 = arith.addf %539, %540 : vector<8x128xf32>
    %542 = arith.mulf %529, %541 : vector<8x128xf32>
    %543 = arith.addf %538, %542 : vector<8x128xf32>
    %544 = math.tanh %543 : vector<8x128xf32>
    %cst_116 = arith.constant 1.000000e+00 : f32
    %545 = vector.broadcast %cst_116 : f32 to vector<8x128xf32>
    %546 = arith.subf %545, %537 : vector<8x128xf32>
    %547 = arith.mulf %546, %544 : vector<8x128xf32>
    %548 = arith.mulf %537, %481 : vector<8x128xf32>
    %549 = arith.addf %547, %548 : vector<8x128xf32>
    %550 = arith.index_cast %c7_i32 : i32 to index
    %c0_117 = arith.constant 0 : index
    %c0_118 = arith.constant 0 : index
    %551 = vector.load %arg8[%550, %c0_117, %c0_118] : memref<8x8x128xf32, #tpu.memory_space<vmem>>, vector<1x8x128xf32>
    %552 = vector.shape_cast %551 : vector<1x8x128xf32> to vector<8x128xf32>
    %553 = vector.shape_cast %549 : vector<8x128xf32> to vector<1x8x128xf32>
    tpu.vector_store %arg8[%550, %c0_117, %c0_118], %553 {strides = array<i32>} : memref<8x8x128xf32, #tpu.memory_space<vmem>>, vector<1x8x128xf32>,
    %c8_i32 = arith.constant 8 : i32
    %c0_119 = arith.constant 0 : index
    %c0_120 = arith.constant 0 : index
    %c0_121 = arith.constant 0 : index
    %554 = vector.load %arg9[%c0_119, %c0_120, %c0_121] : memref<2x8x128xf32, #tpu.memory_space<vmem>>, vector<1x8x128xf32>
    %555 = vector.shape_cast %554 : vector<1x8x128xf32> to vector<8x128xf32>
    %556 = vector.shape_cast %517 : vector<8x128xf32> to vector<1x8x128xf32>
    tpu.vector_store %arg9[%c0_119, %c0_120, %c0_121], %556 {strides = array<i32>} : memref<2x8x128xf32, #tpu.memory_space<vmem>>, vector<1x8x128xf32>,
    %c1_122 = arith.constant 1 : index
    %c0_123 = arith.constant 0 : index
    %c0_124 = arith.constant 0 : index
    %557 = vector.load %arg9[%c1_122, %c0_123, %c0_124] : memref<2x8x128xf32, #tpu.memory_space<vmem>>, vector<1x8x128xf32>
    %558 = vector.shape_cast %557 : vector<1x8x128xf32> to vector<8x128xf32>
    %559 = vector.shape_cast %549 : vector<8x128xf32> to vector<1x8x128xf32>
    tpu.vector_store %arg9[%c1_122, %c0_123, %c0_124], %559 {strides = array<i32>} : memref<2x8x128xf32, #tpu.memory_space<vmem>>, vector<1x8x128xf32>,
    return
  }
}

</mosaic_0001>

<bundles_post_ra>
// kernel: gru_decoder_forward.1
= control target key start
LH: loop header
LB: loop body
LE: loop exit
PB: predicated region body
PF: predicated region fallthrough
CT: control target
= control target key end

     0   :  { %v8665_v7 = vmov 0.0|0.0   ;;  %v8663_v8 = vmov 0.0   ;;  %vm6897_vm0 = vmmov 0   ;;  %s8653_s0 = inlined_call_operand.vmem [shape: f32[8,8,384], index: 0, kind: input, shape index: {}]   ;;  %s8654_s1 = inlined_call_operand.vmem [shape: f32[2,8,128], index: 1, kind: input, shape index: {}]   ;;  %s8655_s2 = inlined_call_operand.vmem [shape: f32[128,384], index: 2, kind: input, shape index: {}]   ;;  %s8656_s3 = inlined_call_operand.vmem [shape: f32[128,384], index: 3, kind: input, shape index: {}]   ;;  %s8657_s4 = inlined_call_operand.vmem [shape: f32[128,384], index: 4, kind: input, shape index: {}]   ;;  %s8658_s5 = inlined_call_operand.vmem [shape: f32[1,384], index: 5, kind: input, shape index: {}]   ;;  %s8659_s6 = inlined_call_operand.vmem [shape: f32[1,128], index: 6, kind: input, shape index: {}]   ;;  %s8660_s7 = inlined_call_operand.vmem [shape: f32[1,128], index: 7, kind: input, shape index: {}]   ;;  %s8661_s8 = inlined_call_operand.vmem [shape: f32[8,8,128], index: 8, kind: output, shape index: {0}]   ;;  %s8662_s9 = inlined_call_operand.hbm [shape: f32[2,8,128], index: 9, kind: output, shape index: {1}]  }
   0x1   :  { %v33_v0 = vld [vmem:[%s8655_s2 + $0x8] sm:$0xff]  ;;  %v36_v1 = vld [vmem:[%s8655_s2 + $0x20] sm:$0xff]  ;;  %v35_v4 = vld [vmem:[%s8655_s2 + $0x18] sm:$0xff]  ;;  %5358 = vmatprep.subr.bf16.mxu1 %v8665_v7  ;;  %249 = vmatprep.mubr.f32.mxu0 %v8663_v8 }
   0x2   :  { %v32_v2 = vld [vmem:[%s8655_s2] sm:$0xff]  ;;  %v6960_v3 = vpack.c.bf16 %v36_v1, %v33_v0  ;;  %v39_v5 = vld [vmem:[%s8655_s2 + $0x38] sm:$0xff]  ;;  %v42_v6 = vld [vmem:[%s8655_s2 + $0x50] sm:$0xff]  ;;  %4518 = vmatprep.mubr.msk.f32.mxu1 %vm6897_vm0, %v8663_v8 }
   0x3   :  { %v6973_v9 = vpack.c.bf16 %v35_v4, %v32_v2  ;;  %v6975_v10 = vpack.c.bf16 %v42_v6, %v39_v5  ;;  %v38_v11 = vld [vmem:[%s8655_s2 + $0x30] sm:$0xff]  ;;  %v41_v12 = vld [vmem:[%s8655_s2 + $0x48] sm:$0xff]  ;;  %v48_v14 = vld [vmem:[%s8655_s2 + $0x80] sm:$0xff] }
   0x4   :  { %v45_v13 = vld [vmem:[%s8655_s2 + $0x68] sm:$0xff]  ;;  %5327 = vmatprep.subr.bf16.mxu0 %v6960_v3  ;;  %v6993_v15 = vpack.c.bf16 %v41_v12, %v38_v11  ;;  %v44_v17 = vld [vmem:[%s8655_s2 + $0x60] sm:$0xff]  ;;  %v47_v18 = vld [vmem:[%s8655_s2 + $0x78] sm:$0xff] }
   0x5   :  { %5329 = vmatpush1.bf16.msra.mxu0 %v6973_v9  ;;  %v6996_v16 = vpack.c.bf16 %v48_v14, %v45_v13  ;;  %v51_v19 = vld [vmem:[%s8655_s2 + $0x98] sm:$0xff]  ;;  %v54_v20 = vld [vmem:[%s8655_s2 + $0xb0] sm:$0xff]  ;;  %v7011_v21 = vpack.c.bf16 %v47_v18, %v44_v17  ;;  %v53_v24 = vld [vmem:[%s8655_s2 + $0xa8] sm:$0xff] }
   0x6   :  { %5331 = vmatprep.subr.bf16.mxu0 %v6975_v10  ;;  %v50_v22 = vld [vmem:[%s8655_s2 + $0x90] sm:$0xff]  ;;  %v7017_v23 = vpack.c.bf16 %v54_v20, %v51_v19  ;;  %v37_v26 = vld [vmem:[%s8655_s2 + $0x28] sm:$0xff]  ;;  %v60_v28 = vld [vmem:[%s8655_s2 + $0xe0] sm:$0xff] }
   0x7   :  { %v34_v25 = vld [vmem:[%s8655_s2 + $0x10] sm:$0xff]  ;;  %v57_v27 = vld [vmem:[%s8655_s2 + $0xc8] sm:$0xff]  ;;  %v40_v30 = vld [vmem:[%s8655_s2 + $0x40] sm:$0xff]  ;;  %v7043_v32 = vpack.c.bf16 %v53_v24, %v50_v22 }
   0x8   :  { %v7034_v29 = vpack.c.bf16 %v37_v26, %v34_v25  ;;  %v43_v31 = vld [vmem:[%s8655_s2 + $0x58] sm:$0xff]  ;;  %v56_v33 = vld [vmem:[%s8655_s2 + $0xc0] sm:$0xff]  ;;  %v7052_v35 = vpack.c.bf16 %v60_v28, %v57_v27  ;;  %v46_v37 = vld [vmem:[%s8655_s2 + $0x70] sm:$0xff] }
   0x9   :  { %5333 = vmatpush1.bf16.msra.mxu0 %v6993_v15  ;;  %v7049_v34 = vpack.c.bf16 %v43_v31, %v40_v30  ;;  %v59_v36 = vld [vmem:[%s8655_s2 + $0xd8] sm:$0xff]  ;;  %v49_v38 = vld [vmem:[%s8655_s2 + $0x88] sm:$0xff]  ;;  %v66_v40 = vld [vmem:[%s8655_s2 + $0x110] sm:$0xff] }
   0xa   :  { %5335 = vmatprep.subr.bf16.mxu0 %v6996_v16  ;;  %5360 = vmatpush3.bf16.msra.mxu1 %v7034_v29  ;;  %v63_v39 = vld [vmem:[%s8655_s2 + $0xf8] sm:$0xff]  ;;  %v7071_v41 = vpack.c.bf16 %v59_v36, %v56_v33  ;;  %v62_v42 = vld [vmem:[%s8655_s2 + $0xf0] sm:$0xff]  ;;  %v7077_v43 = vpack.c.bf16 %v49_v38, %v46_v37 }
   0xb   :  { %5361 = vmatprep.subr.bf16.mxu1 %v8665_v7 }
   0xd   :  { %5337 = vmatpush1.bf16.msra.mxu0 %v7011_v21 }
   0xe   :  { %5339 = vmatprep.subr.bf16.mxu0 %v7017_v23  ;;  %5363 = vmatpush3.bf16.msra.mxu1 %v7049_v34 }
  0x11   :  { %5341 = vmatpush1.bf16.msra.mxu0 %v7043_v32 }
  0x12   :  { %15 = vsyncpa [#allocation3], 0  ;;  %5343 = vmatprep.subr.bf16.mxu0 %v7052_v35  ;;  %v7080_v44 = vpack.c.bf16 %v66_v40, %v63_v39  ;;  %v65_v45 = vld [vmem:[%s8655_s2 + $0x108] sm:$0xff]  ;;  %5364 = vmatprep.subr.bf16.mxu1 %v8665_v7  ;;  %v52_v46 = vld [vmem:[%s8655_s2 + $0xa0] sm:$0xff] }
  0x13   :  { %v55_v47 = vld [vmem:[%s8655_s2 + $0xb8] sm:$0xff]  ;;  %v69_v48 = vld [vmem:[%s8655_s2 + $0x128] sm:$0xff]  ;;  %v72_v49 = vld [vmem:[%s8655_s2 + $0x140] sm:$0xff]  ;;  %v7099_v50 = vpack.c.bf16 %v65_v45, %v62_v42  ;;  %5366 = vmatpush3.bf16.msra.mxu1 %v7077_v43 }
  0x14   :  { %8781 = vst [vmem:[#allocation5_spill] sm:$0xff] %v7080_v44  ;;  %v68_v51 = vld [vmem:[%s8655_s2 + $0x120] sm:$0xff]  ;;  %v7105_v52 = vpack.c.bf16 %v55_v47, %v52_v46  ;;  %v7108_v53 = vpack.c.bf16 %v72_v49, %v69_v48  ;;  %v71_v54 = vld [vmem:[%s8655_s2 + $0x138] sm:$0xff]  ;;  %5367 = vmatprep.subr.bf16.mxu1 %v8665_v7  ;;  %v58_v55 = vld [vmem:[%s8655_s2 + $0xd0] sm:$0xff] }
  0x15   :  { %5345 = vmatpush1.bf16.msra.mxu0 %v7071_v41  ;;  %8782 = vst [vmem:[#allocation6_spill] sm:$0xff] %v7099_v50  ;;  %v61_v56 = vld [vmem:[%s8655_s2 + $0xe8] sm:$0xff]  ;;  %v75_v57 = vld [vmem:[%s8655_s2 + $0x158] sm:$0xff]  ;;  %v78_v58 = vld [vmem:[%s8655_s2 + $0x170] sm:$0xff]  ;;  %v7127_v59 = vpack.c.bf16 %v71_v54, %v68_v51 }
  0x16   :  { %5347 = vmatprep.subr.bf16.mxu0 %v7080_v44  ;;  %8783 = vst [vmem:[#allocation7_spill] sm:$0xff] %v7108_v53  ;;  %v74_v60 = vld [vmem:[%s8655_s2 + $0x150] sm:$0xff]  ;;  %v7133_v61 = vpack.c.bf16 %v61_v56, %v58_v55  ;;  %v7136_v62 = vpack.c.bf16 %v78_v58, %v75_v57  ;;  %v77_v63 = vld [vmem:[%s8655_s2 + $0x168] sm:$0xff]  ;;  %v64_v0 = vld [vmem:[%s8655_s2 + $0x100] sm:$0xff] }
  0x17   :  { %8784 = vst [vmem:[#allocation8_spill] sm:$0xff] %v7127_v59  ;;  %5369 = vmatpush3.bf16.msra.mxu1 %v7105_v52  ;;  %v67_v1 = vld [vmem:[%s8655_s2 + $0x118] sm:$0xff]  ;;  %v7149_v2 = vpack.c.bf16 %v77_v63, %v74_v60  ;;  %v70_v5 = vld [vmem:[%s8655_s2 + $0x130] sm:$0xff]  ;;  %v73_v6 = vld [vmem:[%s8655_s2 + $0x148] sm:$0xff] }
  0x18   :  { %8785 = vst [vmem:[#allocation9_spill] sm:$0xff] %v7136_v62  ;;  %5370 = vmatprep.subr.bf16.mxu1 %v8665_v7  ;;  %v7152_v4 = vpack.c.bf16 %v67_v1, %v64_v0  ;;  %v7166_v11 = vld [vmem:[%s8654_s1] sm:$0xff]  ;;  %v7169_v12 = vpack.c.bf16 %v73_v6, %v70_v5  ;;  %v79_v14 = vld [vmem:[%s8655_s2 + $0x178] sm:$0xff]  ;;  %v81_v18 = vld [vmem:[%s8656_s3 + $0x8] sm:$0xff] }
  0x19   :  { %5349 = vmatpush1.bf16.msra.mxu0 %v7099_v50  ;;  %8786 = vst [vmem:[#allocation10_spill] sm:$0xff] %v7149_v2  ;;  %v76_v13 = vld [vmem:[%s8655_s2 + $0x160] sm:$0xff]  ;;  %v83_v24 = vld [vmem:[%s8656_s3 + $0x18] sm:$0xff]  ;;  %v82_v25 = vld [vmem:[%s8656_s3 + $0x10] sm:$0xff] }
  0x1a   :  { %5351 = vmatprep.subr.bf16.mxu0 %v7108_v53  ;;  %8787 = vst [vmem:[#allocation11_spill] sm:$0xff] %v7152_v4  ;;  %8788 = vst [vmem:[#allocation12_spill] sm:$0xff] %v7169_v12  ;;  %v7180_v17 = vpack.c.bf16 %v79_v14, %v76_v13  ;;  %v84_v19 = vld [vmem:[%s8656_s3 + $0x20] sm:$0xff]  ;;  %v85_v27 = vld [vmem:[%s8656_s3 + $0x28] sm:$0xff] }
  0x1b   :  { %5372 = vmatpush3.bf16.msra.mxu1 %v7133_v61  ;;  %v7195_v20 = vpack.c.bf16 %v84_v19, %v81_v18  ;;  %v80_v22 = vld [vmem:[%s8656_s3] sm:$0xff]  ;;  %v7212_v28 = vpack.c.bf16 %v85_v27, %v82_v25  ;;  %v87_v30 = vld [vmem:[%s8656_s3 + $0x38] sm:$0xff]  ;;  %v90_v31 = vld [vmem:[%s8656_s3 + $0x50] sm:$0xff] }
  0x1c   :  { %5373 = vmatprep.subr.bf16.mxu1 %v8665_v7  ;;  %8789 = vst [vmem:[#allocation13_spill] sm:$0xff] %v7180_v17  ;;  %v7206_v26 = vpack.c.bf16 %v83_v24, %v80_v22  ;;  %v7222_v33 = vpack.c.bf16 %v90_v31, %v87_v30  ;;  %v86_v36 = vld [vmem:[%s8656_s3 + $0x30] sm:$0xff]  ;;  %v89_v37 = vld [vmem:[%s8656_s3 + $0x48] sm:$0xff]  ;;  %v88_v38 = vld [vmem:[%s8656_s3 + $0x40] sm:$0xff] }
  0x1d   :  { %5353 = vmatpush1.bf16.msra.mxu0 %v7127_v59  ;;  %8790 = vst [vmem:[#allocation14_spill] sm:$0xff] %v7195_v20  ;;  %8792 = vst [vmem:[#allocation16_spill] sm:$0xff] %v7212_v28  ;;  %v7234_v39 = vpack.c.bf16 %v89_v37, %v86_v36  ;;  %v91_v40 = vld [vmem:[%s8656_s3 + $0x58] sm:$0xff]  ;;  %v93_v45 = vld [vmem:[%s8656_s3 + $0x68] sm:$0xff] }
  0x1e   :  { %5355 = vmatprep.subr.bf16.mxu0 %v7136_v62  ;;  %8791 = vst [vmem:[#allocation15_spill] sm:$0xff] %v7206_v26  ;;  %8793 = vst [vmem:[#allocation17_spill] sm:$0xff] %v7222_v33  ;;  %v7240_v42 = vpack.c.bf16 %v91_v40, %v88_v38  ;;  %v96_v46 = vld [vmem:[%s8656_s3 + $0x80] sm:$0xff]  ;;  %v95_v49 = vld [vmem:[%s8656_s3 + $0x78] sm:$0xff] }
  0x1f   :  { %5375 = vmatpush3.bf16.msra.mxu1 %v7152_v4  ;;  %8794 = vst [vmem:[#allocation18_spill] sm:$0xff] %v7234_v39  ;;  %v7250_v47 = vpack.c.bf16 %v96_v46, %v93_v45  ;;  %v92_v48 = vld [vmem:[%s8656_s3 + $0x60] sm:$0xff]  ;;  %v94_v51 = vld [vmem:[%s8656_s3 + $0x70] sm:$0xff]  ;;  %v97_v55 = vld [vmem:[%s8656_s3 + $0x88] sm:$0xff] }
  0x20   :  { %5376 = vmatprep.subr.bf16.mxu1 %v8665_v7  ;;  %8795 = vst [vmem:[#allocation19_spill] sm:$0xff] %v7240_v42  ;;  %v7262_v54 = vpack.c.bf16 %v95_v49, %v92_v48  ;;  %v7268_v56 = vpack.c.bf16 %v97_v55, %v94_v51  ;;  %v99_v57 = vld [vmem:[%s8656_s3 + $0x98] sm:$0xff]  ;;  %v102_v58 = vld [vmem:[%s8656_s3 + $0xb0] sm:$0xff]  ;;  %v101_v0 = vld [vmem:[%s8656_s3 + $0xa8] sm:$0xff] }
  0x21   :  { %5357 = vmatpush1.bf16.msra.mxu0 %v7149_v2  ;;  %8796 = vst [vmem:[#allocation20_spill] sm:$0xff] %v7250_v47  ;;  %v7278_v60 = vpack.c.bf16 %v102_v58, %v99_v57  ;;  %v98_v63 = vld [vmem:[%s8656_s3 + $0x90] sm:$0xff]  ;;  %v100_v1 = vld [vmem:[%s8656_s3 + $0xa0] sm:$0xff]  ;;  %v103_v6 = vld [vmem:[%s8656_s3 + $0xb8] sm:$0xff] }
  0x22   :  { %5383 = vmatprep.subr.bf16.mxu0 %v7195_v20  ;;  %8797 = vst [vmem:[#allocation21_spill] sm:$0xff] %v7262_v54  ;;  %8798 = vst [vmem:[#allocation22_spill] sm:$0xff] %v7268_v56  ;;  %v7290_v5 = vpack.c.bf16 %v101_v0, %v98_v63  ;;  %v7296_v13 = vpack.c.bf16 %v103_v6, %v100_v1  ;;  %v105_v14 = vld [vmem:[%s8656_s3 + $0xc8] sm:$0xff]  ;;  %v108_v18 = vld [vmem:[%s8656_s3 + $0xe0] sm:$0xff] }
  0x23   :  { %5378 = vmatpush3.bf16.msra.mxu1 %v7169_v12  ;;  %8799 = vst [vmem:[#allocation23_spill] sm:$0xff] %v7278_v60  ;;  %v7306_v19 = vpack.c.bf16 %v108_v18, %v105_v14  ;;  %v104_v22 = vld [vmem:[%s8656_s3 + $0xc0] sm:$0xff]  ;;  %v107_v24 = vld [vmem:[%s8656_s3 + $0xd8] sm:$0xff]  ;;  %v106_v25 = vld [vmem:[%s8656_s3 + $0xd0] sm:$0xff] }
  0x24   :  { %250 = vmatmul.mubr.f32.vlgmr.msra.gmra.mrb[0].mxu0 %v7166_v11  ;;  %5379 = vmatprep.subr.bf16.mxu1 %v8665_v7  ;;  %8800 = vst [vmem:[#allocation24_spill] sm:$0xff] %v7290_v5  ;;  %8801 = vst [vmem:[#allocation25_spill] sm:$0xff] %v7296_v13  ;;  %v7318_v27 = vpack.c.bf16 %v107_v24, %v104_v22  ;;  %v109_v30 = vld [vmem:[%s8656_s3 + $0xe8] sm:$0xff]  ;;  %v111_v36 = vld [vmem:[%s8656_s3 + $0xf8] sm:$0xff] }
  0x25   :  { %434 = vmatprep.mubr.f32.mxu0 %v8663_v8  ;;  %5385 = vmatpush1.bf16.msra.mxu0 %v7206_v26  ;;  %8802 = vst [vmem:[#allocation26_spill] sm:$0xff] %v7306_v19  ;;  %v7324_v31 = vpack.c.bf16 %v109_v30, %v106_v25  ;;  %v114_v37 = vld [vmem:[%s8656_s3 + $0x110] sm:$0xff]  ;;  %v113_v45 = vld [vmem:[%s8656_s3 + $0x108] sm:$0xff]  ;;  %v112_v46 = vld [vmem:[%s8656_s3 + $0x100] sm:$0xff] }
  0x26   :  { %5387 = vmatprep.subr.bf16.mxu0 %v7222_v33  ;;  %8803 = vst [vmem:[#allocation27_spill] sm:$0xff] %v7318_v27  ;;  %v7334_v38 = vpack.c.bf16 %v114_v37, %v111_v36  ;;  %v110_v40 = vld [vmem:[%s8656_s3 + $0xf0] sm:$0xff]  ;;  %v115_v49 = vld [vmem:[%s8656_s3 + $0x118] sm:$0xff]  ;;  %v117_v51 = vld [vmem:[%s8656_s3 + $0x128] sm:$0xff] }
  0x27   :  { %5381 = vmatpush3.bf16.msra.mxu1 %v7180_v17  ;;  %8804 = vst [vmem:[#allocation28_spill] sm:$0xff] %v7324_v31  ;;  %v7346_v48 = vpack.c.bf16 %v113_v45, %v110_v40  ;;  %v120_v55 = vld [vmem:[%s8656_s3 + $0x140] sm:$0xff]  ;;  %v7358_v57 = vpack.c.bf16 %v115_v49, %v112_v46  ;;  %v119_v0 = vld [vmem:[%s8656_s3 + $0x138] sm:$0xff]  ;;  %v118_v1 = vld [vmem:[%s8656_s3 + $0x130] sm:$0xff] }
  0x28   :  { %5414 = vmatprep.subr.bf16.mxu1 %v8665_v7  ;;  %8805 = vst [vmem:[#allocation29_spill] sm:$0xff] %v7334_v38  ;;  %v7360_v58 = vpack.c.bf16 %v120_v55, %v117_v51  ;;  %v116_v63 = vld [vmem:[%s8656_s3 + $0x120] sm:$0xff]  ;;  %v121_v14 = vld [vmem:[%s8656_s3 + $0x148] sm:$0xff]  ;;  %v123_v18 = vld [vmem:[%s8656_s3 + $0x158] sm:$0xff] }
  0x29   :  { %5389 = vmatpush1.bf16.msra.mxu0 %v7234_v39  ;;  %8806 = vst [vmem:[#allocation30_spill] sm:$0xff] %v7346_v48  ;;  %8807 = vst [vmem:[#allocation31_spill] sm:$0xff] %v7358_v57  ;;  %v7372_v6 = vpack.c.bf16 %v119_v0, %v116_v63  ;;  %v126_v22 = vld [vmem:[%s8656_s3 + $0x170] sm:$0xff]  ;;  %v7385_v24 = vpack.c.bf16 %v121_v14, %v118_v1  ;;  %v125_v36 = vld [vmem:[%s8656_s3 + $0x168] sm:$0xff] }
  0x2a   :  { %4519 = vmatmul.mubr.f32.vlgmr.msra.gmra.mrb[0].mxu1 %v7166_v11  ;;  %5391 = vmatprep.subr.bf16.mxu0 %v7250_v47  ;;  %8808 = vst [vmem:[#allocation32_spill] sm:$0xff] %v7360_v58  ;;  %v7387_v25 = vpack.c.bf16 %v126_v22, %v123_v18  ;;  %v122_v30 = vld [vmem:[%s8656_s3 + $0x150] sm:$0xff]  ;;  %v124_v37 = vld [vmem:[%s8656_s3 + $0x160] sm:$0xff]  ;;  %v127_v40 = vld [vmem:[%s8656_s3 + $0x178] sm:$0xff] }
  0x2b   :  { %4553 = vmatprep.mubr.msk.f32.mxu1 %vm6897_vm0, %v8663_v8  ;;  %5416 = vmatpush3.bf16.msra.mxu1 %v7212_v28  ;;  %8809 = vst [vmem:[#allocation33_spill] sm:$0xff] %v7372_v6  ;;  %8810 = vst [vmem:[#allocation34_spill] sm:$0xff] %v7385_v24  ;;  %v129_v45 = vld [vmem:[%s8657_s4 + $0x8] sm:$0xff]  ;;  %v132_v46 = vld [vmem:[%s8657_s4 + $0x20] sm:$0xff]  ;;  %v7409_v49 = vpack.c.bf16 %v125_v36, %v122_v30  ;;  %v7413_v51 = vpack.c.bf16 %v127_v40, %v124_v37 }
  0x2c   :  { %5417 = vmatprep.subr.bf16.mxu1 %v8665_v7  ;;  %8811 = vst [vmem:[#allocation35_spill] sm:$0xff] %v7387_v25  ;;  %v7415_v55 = vpack.c.bf16 %v132_v46, %v129_v45  ;;  %v182_v63 = vld [vmem:[%s8653_s0] sm:$0xff]  ;;  %v183_v14 = vld [vmem:[%s8653_s0 + $0x8] sm:$0xff] }
  0x2d   :  { %5393 = vmatpush1.bf16.msra.mxu0 %v7262_v54  ;;  %8812 = vst [vmem:[#allocation36_spill] sm:$0xff] %v7409_v49  ;;  %8813 = vst [vmem:[#allocation37_spill] sm:$0xff] %v7413_v51 }
  0x2e   :  { %5395 = vmatprep.subr.bf16.mxu0 %v7278_v60  ;;  %8814 = vst [vmem:[#allocation38_spill] sm:$0xff] %v7415_v55 }
  0x2f   :  { %5419 = vmatpush3.bf16.msra.mxu1 %v7240_v42 }
  0x30   :  { %5420 = vmatprep.subr.bf16.mxu1 %v8665_v7 }
  0x31   :  { %5397 = vmatpush1.bf16.msra.mxu0 %v7290_v5 }
  0x32   :  { %5399 = vmatprep.subr.bf16.mxu0 %v7306_v19 }
  0x33   :  { %5422 = vmatpush3.bf16.msra.mxu1 %v7268_v56 }
  0x34   :  { %5423 = vmatprep.subr.bf16.mxu1 %v8665_v7 }
  0x35   :  { %5401 = vmatpush1.bf16.msra.mxu0 %v7318_v27 }
  0x36   :  { %5403 = vmatprep.subr.bf16.mxu0 %v7334_v38 }
  0x37   :  { %5425 = vmatpush3.bf16.msra.mxu1 %v7296_v13 }
  0x38   :  { %5426 = vmatprep.subr.bf16.mxu1 %v8665_v7 }
  0x39   :  { %5405 = vmatpush1.bf16.msra.mxu0 %v7346_v48 }
  0x3a   :  { %5407 = vmatprep.subr.bf16.mxu0 %v7360_v58 }
  0x3b   :  { %5428 = vmatpush3.bf16.msra.mxu1 %v7324_v31 }
  0x3c   :  { %5429 = vmatprep.subr.bf16.mxu1 %v8665_v7 }
  0x3d   :  { %5409 = vmatpush1.bf16.msra.mxu0 %v7372_v6 }
  0x3e   :  { %5411 = vmatprep.subr.bf16.mxu0 %v7387_v25 }
  0x3f   :  { %5431 = vmatpush3.bf16.msra.mxu1 %v7358_v57 }
  0x40   :  { %5432 = vmatprep.subr.bf16.mxu1 %v8665_v7 }
  0x41   :  { %5413 = vmatpush1.bf16.msra.mxu0 %v7409_v49  ;;  %v137_v49 = vld [vmem:[%s8657_s4 + $0x48] sm:$0xff] }
  0x42   :  { %5439 = vmatprep.subr.bf16.mxu0 %v7415_v55 }
  0x43   :  { %5434 = vmatpush3.bf16.msra.mxu1 %v7385_v24 }
  0x44   :  { %5435 = vmatprep.subr.bf16.mxu1 %v8665_v7 }
  0x47   :  { %5437 = vmatpush3.bf16.msra.mxu1 %v7413_v51 }
  0x48   :  { %5470 = vmatprep.subr.bf16.mxu1 %v8665_v7 }
  0xf7   :  { %v251_v0 = vpop.f32.mrb[0].mxu0 }
  0xf8   :  { %v326_v1 = vadd.f32 %v251_v0, %v182_v63  ;;  %v253_v18 = vpop.f32.mrb[1].mxu0  ;;  %v7431_v63 = vld [vmem:[%s8659_s6] ss:$0 sm:$0xff] }
  0xf9   :  { %v333_v30 = vadd.f32 %v253_v18, %v183_v14  ;;  %8815 = vst [vmem:[#allocation39_spill] sm:$0xff] %v7431_v63 }
  0xfa   :  { %v4016_v22 = vmul.f32 -1.442695, %v326_v1  ;;  %v184_v1 = vld [vmem:[%s8653_s0 + $0x10] sm:$0xff] }
  0xfb   :  { %v4017_v36 = vmul.f32 -1.442695, %v333_v30  ;;  %v128_v30 = vld [vmem:[%s8657_s4] sm:$0xff] }
  0xfc   :  { %6708 = vpow2.f32 %v4016_v22 }
  0xfd   :  { %v322_v37 = vpop.f32.mrb[0].mxu1  ;;  %6710 = vpow2.f32 %v4017_v36 }
  0xfe   :  { %v4520_v40 = vpop.f32.mrb[1].mxu1  ;;  %v346_v7 = vadd.f32 %v7431_v63, %v322_v37  ;;  %v130_v37 = vld [vmem:[%s8657_s4 + $0x10] sm:$0xff] }
  0xff   :  { %v135_v40 = vld [vmem:[%s8657_s4 + $0x38] sm:$0xff] }
 0x106   :  { %v6709_v45 = vpop.eup %6708 }
 0x107   :  { %v330_v46 = vadd.f32 1.0, %v6709_v45  ;;  %v6711_v8 = vpop.eup %6710  ;;  %v138_v45 = vld [vmem:[%s8657_s4 + $0x50] sm:$0xff] }
 0x108   :  { %v337_v0 = vadd.f32 1.0, %v6711_v8  ;;  %v131_v8 = vld [vmem:[%s8657_s4 + $0x18] sm:$0xff]  ;;  %v7465_v51 = vpack.c.bf16 %v138_v45, %v135_v40 }
 0x109   :  { %6712 = vrcp.f32 %v330_v46  ;;  %v143_v45 = vld [vmem:[%s8657_s4 + $0x78] sm:$0xff] }
 0x10a   :  { %6714 = vrcp.f32 %v337_v0  ;;  %8816 = vst [vmem:[#allocation40_spill] sm:$0xff] %v7465_v51 }
 0x113   :  { %v6713_v55 = vpop.eup %6712 }
 0x114   :  { %v347_v14 = vmul.f32 %v6713_v55, %v346_v7  ;;  %v6715_v22 = vpop.eup %6714  ;;  %v133_v7 = vld [vmem:[%s8657_s4 + $0x28] sm:$0xff] }
 0x115   :  { %v350_v36 = vsub.f32 1.0, %v6715_v22  ;;  %v352_v0 = vmul.f32 %v6715_v22, %v7166_v11  ;;  %v136_v11 = vld [vmem:[%s8657_s4 + $0x40] sm:$0xff]  ;;  %v139_v22 = vld [vmem:[%s8657_s4 + $0x58] sm:$0xff] }
 0x116   :  { %v348_v18 = vadd.f32 %v347_v14, %v184_v1  ;;  %v7456_v1 = vpack.c.bf16 %v131_v8, %v128_v30  ;;  %v7458_v14 = vpack.c.bf16 %v133_v7, %v130_v37  ;;  %v141_v30 = vld [vmem:[%s8657_s4 + $0x68] sm:$0xff]  ;;  %v7488_v37 = vpack.c.bf16 %v139_v22, %v136_v11  ;;  %v140_v7 = vld [vmem:[%s8657_s4 + $0x60] sm:$0xff] }
 0x117   :  { %v8821_v11 = vmov 0.0   ;;  %v7517_v22 = vpack.c.bf16 %v143_v45, %v140_v7  ;;  %v148_v7 = vld [vmem:[%s8657_s4 + $0xa0] sm:$0xff]  ;;  %v151_v45 = vld [vmem:[%s8657_s4 + $0xb8] sm:$0xff] }
 0x118   :  { %6716 = vtanh.f32 %v348_v18  ;;  %v134_v18 = vld [vmem:[%s8657_s4 + $0x30] sm:$0xff]  ;;  %8818 = vst [vmem:[#allocation42_spill] sm:$0xff] %v7488_v37 }
 0x119   :  { %v7486_v8 = vpack.c.bf16 %v137_v49, %v134_v18  ;;  %v142_v49 = vld [vmem:[%s8657_s4 + $0x70] sm:$0xff]  ;;  %8822 = vst [vmem:[#allocation44_spill] sm:$0xff] %v7517_v22 }
 0x11a   :  { %v150_v18 = vld [vmem:[%s8657_s4 + $0xb0] sm:$0xff] }
 0x11b   :  { %8817 = vst [vmem:[#allocation41_spill] sm:$0xff] %v7486_v8 }
 0x122   :  { %v6717_v55 = vpop.eup %6716 }
 0x123   :  { %v351_v46 = vmul.f32 %v6717_v55, %v350_v36  ;;  %v144_v36 = vld [vmem:[%s8657_s4 + $0x80] sm:$0xff]  ;;  %v8819_v55 = vmov 0.0|0.0  }
 0x124   :  { %v7495_v40 = vpack.c.bf16 %v144_v36, %v141_v30  ;;  %v146_v36 = vld [vmem:[%s8657_s4 + $0x90] sm:$0xff] }
 0x125   :  { %v7463_v63 = vadd.f32 %v352_v0, %v351_v46  ;;  %v145_v46 = vld [vmem:[%s8657_s4 + $0x88] sm:$0xff]  ;;  %v147_v0 = vld [vmem:[%s8657_s4 + $0x98] sm:$0xff] }
 0x126   :  { %8820 = vst [vmem:[#allocation43_spill] sm:$0xff] %v7495_v40  ;;  %v7519_v30 = vpack.c.bf16 %v145_v46, %v142_v49  ;;  %v153_v49 = vld [vmem:[%s8657_s4 + $0xc8] sm:$0xff]  ;;  %v156_v46 = vld [vmem:[%s8657_s4 + $0xe0] sm:$0xff] }
 0x127   :  { %435 = vmatmul.mubr.f32.vlgmr.msra.gmra.mrb[2].mxu0 %v7463_v63  ;;  %4554 = vmatmul.mubr.f32.vlgmr.msra.gmra.mrb[2].mxu1 %v7463_v63 }
 0x128   :  { %5441 = vmatpush1.bf16.msra.mxu0 %v7456_v1  ;;  %5472 = vmatpush3.bf16.msra.mxu1 %v7458_v14  ;;  %8823 = vst [vmem:[#allocation45_spill] sm:$0xff] %v7519_v30 }
 0x129   :  { %5443 = vmatprep.subr.bf16.mxu0 %v7465_v51  ;;  %5473 = vmatprep.subr.bf16.mxu1 %v8819_v55  ;;  %v7526_v51 = vpack.c.bf16 %v150_v18, %v147_v0  ;;  %v7547_v18 = vpack.c.bf16 %v151_v45, %v148_v7  ;;  %v159_v7 = vld [vmem:[%s8657_s4 + $0xf8] sm:$0xff]  ;;  %v162_v45 = vld [vmem:[%s8657_s4 + $0x110] sm:$0xff] }
 0x12a   :  { %575 = vmatprep.mubr.f32.mxu0 %v8821_v11  ;;  %4588 = vmatprep.mubr.msk.f32.mxu1 %vm6897_vm0, %v8821_v11 }
 0x12b   :  { %8824 = vst [vmem:[#allocation46_spill] sm:$0xff] %v7526_v51  ;;  %8826 = vst [vmem:[#allocation48_spill] sm:$0xff] %v7547_v18 }
 0x12c   :  { %5445 = vmatpush1.bf16.msra.mxu0 %v7486_v8  ;;  %5475 = vmatpush3.bf16.msra.mxu1 %v7488_v37  ;;  %v149_v8 = vld [vmem:[%s8657_s4 + $0xa8] sm:$0xff]  ;;  %v7554_v37 = vpack.c.bf16 %v156_v46, %v153_v49 }
 0x12d   :  { %5447 = vmatprep.subr.bf16.mxu0 %v7495_v40  ;;  %5476 = vmatprep.subr.bf16.mxu1 %v8819_v55  ;;  %v7545_v0 = vpack.c.bf16 %v149_v8, %v146_v36  ;;  %v152_v40 = vld [vmem:[%s8657_s4 + $0xc0] sm:$0xff]  ;;  %v154_v8 = vld [vmem:[%s8657_s4 + $0xd0] sm:$0xff]  ;;  %v157_v36 = vld [vmem:[%s8657_s4 + $0xe8] sm:$0xff] }
 0x12e   :  { %8827 = vst [vmem:[#allocation49_spill] sm:$0xff] %v7554_v37  ;;  %v7575_v46 = vpack.c.bf16 %v157_v36, %v154_v8  ;;  %v165_v8 = vld [vmem:[%s8657_s4 + $0x128] sm:$0xff]  ;;  %v168_v36 = vld [vmem:[%s8657_s4 + $0x140] sm:$0xff] }
 0x12f   :  { %8825 = vst [vmem:[#allocation47_spill] sm:$0xff] %v7545_v0 }
 0x130   :  { %5449 = vmatpush1.bf16.msra.mxu0 %v7517_v22  ;;  %5478 = vmatpush3.bf16.msra.mxu1 %v7519_v30  ;;  %v155_v22 = vld [vmem:[%s8657_s4 + $0xd8] sm:$0xff]  ;;  %8829 = vst [vmem:[#allocation51_spill] sm:$0xff] %v7575_v46  ;;  %v7582_v30 = vpack.c.bf16 %v162_v45, %v159_v7 }
 0x131   :  { %5451 = vmatprep.subr.bf16.mxu0 %v7526_v51  ;;  %5479 = vmatprep.subr.bf16.mxu1 %v8819_v55  ;;  %v7573_v49 = vpack.c.bf16 %v155_v22, %v152_v40  ;;  %v158_v51 = vld [vmem:[%s8657_s4 + $0xf0] sm:$0xff]  ;;  %v160_v40 = vld [vmem:[%s8657_s4 + $0x100] sm:$0xff]  ;;  %v163_v22 = vld [vmem:[%s8657_s4 + $0x118] sm:$0xff] }
 0x132   :  { %8830 = vst [vmem:[#allocation52_spill] sm:$0xff] %v7582_v30  ;;  %v7603_v45 = vpack.c.bf16 %v163_v22, %v160_v40  ;;  %v171_v40 = vld [vmem:[%s8657_s4 + $0x158] sm:$0xff]  ;;  %v174_v22 = vld [vmem:[%s8657_s4 + $0x170] sm:$0xff] }
 0x133   :  { %8828 = vst [vmem:[#allocation50_spill] sm:$0xff] %v7573_v49 }
 0x134   :  { %5453 = vmatpush1.bf16.msra.mxu0 %v7545_v0  ;;  %5481 = vmatpush3.bf16.msra.mxu1 %v7547_v18  ;;  %v161_v0 = vld [vmem:[%s8657_s4 + $0x108] sm:$0xff]  ;;  %v7610_v18 = vpack.c.bf16 %v168_v36, %v165_v8 }
 0x135   :  { %5455 = vmatprep.subr.bf16.mxu0 %v7554_v37  ;;  %5482 = vmatprep.subr.bf16.mxu1 %v8819_v55  ;;  %v7601_v7 = vpack.c.bf16 %v161_v0, %v158_v51  ;;  %v164_v37 = vld [vmem:[%s8657_s4 + $0x120] sm:$0xff]  ;;  %v166_v51 = vld [vmem:[%s8657_s4 + $0x130] sm:$0xff]  ;;  %v169_v0 = vld [vmem:[%s8657_s4 + $0x148] sm:$0xff] }
 0x136   :  { %v7631_v36 = vpack.c.bf16 %v169_v0, %v166_v51 }
 0x137   :  { %8831 = vst [vmem:[#allocation53_spill] sm:$0xff] %v7601_v7 }
 0x138   :  { %5457 = vmatpush1.bf16.msra.mxu0 %v7573_v49  ;;  %5484 = vmatpush3.bf16.msra.mxu1 %v7575_v46  ;;  %v167_v49 = vld [vmem:[%s8657_s4 + $0x138] sm:$0xff]  ;;  %v7638_v46 = vpack.c.bf16 %v174_v22, %v171_v40  ;;  %v7662_v40 = vld [vmem:[%s8654_s1 + $0x8] sm:$0xff] }
 0x139   :  { %5459 = vmatprep.subr.bf16.mxu0 %v7582_v30  ;;  %5485 = vmatprep.subr.bf16.mxu1 %v8819_v55  ;;  %v7629_v8 = vpack.c.bf16 %v167_v49, %v164_v37  ;;  %v170_v30 = vld [vmem:[%s8657_s4 + $0x150] sm:$0xff]  ;;  %v172_v37 = vld [vmem:[%s8657_s4 + $0x160] sm:$0xff]  ;;  %v175_v49 = vld [vmem:[%s8657_s4 + $0x178] sm:$0xff] }
 0x13a   :  { %v7653_v0 = vpack.c.bf16 %v175_v49, %v172_v37  ;;  %v8834_v22 = vld [vmem:[#allocation38_spill] sm:$0xff] }
 0x13c   :  { %5461 = vmatpush1.bf16.msra.mxu0 %v7601_v7  ;;  %5487 = vmatpush3.bf16.msra.mxu1 %v7603_v45  ;;  %v173_v7 = vld [vmem:[%s8657_s4 + $0x168] sm:$0xff] }
 0x13d   :  { %5463 = vmatprep.subr.bf16.mxu0 %v7610_v18  ;;  %5488 = vmatprep.subr.bf16.mxu1 %v8819_v55  ;;  %v7651_v51 = vpack.c.bf16 %v173_v7, %v170_v30  ;;  %v8832_v30 = vld [vmem:[#allocation36_spill] sm:$0xff]  ;;  %v8833_v7 = vld [vmem:[#allocation37_spill] sm:$0xff] }
 0x140   :  { %5465 = vmatpush1.bf16.msra.mxu0 %v7629_v8  ;;  %5490 = vmatpush3.bf16.msra.mxu1 %v7631_v36 }
 0x141   :  { %5467 = vmatprep.subr.bf16.mxu0 %v7638_v46  ;;  %5491 = vmatprep.subr.bf16.mxu1 %v8819_v55 }
 0x144   :  { %5469 = vmatpush1.bf16.msra.mxu0 %v7651_v51  ;;  %5493 = vmatpush3.bf16.msra.mxu1 %v7653_v0 }
 0x145   :  { %5495 = vmatprep.subr.bf16.mxu0 %v6960_v3  ;;  %5526 = vmatprep.subr.bf16.mxu1 %v8819_v55 }
 0x147   :  { %576 = vmatmul.mubr.f32.vlgmr.msra.gmra.mrb[2].mxu0 %v7662_v40  ;;  %4589 = vmatmul.mubr.f32.vlgmr.msra.gmra.mrb[4].mxu1 %v7662_v40 }
 0x148   :  { %5497 = vmatpush1.bf16.msra.mxu0 %v6973_v9  ;;  %5528 = vmatpush3.bf16.msra.mxu1 %v7034_v29 }
 0x149   :  { %5499 = vmatprep.subr.bf16.mxu0 %v6975_v10  ;;  %5529 = vmatprep.subr.bf16.mxu1 %v8819_v55 }
 0x14a   :  { %749 = vmatprep.mubr.f32.mxu0 %v8821_v11  ;;  %4623 = vmatprep.mubr.msk.f32.mxu1 %vm6897_vm0, %v8821_v11 }
 0x14c   :  { %5501 = vmatpush1.bf16.msra.mxu0 %v6993_v15  ;;  %5531 = vmatpush3.bf16.msra.mxu1 %v7049_v34 }
 0x14d   :  { %5503 = vmatprep.subr.bf16.mxu0 %v6996_v16  ;;  %5532 = vmatprep.subr.bf16.mxu1 %v8819_v55 }
 0x150   :  { %5505 = vmatpush1.bf16.msra.mxu0 %v7011_v21  ;;  %5534 = vmatpush3.bf16.msra.mxu1 %v7077_v43 }
 0x151   :  { %5507 = vmatprep.subr.bf16.mxu0 %v7017_v23  ;;  %5535 = vmatprep.subr.bf16.mxu1 %v8819_v55 }
 0x154   :  { %5509 = vmatpush1.bf16.msra.mxu0 %v7043_v32  ;;  %5537 = vmatpush3.bf16.msra.mxu1 %v7105_v52 }
 0x155   :  { %5511 = vmatprep.subr.bf16.mxu0 %v7052_v35  ;;  %5538 = vmatprep.subr.bf16.mxu1 %v8819_v55 }
 0x158   :  { %5513 = vmatpush1.bf16.msra.mxu0 %v7071_v41  ;;  %5540 = vmatpush3.bf16.msra.mxu1 %v7133_v61 }
 0x159   :  { %5515 = vmatprep.subr.bf16.mxu0 %v7080_v44  ;;  %5541 = vmatprep.subr.bf16.mxu1 %v8819_v55 }
 0x15c   :  { %5517 = vmatpush1.bf16.msra.mxu0 %v7099_v50  ;;  %5543 = vmatpush3.bf16.msra.mxu1 %v7152_v4 }
 0x15d   :  { %5519 = vmatprep.subr.bf16.mxu0 %v7108_v53  ;;  %5544 = vmatprep.subr.bf16.mxu1 %v8819_v55 }
 0x160   :  { %5521 = vmatpush1.bf16.msra.mxu0 %v7127_v59  ;;  %5546 = vmatpush3.bf16.msra.mxu1 %v7169_v12 }
 0x161   :  { %5523 = vmatprep.subr.bf16.mxu0 %v7136_v62  ;;  %5547 = vmatprep.subr.bf16.mxu1 %v8819_v55 }
 0x164   :  { %5525 = vmatpush1.bf16.msra.mxu0 %v7149_v2  ;;  %5549 = vmatpush3.bf16.msra.mxu1 %v7180_v17 }
 0x165   :  { %5551 = vmatprep.subr.bf16.mxu0 %v7195_v20  ;;  %5582 = vmatprep.subr.bf16.mxu1 %v8819_v55 }
 0x167   :  { %750 = vmatmul.mubr.f32.vlgmr.msra.gmra.mrb[4].mxu0 %v7463_v63  ;;  %4624 = vmatmul.mubr.f32.vlgmr.msra.gmra.mrb[6].mxu1 %v7463_v63 }
 0x168   :  { %5553 = vmatpush1.bf16.msra.mxu0 %v7206_v26  ;;  %5584 = vmatpush3.bf16.msra.mxu1 %v7212_v28 }
 0x169   :  { %5555 = vmatprep.subr.bf16.mxu0 %v7222_v33  ;;  %5585 = vmatprep.subr.bf16.mxu1 %v8819_v55 }
 0x16a   :  { %912 = vmatprep.mubr.f32.mxu0 %v8821_v11  ;;  %4658 = vmatprep.mubr.msk.f32.mxu1 %vm6897_vm0, %v8821_v11 }
 0x16c   :  { %5557 = vmatpush1.bf16.msra.mxu0 %v7234_v39  ;;  %5587 = vmatpush3.bf16.msra.mxu1 %v7240_v42 }
 0x16d   :  { %5559 = vmatprep.subr.bf16.mxu0 %v7250_v47  ;;  %5588 = vmatprep.subr.bf16.mxu1 %v8819_v55 }
 0x170   :  { %5561 = vmatpush1.bf16.msra.mxu0 %v7262_v54  ;;  %5590 = vmatpush3.bf16.msra.mxu1 %v7268_v56 }
 0x171   :  { %5563 = vmatprep.subr.bf16.mxu0 %v7278_v60  ;;  %5591 = vmatprep.subr.bf16.mxu1 %v8819_v55 }
 0x174   :  { %5565 = vmatpush1.bf16.msra.mxu0 %v7290_v5  ;;  %5593 = vmatpush3.bf16.msra.mxu1 %v7296_v13 }
 0x175   :  { %5567 = vmatprep.subr.bf16.mxu0 %v7306_v19  ;;  %5594 = vmatprep.subr.bf16.mxu1 %v8819_v55 }
 0x178   :  { %5569 = vmatpush1.bf16.msra.mxu0 %v7318_v27  ;;  %5596 = vmatpush3.bf16.msra.mxu1 %v7324_v31 }
 0x179   :  { %5571 = vmatprep.subr.bf16.mxu0 %v7334_v38  ;;  %5597 = vmatprep.subr.bf16.mxu1 %v8819_v55 }
 0x17c   :  { %5573 = vmatpush1.bf16.msra.mxu0 %v7346_v48  ;;  %5599 = vmatpush3.bf16.msra.mxu1 %v7358_v57 }
 0x17d   :  { %5575 = vmatprep.subr.bf16.mxu0 %v7360_v58  ;;  %5600 = vmatprep.subr.bf16.mxu1 %v8819_v55  ;;  %v355_v58 = vlaneseq }
 0x17f   :  { %v356_v57 = vshrl.u32 %v355_v58, 7 }
 0x180   :  { %5577 = vmatpush1.bf16.msra.mxu0 %v7372_v6  ;;  %5602 = vmatpush3.bf16.msra.mxu1 %v7385_v24  ;;  %v176_v24 = vld [vmem:[%s8658_s5] sm:$0x7] }
 0x181   :  { %5579 = vmatprep.subr.bf16.mxu0 %v7387_v25  ;;  %5603 = vmatprep.subr.bf16.mxu1 %v8819_v55  ;;  %v357_v48 = vsub.s32 0, %v356_v57  ;;  %v361_v25 = vsub.s32 1, %v356_v57  ;;  %v365_v60 = vsub.s32 2, %v356_v57 }
 0x183   :  { %v7743_v6 = vrot.slane %v176_v24, %v357_v48  ;;  %v7754_v56 = vrot.slane %v176_v24, %v365_v60  ;;  %v4023_v60 = vld [vmem:[%s8653_s0 + $0x20] sm:$0xff] }
 0x184   :  { %5581 = vmatpush1.bf16.msra.mxu0 %v8832_v30  ;;  %5605 = vmatpush3.bf16.msra.mxu1 %v8833_v7  ;;  %v7745_v30 = vrot.slane %v176_v24, %v361_v25  ;;  %v7752_v25 = vld [vmem:[%s8660_s7] ss:$0 sm:$0xff] }
 0x185   :  { %5607 = vmatprep.subr.bf16.mxu0 %v8834_v22  ;;  %5638 = vmatprep.subr.bf16.mxu1 %v8819_v55  ;;  %8835 = vst [vmem:[#allocation54_spill] sm:$0xff] %v7743_v6  ;;  %8837 = vst [vmem:[#allocation56_spill] sm:$0xff] %v7752_v25 }
 0x186   :  { %8836 = vst [vmem:[#allocation55_spill] sm:$0xff] %v7745_v30  ;;  %8838 = vst [vmem:[#allocation57_spill] sm:$0xff] %v7754_v56 }
 0x1fa   :  { %v507_v37 = vpop.f32.mrb[2].mxu1 }
 0x1fb   :  { %v4555_v49 = vpop.f32.mrb[3].mxu1 }
 0x21a   :  { %v577_v38 = vpop.f32.mrb[2].mxu0  ;;  %v648_v7 = vpop.f32.mrb[4].mxu1 }
 0x21b   :  { %v6670_v22 = vadd.f32 %v577_v38, %v7743_v6  ;;  %v579_v31 = vpop.f32.mrb[3].mxu0  ;;  %v4590_v27 = vpop.f32.mrb[5].mxu1 }
 0x21c   :  { %v6671_v49 = vadd.f32 %v579_v31, %v7745_v30  ;;  %v672_v27 = vadd.f32 %v7752_v25, %v648_v7 }
 0x21d   :  { %v4019_v19 = vmul.f32 -1.442695, %v6670_v22 }
 0x21e   :  { %v4020_v58 = vmul.f32 -1.442695, %v6671_v49 }
 0x21f   :  { %6718 = vpow2.f32 %v4019_v19  ;;  %v508_v19 = vadd.f32 %v507_v37, %v7754_v56 }
 0x220   :  { %6720 = vpow2.f32 %v4020_v58 }
 0x229   :  { %v6719_v13 = vpop.eup %6718 }
 0x22a   :  { %v656_v5 = vadd.f32 1.0, %v6719_v13  ;;  %v6721_v48 = vpop.eup %6720 }
 0x22b   :  { %v663_v38 = vadd.f32 1.0, %v6721_v48 }
 0x22c   :  { %6722 = vrcp.f32 %v656_v5  ;;  %v4022_v5 = vld [vmem:[%s8653_s0 + $0x18] sm:$0xff] }
 0x22d   :  { %6724 = vrcp.f32 %v663_v38 }
 0x236   :  { %v6723_v22 = vpop.eup %6722 }
 0x237   :  { %v673_v31 = vmul.f32 %v6723_v22, %v672_v27  ;;  %v6725_v37 = vpop.eup %6724 }
 0x238   :  { %v676_v27 = vsub.f32 1.0, %v6725_v37 }
 0x239   :  { %v674_v13 = vadd.f32 %v673_v31, %v508_v19  ;;  %v678_v19 = vmul.f32 %v6725_v37, %v7662_v40 }
 0x23a   :  { %v751_v57 = vpop.f32.mrb[4].mxu0  ;;  %v822_v49 = vpop.f32.mrb[6].mxu1 }
 0x23b   :  { %6726 = vtanh.f32 %v674_v13  ;;  %v826_v58 = vadd.f32 %v4022_v5, %v751_v57  ;;  %v753_v24 = vpop.f32.mrb[5].mxu0  ;;  %v4625_v7 = vpop.f32.mrb[7].mxu1 }
 0x23c   :  { %v833_v25 = vadd.f32 %v4023_v60, %v753_v24  ;;  %v8839_v60 = vld [vmem:[#allocation39_spill] sm:$0xff]  ;;  %v4024_v7 = vld [vmem:[%s8653_s0 + $0x28] sm:$0xff] }
 0x23d   :  { %v4025_v48 = vmul.f32 -1.442695, %v826_v58 }
 0x23e   :  { %v4026_v38 = vmul.f32 -1.442695, %v833_v25  ;;  %v840_v25 = vadd.f32 %v8839_v60, %v822_v49  ;;  %v8840_v49 = vld [vmem:[#allocation40_spill] sm:$0xff] }
 0x23f   :  { %6728 = vpow2.f32 %v4025_v48 }
 0x240   :  { %6730 = vpow2.f32 %v4026_v38 }
 0x245   :  { %v6727_v22 = vpop.eup %6726 }
 0x246   :  { %v677_v56 = vmul.f32 %v6727_v22, %v676_v27 }
 0x248   :  { %v7765_v31 = vadd.f32 %v678_v19, %v677_v56 }
 0x249   :  { %v6729_v5 = vpop.eup %6728 }
 0x24a   :  { %v830_v13 = vadd.f32 1.0, %v6729_v5  ;;  %680 = vst [vmem:[%s8661_s8] sm:$0xff] %v7765_v31  ;;  %v6731_v57 = vpop.eup %6730  ;;  %v8842_v5 = vld [vmem:[#allocation42_spill] sm:$0xff] }
 0x24b   :  { %v837_v58 = vadd.f32 1.0, %v6731_v57  ;;  %v8844_v57 = vld [vmem:[#allocation44_spill] sm:$0xff] }
 0x24c   :  { %6732 = vrcp.f32 %v830_v13  ;;  %v8843_v13 = vld [vmem:[#allocation43_spill] sm:$0xff] }
 0x24d   :  { %6734 = vrcp.f32 %v837_v58  ;;  %v8845_v58 = vld [vmem:[#allocation45_spill] sm:$0xff] }
 0x256   :  { %v6733_v24 = vpop.eup %6732 }
 0x257   :  { %v841_v40 = vmul.f32 %v6733_v24, %v840_v25  ;;  %v6735_v48 = vpop.eup %6734  ;;  %v8846_v25 = vld [vmem:[#allocation46_spill] sm:$0xff]  ;;  %v8847_v24 = vld [vmem:[#allocation47_spill] sm:$0xff] }
 0x258   :  { %v844_v37 = vsub.f32 1.0, %v6735_v48  ;;  %v846_v22 = vmul.f32 %v6735_v48, %v7463_v63  ;;  %v8841_v63 = vld [vmem:[#allocation41_spill] sm:$0xff]  ;;  %v8851_v48 = vld [vmem:[#allocation51_spill] sm:$0xff] }
 0x259   :  { %v842_v56 = vadd.f32 %v4024_v7, %v841_v40  ;;  %v8848_v7 = vld [vmem:[#allocation48_spill] sm:$0xff]  ;;  %v8849_v40 = vld [vmem:[#allocation49_spill] sm:$0xff] }
 0x25b   :  { %6736 = vtanh.f32 %v842_v56  ;;  %v8850_v56 = vld [vmem:[#allocation50_spill] sm:$0xff] }
 0x265   :  { %v6737_v38 = vpop.eup %6736 }
 0x266   :  { %v845_v27 = vmul.f32 %v6737_v38, %v844_v37  ;;  %v8852_v37 = vld [vmem:[#allocation52_spill] sm:$0xff]  ;;  %v8853_v38 = vld [vmem:[#allocation53_spill] sm:$0xff] }
 0x268   :  { %v7776_v19 = vadd.f32 %v846_v22, %v845_v27  ;;  %v8854_v27 = vld [vmem:[#allocation22_spill] sm:$0xff]  ;;  %v8855_v22 = vld [vmem:[#allocation23_spill] sm:$0xff] }
 0x26a   :  { %913 = vmatmul.mubr.f32.vlgmr.msra.gmra.mrb[6].mxu0 %v7776_v19  ;;  %4659 = vmatmul.mubr.f32.vlgmr.msra.gmra.mrb[8].mxu1 %v7776_v19 }
 0x26b   :  { %5609 = vmatpush1.bf16.msra.mxu0 %v7456_v1  ;;  %5640 = vmatpush3.bf16.msra.mxu1 %v7458_v14 }
 0x26c   :  { %5611 = vmatprep.subr.bf16.mxu0 %v8840_v49  ;;  %5641 = vmatprep.subr.bf16.mxu1 %v8819_v55 }
 0x26d   :  { %1053 = vmatprep.mubr.f32.mxu0 %v8821_v11  ;;  %4693 = vmatprep.mubr.msk.f32.mxu1 %vm6897_vm0, %v8821_v11 }
 0x26f   :  { %5613 = vmatpush1.bf16.msra.mxu0 %v8841_v63  ;;  %5643 = vmatpush3.bf16.msra.mxu1 %v8842_v5 }
 0x270   :  { %5615 = vmatprep.subr.bf16.mxu0 %v8843_v13  ;;  %5644 = vmatprep.subr.bf16.mxu1 %v8819_v55 }
 0x273   :  { %5617 = vmatpush1.bf16.msra.mxu0 %v8844_v57  ;;  %5646 = vmatpush3.bf16.msra.mxu1 %v8845_v58 }
 0x274   :  { %5619 = vmatprep.subr.bf16.mxu0 %v8846_v25  ;;  %5647 = vmatprep.subr.bf16.mxu1 %v8819_v55 }
 0x277   :  { %5621 = vmatpush1.bf16.msra.mxu0 %v8847_v24  ;;  %5649 = vmatpush3.bf16.msra.mxu1 %v8848_v7 }
 0x278   :  { %5623 = vmatprep.subr.bf16.mxu0 %v8849_v40  ;;  %5650 = vmatprep.subr.bf16.mxu1 %v8819_v55 }
 0x27b   :  { %5625 = vmatpush1.bf16.msra.mxu0 %v8850_v56  ;;  %5652 = vmatpush3.bf16.msra.mxu1 %v8851_v48 }
 0x27c   :  { %5627 = vmatprep.subr.bf16.mxu0 %v8852_v37  ;;  %5653 = vmatprep.subr.bf16.mxu1 %v8819_v55 }
 0x27f   :  { %5629 = vmatpush1.bf16.msra.mxu0 %v8853_v38  ;;  %5655 = vmatpush3.bf16.msra.mxu1 %v7603_v45 }
 0x280   :  { %5631 = vmatprep.subr.bf16.mxu0 %v7610_v18  ;;  %5656 = vmatprep.subr.bf16.mxu1 %v8819_v55 }
 0x283   :  { %5633 = vmatpush1.bf16.msra.mxu0 %v7629_v8  ;;  %5658 = vmatpush3.bf16.msra.mxu1 %v7631_v36 }
 0x284   :  { %5635 = vmatprep.subr.bf16.mxu0 %v7638_v46  ;;  %5659 = vmatprep.subr.bf16.mxu1 %v8819_v55 }
 0x287   :  { %5637 = vmatpush1.bf16.msra.mxu0 %v7651_v51  ;;  %5661 = vmatpush3.bf16.msra.mxu1 %v7653_v0 }
 0x288   :  { %5663 = vmatprep.subr.bf16.mxu0 %v6960_v3  ;;  %5694 = vmatprep.subr.bf16.mxu1 %v8819_v55 }
 0x28a   :  { %1054 = vmatmul.mubr.f32.vlgmr.msra.gmra.mrb[6].mxu0 %v7765_v31  ;;  %4694 = vmatmul.mubr.f32.vlgmr.msra.gmra.mrb[10].mxu1 %v7765_v31 }
 0x28b   :  { %5665 = vmatpush1.bf16.msra.mxu0 %v6973_v9  ;;  %5696 = vmatpush3.bf16.msra.mxu1 %v7034_v29 }
 0x28c   :  { %5667 = vmatprep.subr.bf16.mxu0 %v6975_v10  ;;  %5697 = vmatprep.subr.bf16.mxu1 %v8819_v55 }
 0x28d   :  { %1222 = vmatprep.mubr.f32.mxu0 %v8821_v11  ;;  %4728 = vmatprep.mubr.msk.f32.mxu1 %vm6897_vm0, %v8821_v11 }
 0x28f   :  { %5669 = vmatpush1.bf16.msra.mxu0 %v6993_v15  ;;  %5699 = vmatpush3.bf16.msra.mxu1 %v7049_v34 }
 0x290   :  { %5671 = vmatprep.subr.bf16.mxu0 %v6996_v16  ;;  %5700 = vmatprep.subr.bf16.mxu1 %v8819_v55 }
 0x293   :  { %5673 = vmatpush1.bf16.msra.mxu0 %v7011_v21  ;;  %5702 = vmatpush3.bf16.msra.mxu1 %v7077_v43 }
 0x294   :  { %5675 = vmatprep.subr.bf16.mxu0 %v7017_v23  ;;  %5703 = vmatprep.subr.bf16.mxu1 %v8819_v55 }
 0x297   :  { %5677 = vmatpush1.bf16.msra.mxu0 %v7043_v32  ;;  %5705 = vmatpush3.bf16.msra.mxu1 %v7105_v52 }
 0x298   :  { %5679 = vmatprep.subr.bf16.mxu0 %v7052_v35  ;;  %5706 = vmatprep.subr.bf16.mxu1 %v8819_v55 }
 0x29b   :  { %5681 = vmatpush1.bf16.msra.mxu0 %v7071_v41  ;;  %5708 = vmatpush3.bf16.msra.mxu1 %v7133_v61 }
 0x29c   :  { %5683 = vmatprep.subr.bf16.mxu0 %v7080_v44  ;;  %5709 = vmatprep.subr.bf16.mxu1 %v8819_v55 }
 0x29f   :  { %5685 = vmatpush1.bf16.msra.mxu0 %v7099_v50  ;;  %5711 = vmatpush3.bf16.msra.mxu1 %v7152_v4  ;;  %v8872_v4 = vld [vmem:[#allocation57_spill] sm:$0xff] }
 0x2a0   :  { %5687 = vmatprep.subr.bf16.mxu0 %v7108_v53  ;;  %5712 = vmatprep.subr.bf16.mxu1 %v8819_v55 }
 0x2a3   :  { %5689 = vmatpush1.bf16.msra.mxu0 %v7127_v59  ;;  %5714 = vmatpush3.bf16.msra.mxu1 %v7169_v12  ;;  %v8871_v59 = vld [vmem:[#allocation56_spill] sm:$0xff] }
 0x2a4   :  { %5691 = vmatprep.subr.bf16.mxu0 %v7136_v62  ;;  %5715 = vmatprep.subr.bf16.mxu1 %v8819_v55 }
 0x2a7   :  { %5693 = vmatpush1.bf16.msra.mxu0 %v7149_v2  ;;  %5717 = vmatpush3.bf16.msra.mxu1 %v7180_v17 }
 0x2a8   :  { %5719 = vmatprep.subr.bf16.mxu0 %v7195_v20  ;;  %5750 = vmatprep.subr.bf16.mxu1 %v8819_v55 }
 0x2aa   :  { %1223 = vmatmul.mubr.f32.vlgmr.msra.gmra.mrb[8].mxu0 %v7776_v19  ;;  %4729 = vmatmul.mubr.f32.vlgmr.msra.gmra.mrb[12].mxu1 %v7776_v19 }
 0x2ab   :  { %5721 = vmatpush1.bf16.msra.mxu0 %v7206_v26  ;;  %5752 = vmatpush3.bf16.msra.mxu1 %v7212_v28  ;;  %v8857_v28 = vld [vmem:[#allocation25_spill] sm:$0xff]  ;;  %v8858_v26 = vld [vmem:[#allocation26_spill] sm:$0xff] }
 0x2ac   :  { %5723 = vmatprep.subr.bf16.mxu0 %v7222_v33  ;;  %5753 = vmatprep.subr.bf16.mxu1 %v8819_v55  ;;  %v8856_v33 = vld [vmem:[#allocation24_spill] sm:$0xff] }
 0x2ad   :  { %1385 = vmatprep.mubr.f32.mxu0 %v8821_v11  ;;  %4763 = vmatprep.mubr.msk.f32.mxu1 %vm6897_vm0, %v8821_v11 }
 0x2af   :  { %5725 = vmatpush1.bf16.msra.mxu0 %v7234_v39  ;;  %5755 = vmatpush3.bf16.msra.mxu1 %v7240_v42  ;;  %v8859_v42 = vld [vmem:[#allocation27_spill] sm:$0xff]  ;;  %v8861_v39 = vld [vmem:[#allocation29_spill] sm:$0xff] }
 0x2b0   :  { %5727 = vmatprep.subr.bf16.mxu0 %v7250_v47  ;;  %5756 = vmatprep.subr.bf16.mxu1 %v8819_v55  ;;  %v8860_v47 = vld [vmem:[#allocation28_spill] sm:$0xff] }
 0x2b3   :  { %5729 = vmatpush1.bf16.msra.mxu0 %v7262_v54  ;;  %5758 = vmatpush3.bf16.msra.mxu1 %v8854_v27  ;;  %v8862_v27 = vld [vmem:[#allocation30_spill] sm:$0xff]  ;;  %v8864_v54 = vld [vmem:[#allocation32_spill] sm:$0xff] }
 0x2b4   :  { %5731 = vmatprep.subr.bf16.mxu0 %v8855_v22  ;;  %5759 = vmatprep.subr.bf16.mxu1 %v8819_v55  ;;  %v8863_v22 = vld [vmem:[#allocation31_spill] sm:$0xff] }
 0x2b7   :  { %5733 = vmatpush1.bf16.msra.mxu0 %v8856_v33  ;;  %5761 = vmatpush3.bf16.msra.mxu1 %v8857_v28  ;;  %v8865_v28 = vld [vmem:[#allocation33_spill] sm:$0xff]  ;;  %v8867_v33 = vld [vmem:[#allocation35_spill] sm:$0xff] }
 0x2b8   :  { %5735 = vmatprep.subr.bf16.mxu0 %v8858_v26  ;;  %5762 = vmatprep.subr.bf16.mxu1 %v8819_v55  ;;  %v8866_v26 = vld [vmem:[#allocation34_spill] sm:$0xff] }
 0x2bb   :  { %5737 = vmatpush1.bf16.msra.mxu0 %v8859_v42  ;;  %5764 = vmatpush3.bf16.msra.mxu1 %v8860_v47  ;;  %v8868_v47 = vld [vmem:[#allocation36_spill] sm:$0xff]  ;;  %v8870_v42 = vld [vmem:[#allocation38_spill] sm:$0xff] }
 0x2bc   :  { %5739 = vmatprep.subr.bf16.mxu0 %v8861_v39  ;;  %5765 = vmatprep.subr.bf16.mxu1 %v8819_v55  ;;  %v8869_v39 = vld [vmem:[#allocation37_spill] sm:$0xff] }
 0x2bf   :  { %5741 = vmatpush1.bf16.msra.mxu0 %v8862_v27  ;;  %5767 = vmatpush3.bf16.msra.mxu1 %v8863_v22 }
 0x2c0   :  { %5743 = vmatprep.subr.bf16.mxu0 %v8864_v54  ;;  %5768 = vmatprep.subr.bf16.mxu1 %v8819_v55 }
 0x2c3   :  { %5745 = vmatpush1.bf16.msra.mxu0 %v8865_v28  ;;  %5770 = vmatpush3.bf16.msra.mxu1 %v8866_v26 }
 0x2c4   :  { %5747 = vmatprep.subr.bf16.mxu0 %v8867_v33  ;;  %5771 = vmatprep.subr.bf16.mxu1 %v8819_v55 }
 0x2c7   :  { %5749 = vmatpush1.bf16.msra.mxu0 %v8868_v47  ;;  %5773 = vmatpush3.bf16.msra.mxu1 %v8869_v39 }
 0x2c8   :  { %5775 = vmatprep.subr.bf16.mxu0 %v8870_v42  ;;  %5806 = vmatprep.subr.bf16.mxu1 %v8819_v55 }
 0x33d   :  { %v985_v22 = vpop.f32.mrb[8].mxu1 }
 0x33e   :  { %v4660_v54 = vpop.f32.mrb[9].mxu1  ;;  %v986_v50 = vadd.f32 %v985_v22, %v8872_v4 }
 0x35d   :  { %v1055_v27 = vpop.f32.mrb[6].mxu0  ;;  %v1126_v20 = vpop.f32.mrb[10].mxu1 }
 0x35e   :  { %v6672_v28 = vadd.f32 %v1055_v27, %v7743_v6  ;;  %v1057_v17 = vpop.f32.mrb[7].mxu0  ;;  %v4695_v26 = vpop.f32.mrb[11].mxu1  ;;  %v1144_v53 = vadd.f32 %v8871_v59, %v1126_v20 }
 0x35f   :  { %v6673_v33 = vadd.f32 %v1057_v17, %v7745_v30  ;;  %v4030_v26 = vld [vmem:[%s8653_s0 + $0x30] sm:$0xff] }
 0x360   :  { %v4027_v2 = vmul.f32 -1.442695, %v6672_v28 }
 0x361   :  { %v4028_v62 = vmul.f32 -1.442695, %v6673_v33  ;;  %v4031_v33 = vld [vmem:[%s8653_s0 + $0x38] sm:$0xff] }
 0x362   :  { %6738 = vpow2.f32 %v4027_v2 }
 0x363   :  { %6740 = vpow2.f32 %v4028_v62 }
 0x36c   :  { %v6739_v47 = vpop.eup %6738 }
 0x36d   :  { %v1134_v39 = vadd.f32 1.0, %v6739_v47  ;;  %v6741_v42 = vpop.eup %6740 }
 0x36e   :  { %v1141_v12 = vadd.f32 1.0, %v6741_v42 }
 0x36f   :  { %6742 = vrcp.f32 %v1134_v39 }
 0x370   :  { %6744 = vrcp.f32 %v1141_v12 }
 0x379   :  { %v6743_v54 = vpop.eup %6742 }
 0x37a   :  { %v1145_v44 = vmul.f32 %v6743_v54, %v1144_v53  ;;  %v6745_v53 = vpop.eup %6744 }
 0x37b   :  { %v1148_v27 = vsub.f32 1.0, %v6745_v53 }
 0x37c   :  { %v1146_v17 = vadd.f32 %v1145_v44, %v986_v50  ;;  %v1150_v44 = vmul.f32 %v6745_v53, %v7765_v31 }
 0x37d   :  { %v1224_v2 = vpop.f32.mrb[8].mxu0  ;;  %v1295_v28 = vpop.f32.mrb[12].mxu1 }
 0x37e   :  { %6746 = vtanh.f32 %v1146_v17  ;;  %v1299_v62 = vadd.f32 %v4030_v26, %v1224_v2  ;;  %v1226_v39 = vpop.f32.mrb[9].mxu0  ;;  %v4730_v20 = vpop.f32.mrb[13].mxu1 }
 0x37f   :  { %v1306_v47 = vadd.f32 %v4031_v33, %v1226_v39  ;;  %v1313_v33 = vadd.f32 %v8839_v60, %v1295_v28  ;;  %v4032_v20 = vld [vmem:[%s8653_s0 + $0x40] sm:$0xff]  ;;  %v8873_v60 = vld [vmem:[#allocation5_spill] sm:$0xff] }
 0x380   :  { %v4033_v42 = vmul.f32 -1.442695, %v1299_v62  ;;  %v8875_v28 = vld [vmem:[#allocation11_spill] sm:$0xff] }
 0x381   :  { %v4034_v12 = vmul.f32 -1.442695, %v1306_v47 }
 0x382   :  { %6748 = vpow2.f32 %v4033_v42 }
 0x383   :  { %6750 = vpow2.f32 %v4034_v12 }
 0x388   :  { %v6747_v22 = vpop.eup %6746 }
 0x389   :  { %v1149_v54 = vmul.f32 %v6747_v22, %v1148_v27 }
 0x38b   :  { %v7900_v50 = vadd.f32 %v1150_v44, %v1149_v54  ;;  %v8876_v44 = vld [vmem:[#allocation7_spill] sm:$0xff] }
 0x38c   :  { %v6749_v26 = vpop.eup %6748 }
 0x38d   :  { %v1303_v17 = vadd.f32 1.0, %v6749_v26  ;;  %4029 = vst [vmem:[%s8661_s8 + $0x8] sm:$0xff] %v7900_v50  ;;  %v6751_v2 = vpop.eup %6750  ;;  %v8877_v26 = vld [vmem:[#allocation8_spill] sm:$0xff] }
 0x38e   :  { %v1310_v62 = vadd.f32 1.0, %v6751_v2  ;;  %v8879_v2 = vld [vmem:[#allocation9_spill] sm:$0xff] }
 0x38f   :  { %6752 = vrcp.f32 %v1303_v17  ;;  %v8878_v17 = vld [vmem:[#allocation12_spill] sm:$0xff] }
 0x390   :  { %6754 = vrcp.f32 %v1310_v62  ;;  %v8880_v62 = vld [vmem:[#allocation10_spill] sm:$0xff] }
 0x399   :  { %v6753_v39 = vpop.eup %6752 }
 0x39a   :  { %v1314_v31 = vmul.f32 %v6753_v39, %v1313_v33  ;;  %v6755_v47 = vpop.eup %6754  ;;  %v8881_v33 = vld [vmem:[#allocation13_spill] sm:$0xff]  ;;  %v8882_v39 = vld [vmem:[#allocation14_spill] sm:$0xff] }
 0x39b   :  { %v1317_v53 = vsub.f32 1.0, %v6755_v47  ;;  %v1319_v22 = vmul.f32 %v6755_v47, %v7776_v19  ;;  %v8874_v19 = vld [vmem:[#allocation6_spill] sm:$0xff] }
 0x39c   :  { %v1315_v42 = vadd.f32 %v4032_v20, %v1314_v31  ;;  %v8883_v20 = vld [vmem:[#allocation15_spill] sm:$0xff]  ;;  %v8884_v31 = vld [vmem:[#allocation16_spill] sm:$0xff]  ;;  %v8886_v47 = vld [vmem:[#allocation18_spill] sm:$0xff] }
 0x39e   :  { %6756 = vtanh.f32 %v1315_v42  ;;  %v8885_v42 = vld [vmem:[#allocation17_spill] sm:$0xff] }
 0x3a8   :  { %v6757_v12 = vpop.eup %6756 }
 0x3a9   :  { %v1318_v27 = vmul.f32 %v6757_v12, %v1317_v53  ;;  %v8887_v53 = vld [vmem:[#allocation19_spill] sm:$0xff]  ;;  %v8888_v12 = vld [vmem:[#allocation20_spill] sm:$0xff] }
 0x3ab   :  { %v7911_v54 = vadd.f32 %v1319_v22, %v1318_v27  ;;  %v8889_v27 = vld [vmem:[#allocation21_spill] sm:$0xff]  ;;  %v8890_v22 = vld [vmem:[#allocation22_spill] sm:$0xff] }
 0x3ad   :  { %1386 = vmatmul.mubr.f32.vlgmr.msra.gmra.mrb[10].mxu0 %v7911_v54  ;;  %4764 = vmatmul.mubr.f32.vlgmr.msra.gmra.mrb[14].mxu1 %v7911_v54 }
 0x3ae   :  { %5777 = vmatpush1.bf16.msra.mxu0 %v7456_v1  ;;  %5808 = vmatpush3.bf16.msra.mxu1 %v7458_v14 }
 0x3af   :  { %5779 = vmatprep.subr.bf16.mxu0 %v8840_v49  ;;  %5809 = vmatprep.subr.bf16.mxu1 %v8819_v55 }
 0x3b0   :  { %1526 = vmatprep.mubr.f32.mxu0 %v8821_v11  ;;  %4798 = vmatprep.mubr.msk.f32.mxu1 %vm6897_vm0, %v8821_v11 }
 0x3b2   :  { %5781 = vmatpush1.bf16.msra.mxu0 %v8841_v63  ;;  %5811 = vmatpush3.bf16.msra.mxu1 %v8842_v5 }
 0x3b3   :  { %5783 = vmatprep.subr.bf16.mxu0 %v8843_v13  ;;  %5812 = vmatprep.subr.bf16.mxu1 %v8819_v55 }
 0x3b6   :  { %5785 = vmatpush1.bf16.msra.mxu0 %v8844_v57  ;;  %5814 = vmatpush3.bf16.msra.mxu1 %v8845_v58 }
 0x3b7   :  { %5787 = vmatprep.subr.bf16.mxu0 %v8846_v25  ;;  %5815 = vmatprep.subr.bf16.mxu1 %v8819_v55 }
 0x3ba   :  { %5789 = vmatpush1.bf16.msra.mxu0 %v8847_v24  ;;  %5817 = vmatpush3.bf16.msra.mxu1 %v8848_v7 }
 0x3bb   :  { %5791 = vmatprep.subr.bf16.mxu0 %v8849_v40  ;;  %5818 = vmatprep.subr.bf16.mxu1 %v8819_v55 }
 0x3be   :  { %5793 = vmatpush1.bf16.msra.mxu0 %v8850_v56  ;;  %5820 = vmatpush3.bf16.msra.mxu1 %v8851_v48 }
 0x3bf   :  { %5795 = vmatprep.subr.bf16.mxu0 %v8852_v37  ;;  %5821 = vmatprep.subr.bf16.mxu1 %v8819_v55 }
 0x3c2   :  { %5797 = vmatpush1.bf16.msra.mxu0 %v8853_v38  ;;  %5823 = vmatpush3.bf16.msra.mxu1 %v7603_v45 }
 0x3c3   :  { %5799 = vmatprep.subr.bf16.mxu0 %v7610_v18  ;;  %5824 = vmatprep.subr.bf16.mxu1 %v8819_v55 }
 0x3c6   :  { %5801 = vmatpush1.bf16.msra.mxu0 %v7629_v8  ;;  %5826 = vmatpush3.bf16.msra.mxu1 %v7631_v36 }
 0x3c7   :  { %5803 = vmatprep.subr.bf16.mxu0 %v7638_v46  ;;  %5827 = vmatprep.subr.bf16.mxu1 %v8819_v55 }
 0x3ca   :  { %5805 = vmatpush1.bf16.msra.mxu0 %v7651_v51  ;;  %5829 = vmatpush3.bf16.msra.mxu1 %v7653_v0 }
 0x3cb   :  { %5831 = vmatprep.subr.bf16.mxu0 %v6960_v3  ;;  %5862 = vmatprep.subr.bf16.mxu1 %v8819_v55 }
 0x3cd   :  { %1527 = vmatmul.mubr.f32.vlgmr.msra.gmra.mrb[10].mxu0 %v7900_v50  ;;  %4799 = vmatmul.mubr.f32.vlgmr.msra.gmra.mrb[16].mxu1 %v7900_v50 }
 0x3ce   :  { %5833 = vmatpush1.bf16.msra.mxu0 %v6973_v9  ;;  %5864 = vmatpush3.bf16.msra.mxu1 %v7034_v29 }
 0x3cf   :  { %5835 = vmatprep.subr.bf16.mxu0 %v6975_v10  ;;  %5865 = vmatprep.subr.bf16.mxu1 %v8819_v55 }
 0x3d0   :  { %1695 = vmatprep.mubr.f32.mxu0 %v8821_v11  ;;  %4833 = vmatprep.mubr.msk.f32.mxu1 %vm6897_vm0, %v8821_v11 }
 0x3d2   :  { %5837 = vmatpush1.bf16.msra.mxu0 %v6993_v15  ;;  %5867 = vmatpush3.bf16.msra.mxu1 %v7049_v34 }
 0x3d3   :  { %5839 = vmatprep.subr.bf16.mxu0 %v6996_v16  ;;  %5868 = vmatprep.subr.bf16.mxu1 %v8819_v55 }
 0x3d6   :  { %5841 = vmatpush1.bf16.msra.mxu0 %v7011_v21  ;;  %5870 = vmatpush3.bf16.msra.mxu1 %v7077_v43 }
 0x3d7   :  { %5843 = vmatprep.subr.bf16.mxu0 %v7017_v23  ;;  %5871 = vmatprep.subr.bf16.mxu1 %v8819_v55 }
 0x3da   :  { %5845 = vmatpush1.bf16.msra.mxu0 %v7043_v32  ;;  %5873 = vmatpush3.bf16.msra.mxu1 %v7105_v52 }
 0x3db   :  { %5847 = vmatprep.subr.bf16.mxu0 %v7052_v35  ;;  %5874 = vmatprep.subr.bf16.mxu1 %v8819_v55 }
 0x3de   :  { %5849 = vmatpush1.bf16.msra.mxu0 %v7071_v41  ;;  %5876 = vmatpush3.bf16.msra.mxu1 %v7133_v61 }
 0x3df   :  { %5851 = vmatprep.subr.bf16.mxu0 %v8873_v60  ;;  %5877 = vmatprep.subr.bf16.mxu1 %v8819_v55 }
 0x3e2   :  { %5853 = vmatpush1.bf16.msra.mxu0 %v8874_v19  ;;  %5879 = vmatpush3.bf16.msra.mxu1 %v8875_v28 }
 0x3e3   :  { %5855 = vmatprep.subr.bf16.mxu0 %v8876_v44  ;;  %5880 = vmatprep.subr.bf16.mxu1 %v8819_v55 }
 0x3e6   :  { %5857 = vmatpush1.bf16.msra.mxu0 %v8877_v26  ;;  %5882 = vmatpush3.bf16.msra.mxu1 %v8878_v17 }
 0x3e7   :  { %5859 = vmatprep.subr.bf16.mxu0 %v8879_v2  ;;  %5883 = vmatprep.subr.bf16.mxu1 %v8819_v55 }
 0x3ea   :  { %5861 = vmatpush1.bf16.msra.mxu0 %v8880_v62  ;;  %5885 = vmatpush3.bf16.msra.mxu1 %v8881_v33 }
 0x3eb   :  { %5887 = vmatprep.subr.bf16.mxu0 %v8882_v39  ;;  %5918 = vmatprep.subr.bf16.mxu1 %v8819_v55  ;;  %v8894_v39 = vld [vmem:[#allocation26_spill] sm:$0xff] }
 0x3ed   :  { %1696 = vmatmul.mubr.f32.vlgmr.msra.gmra.mrb[12].mxu0 %v7911_v54  ;;  %4834 = vmatmul.mubr.f32.vlgmr.msra.gmra.mrb[18].mxu1 %v7911_v54 }
 0x3ee   :  { %5889 = vmatpush1.bf16.msra.mxu0 %v8883_v20  ;;  %5920 = vmatpush3.bf16.msra.mxu1 %v8884_v31  ;;  %v8892_v31 = vld [vmem:[#allocation24_spill] sm:$0xff]  ;;  %v8893_v20 = vld [vmem:[#allocation25_spill] sm:$0xff] }
 0x3ef   :  { %5891 = vmatprep.subr.bf16.mxu0 %v8885_v42  ;;  %5921 = vmatprep.subr.bf16.mxu1 %v8819_v55  ;;  %v8891_v42 = vld [vmem:[#allocation23_spill] sm:$0xff] }
 0x3f0   :  { %1858 = vmatprep.mubr.f32.mxu0 %v8821_v11  ;;  %4868 = vmatprep.mubr.msk.f32.mxu1 %vm6897_vm0, %v8821_v11 }
 0x3f2   :  { %5893 = vmatpush1.bf16.msra.mxu0 %v8886_v47  ;;  %5923 = vmatpush3.bf16.msra.mxu1 %v8887_v53  ;;  %v8895_v53 = vld [vmem:[#allocation27_spill] sm:$0xff]  ;;  %v8897_v47 = vld [vmem:[#allocation29_spill] sm:$0xff] }
 0x3f3   :  { %5895 = vmatprep.subr.bf16.mxu0 %v8888_v12  ;;  %5924 = vmatprep.subr.bf16.mxu1 %v8819_v55  ;;  %v8896_v12 = vld [vmem:[#allocation28_spill] sm:$0xff] }
 0x3f6   :  { %5897 = vmatpush1.bf16.msra.mxu0 %v8889_v27  ;;  %5926 = vmatpush3.bf16.msra.mxu1 %v8890_v22  ;;  %v8898_v22 = vld [vmem:[#allocation30_spill] sm:$0xff]  ;;  %v8900_v27 = vld [vmem:[#allocation32_spill] sm:$0xff] }
 0x3f7   :  { %5899 = vmatprep.subr.bf16.mxu0 %v8891_v42  ;;  %5927 = vmatprep.subr.bf16.mxu1 %v8819_v55  ;;  %v8899_v42 = vld [vmem:[#allocation31_spill] sm:$0xff] }
 0x3fa   :  { %5901 = vmatpush1.bf16.msra.mxu0 %v8892_v31  ;;  %5929 = vmatpush3.bf16.msra.mxu1 %v8893_v20  ;;  %v8901_v20 = vld [vmem:[#allocation33_spill] sm:$0xff]  ;;  %v8903_v31 = vld [vmem:[#allocation35_spill] sm:$0xff] }
 0x3fb   :  { %5903 = vmatprep.subr.bf16.mxu0 %v8894_v39  ;;  %5930 = vmatprep.subr.bf16.mxu1 %v8819_v55  ;;  %v8902_v39 = vld [vmem:[#allocation34_spill] sm:$0xff] }
 0x3fe   :  { %5905 = vmatpush1.bf16.msra.mxu0 %v8895_v53  ;;  %5932 = vmatpush3.bf16.msra.mxu1 %v8896_v12  ;;  %v8904_v12 = vld [vmem:[#allocation36_spill] sm:$0xff]  ;;  %v8906_v53 = vld [vmem:[#allocation38_spill] sm:$0xff] }
 0x3ff   :  { %5907 = vmatprep.subr.bf16.mxu0 %v8897_v47  ;;  %5933 = vmatprep.subr.bf16.mxu1 %v8819_v55  ;;  %v8905_v47 = vld [vmem:[#allocation37_spill] sm:$0xff] }
 0x402   :  { %5909 = vmatpush1.bf16.msra.mxu0 %v8898_v22  ;;  %5935 = vmatpush3.bf16.msra.mxu1 %v8899_v42 }
 0x403   :  { %5911 = vmatprep.subr.bf16.mxu0 %v8900_v27  ;;  %5936 = vmatprep.subr.bf16.mxu1 %v8819_v55 }
 0x406   :  { %5913 = vmatpush1.bf16.msra.mxu0 %v8901_v20  ;;  %5938 = vmatpush3.bf16.msra.mxu1 %v8902_v39 }
 0x407   :  { %5915 = vmatprep.subr.bf16.mxu0 %v8903_v31  ;;  %5939 = vmatprep.subr.bf16.mxu1 %v8819_v55 }
 0x40a   :  { %5917 = vmatpush1.bf16.msra.mxu0 %v8904_v12  ;;  %5941 = vmatpush3.bf16.msra.mxu1 %v8905_v47 }
 0x40b   :  { %5943 = vmatprep.subr.bf16.mxu0 %v8906_v53  ;;  %5974 = vmatprep.subr.bf16.mxu1 %v8819_v55 }
 0x480   :  { %v1458_v42 = vpop.f32.mrb[14].mxu1 }
 0x481   :  { %v4765_v27 = vpop.f32.mrb[15].mxu1  ;;  %v1459_v28 = vadd.f32 %v1458_v42, %v8872_v4 }
 0x4a0   :  { %v1528_v22 = vpop.f32.mrb[10].mxu0  ;;  %v1599_v33 = vpop.f32.mrb[16].mxu1 }
 0x4a1   :  { %v6674_v20 = vadd.f32 %v1528_v22, %v7743_v6  ;;  %v1530_v62 = vpop.f32.mrb[11].mxu0  ;;  %v4800_v39 = vpop.f32.mrb[17].mxu1  ;;  %v1617_v44 = vadd.f32 %v8871_v59, %v1599_v33 }
 0x4a2   :  { %v6675_v31 = vadd.f32 %v1530_v62, %v7745_v30  ;;  %v4038_v39 = vld [vmem:[%s8653_s0 + $0x48] sm:$0xff] }
 0x4a3   :  { %v4035_v2 = vmul.f32 -1.442695, %v6674_v20 }
 0x4a4   :  { %v4036_v17 = vmul.f32 -1.442695, %v6675_v31  ;;  %v4039_v31 = vld [vmem:[%s8653_s0 + $0x50] sm:$0xff] }
 0x4a5   :  { %6758 = vpow2.f32 %v4035_v2 }
 0x4a6   :  { %6760 = vpow2.f32 %v4036_v17 }
 0x4af   :  { %v6759_v12 = vpop.eup %6758 }
 0x4b0   :  { %v1607_v47 = vadd.f32 1.0, %v6759_v12  ;;  %v6761_v53 = vpop.eup %6760 }
 0x4b1   :  { %v1614_v26 = vadd.f32 1.0, %v6761_v53 }
 0x4b2   :  { %6762 = vrcp.f32 %v1607_v47 }
 0x4b3   :  { %6764 = vrcp.f32 %v1614_v26 }
 0x4bc   :  { %v6763_v27 = vpop.eup %6762 }
 0x4bd   :  { %v1618_v19 = vmul.f32 %v6763_v27, %v1617_v44  ;;  %v6765_v44 = vpop.eup %6764 }
 0x4be   :  { %v1621_v42 = vsub.f32 1.0, %v6765_v44 }
 0x4bf   :  { %v1619_v62 = vadd.f32 %v1618_v19, %v1459_v28  ;;  %v1623_v19 = vmul.f32 %v6765_v44, %v7900_v50 }
 0x4c0   :  { %v1697_v2 = vpop.f32.mrb[12].mxu0  ;;  %v1768_v20 = vpop.f32.mrb[18].mxu1 }
 0x4c1   :  { %6766 = vtanh.f32 %v1619_v62  ;;  %v1772_v17 = vadd.f32 %v4038_v39, %v1697_v2  ;;  %v1699_v47 = vpop.f32.mrb[13].mxu0  ;;  %v4835_v33 = vpop.f32.mrb[19].mxu1 }
 0x4c2   :  { %v1779_v12 = vadd.f32 %v4039_v31, %v1699_v47  ;;  %v8044_v31 = vld [vmem:[%s8659_s6] ss:$0 sm:$0xff]  ;;  %v4040_v33 = vld [vmem:[%s8653_s0 + $0x58] sm:$0xff] }
 0x4c3   :  { %v4041_v53 = vmul.f32 -1.442695, %v1772_v17  ;;  %v1786_v47 = vadd.f32 %v8044_v31, %v1768_v20  ;;  %v8908_v20 = vld [vmem:[#allocation11_spill] sm:$0xff] }
 0x4c4   :  { %v4042_v26 = vmul.f32 -1.442695, %v1779_v12 }
 0x4c5   :  { %6768 = vpow2.f32 %v4041_v53 }
 0x4c6   :  { %6770 = vpow2.f32 %v4042_v26 }
 0x4cb   :  { %v6767_v22 = vpop.eup %6766 }
 0x4cc   :  { %v1622_v27 = vmul.f32 %v6767_v22, %v1621_v42 }
 0x4ce   :  { %v8035_v28 = vadd.f32 %v1623_v19, %v1622_v27 }
 0x4cf   :  { %v6769_v39 = vpop.eup %6768 }
 0x4d0   :  { %v1776_v62 = vadd.f32 1.0, %v6769_v39  ;;  %4037 = vst [vmem:[%s8661_s8 + $0x10] sm:$0xff] %v8035_v28  ;;  %v6771_v2 = vpop.eup %6770  ;;  %v8909_v39 = vld [vmem:[#allocation7_spill] sm:$0xff] }
 0x4d1   :  { %v1783_v17 = vadd.f32 1.0, %v6771_v2  ;;  %v8911_v2 = vld [vmem:[#allocation12_spill] sm:$0xff] }
 0x4d2   :  { %6772 = vrcp.f32 %v1776_v62  ;;  %v8910_v62 = vld [vmem:[#allocation8_spill] sm:$0xff] }
 0x4d3   :  { %6774 = vrcp.f32 %v1783_v17  ;;  %v8912_v17 = vld [vmem:[#allocation9_spill] sm:$0xff] }
 0x4dc   :  { %v6773_v50 = vpop.eup %6772 }
 0x4dd   :  { %v1787_v53 = vmul.f32 %v6773_v50, %v1786_v47  ;;  %v6775_v44 = vpop.eup %6774  ;;  %v8913_v47 = vld [vmem:[#allocation10_spill] sm:$0xff]  ;;  %v8914_v50 = vld [vmem:[#allocation13_spill] sm:$0xff] }
 0x4de   :  { %v1790_v26 = vsub.f32 1.0, %v6775_v44  ;;  %v1792_v27 = vmul.f32 %v6775_v44, %v7911_v54  ;;  %v8907_v54 = vld [vmem:[#allocation6_spill] sm:$0xff]  ;;  %v8918_v44 = vld [vmem:[#allocation17_spill] sm:$0xff] }
 0x4df   :  { %v1788_v12 = vadd.f32 %v4040_v33, %v1787_v53  ;;  %v8915_v33 = vld [vmem:[#allocation14_spill] sm:$0xff]  ;;  %v8916_v53 = vld [vmem:[#allocation15_spill] sm:$0xff] }
 0x4e1   :  { %6776 = vtanh.f32 %v1788_v12  ;;  %v8917_v12 = vld [vmem:[#allocation16_spill] sm:$0xff] }
 0x4eb   :  { %v6777_v42 = vpop.eup %6776 }
 0x4ec   :  { %v1791_v22 = vmul.f32 %v6777_v42, %v1790_v26  ;;  %v8919_v26 = vld [vmem:[#allocation18_spill] sm:$0xff]  ;;  %v8920_v42 = vld [vmem:[#allocation19_spill] sm:$0xff] }
 0x4ee   :  { %v8051_v19 = vadd.f32 %v1792_v27, %v1791_v22  ;;  %v8921_v22 = vld [vmem:[#allocation20_spill] sm:$0xff]  ;;  %v8922_v27 = vld [vmem:[#allocation21_spill] sm:$0xff] }
 0x4f0   :  { %1859 = vmatmul.mubr.f32.vlgmr.msra.gmra.mrb[14].mxu0 %v8051_v19  ;;  %4869 = vmatmul.mubr.f32.vlgmr.msra.gmra.mrb[20].mxu1 %v8051_v19 }
 0x4f1   :  { %5945 = vmatpush1.bf16.msra.mxu0 %v7456_v1  ;;  %5976 = vmatpush3.bf16.msra.mxu1 %v7458_v14 }
 0x4f2   :  { %5947 = vmatprep.subr.bf16.mxu0 %v8840_v49  ;;  %5977 = vmatprep.subr.bf16.mxu1 %v8819_v55 }
 0x4f3   :  { %1999 = vmatprep.mubr.f32.mxu0 %v8821_v11  ;;  %4903 = vmatprep.mubr.msk.f32.mxu1 %vm6897_vm0, %v8821_v11 }
 0x4f5   :  { %5949 = vmatpush1.bf16.msra.mxu0 %v8841_v63  ;;  %5979 = vmatpush3.bf16.msra.mxu1 %v8842_v5 }
 0x4f6   :  { %5951 = vmatprep.subr.bf16.mxu0 %v8843_v13  ;;  %5980 = vmatprep.subr.bf16.mxu1 %v8819_v55 }
 0x4f9   :  { %5953 = vmatpush1.bf16.msra.mxu0 %v8844_v57  ;;  %5982 = vmatpush3.bf16.msra.mxu1 %v8845_v58 }
 0x4fa   :  { %5955 = vmatprep.subr.bf16.mxu0 %v8846_v25  ;;  %5983 = vmatprep.subr.bf16.mxu1 %v8819_v55 }
 0x4fd   :  { %5957 = vmatpush1.bf16.msra.mxu0 %v8847_v24  ;;  %5985 = vmatpush3.bf16.msra.mxu1 %v8848_v7 }
 0x4fe   :  { %5959 = vmatprep.subr.bf16.mxu0 %v8849_v40  ;;  %5986 = vmatprep.subr.bf16.mxu1 %v8819_v55 }
 0x501   :  { %5961 = vmatpush1.bf16.msra.mxu0 %v8850_v56  ;;  %5988 = vmatpush3.bf16.msra.mxu1 %v8851_v48 }
 0x502   :  { %5963 = vmatprep.subr.bf16.mxu0 %v8852_v37  ;;  %5989 = vmatprep.subr.bf16.mxu1 %v8819_v55 }
 0x505   :  { %5965 = vmatpush1.bf16.msra.mxu0 %v8853_v38  ;;  %5991 = vmatpush3.bf16.msra.mxu1 %v7603_v45 }
 0x506   :  { %5967 = vmatprep.subr.bf16.mxu0 %v7610_v18  ;;  %5992 = vmatprep.subr.bf16.mxu1 %v8819_v55 }
 0x509   :  { %5969 = vmatpush1.bf16.msra.mxu0 %v7629_v8  ;;  %5994 = vmatpush3.bf16.msra.mxu1 %v7631_v36 }
 0x50a   :  { %5971 = vmatprep.subr.bf16.mxu0 %v7638_v46  ;;  %5995 = vmatprep.subr.bf16.mxu1 %v8819_v55 }
 0x50d   :  { %5973 = vmatpush1.bf16.msra.mxu0 %v7651_v51  ;;  %5997 = vmatpush3.bf16.msra.mxu1 %v7653_v0 }
 0x50e   :  { %5999 = vmatprep.subr.bf16.mxu0 %v6960_v3  ;;  %6030 = vmatprep.subr.bf16.mxu1 %v8819_v55 }
 0x510   :  { %2000 = vmatmul.mubr.f32.vlgmr.msra.gmra.mrb[14].mxu0 %v8035_v28  ;;  %4904 = vmatmul.mubr.f32.vlgmr.msra.gmra.mrb[22].mxu1 %v8035_v28 }
 0x511   :  { %6001 = vmatpush1.bf16.msra.mxu0 %v6973_v9  ;;  %6032 = vmatpush3.bf16.msra.mxu1 %v7034_v29 }
 0x512   :  { %6003 = vmatprep.subr.bf16.mxu0 %v6975_v10  ;;  %6033 = vmatprep.subr.bf16.mxu1 %v8819_v55 }
 0x513   :  { %2168 = vmatprep.mubr.f32.mxu0 %v8821_v11  ;;  %4938 = vmatprep.mubr.msk.f32.mxu1 %vm6897_vm0, %v8821_v11 }
 0x515   :  { %6005 = vmatpush1.bf16.msra.mxu0 %v6993_v15  ;;  %6035 = vmatpush3.bf16.msra.mxu1 %v7049_v34 }
 0x516   :  { %6007 = vmatprep.subr.bf16.mxu0 %v6996_v16  ;;  %6036 = vmatprep.subr.bf16.mxu1 %v8819_v55 }
 0x519   :  { %6009 = vmatpush1.bf16.msra.mxu0 %v7011_v21  ;;  %6038 = vmatpush3.bf16.msra.mxu1 %v7077_v43 }
 0x51a   :  { %6011 = vmatprep.subr.bf16.mxu0 %v7017_v23  ;;  %6039 = vmatprep.subr.bf16.mxu1 %v8819_v55 }
 0x51d   :  { %6013 = vmatpush1.bf16.msra.mxu0 %v7043_v32  ;;  %6041 = vmatpush3.bf16.msra.mxu1 %v7105_v52 }
 0x51e   :  { %6015 = vmatprep.subr.bf16.mxu0 %v7052_v35  ;;  %6042 = vmatprep.subr.bf16.mxu1 %v8819_v55 }
 0x521   :  { %6017 = vmatpush1.bf16.msra.mxu0 %v7071_v41  ;;  %6044 = vmatpush3.bf16.msra.mxu1 %v7133_v61 }
 0x522   :  { %6019 = vmatprep.subr.bf16.mxu0 %v8873_v60  ;;  %6045 = vmatprep.subr.bf16.mxu1 %v8819_v55 }
 0x525   :  { %6021 = vmatpush1.bf16.msra.mxu0 %v8907_v54  ;;  %6047 = vmatpush3.bf16.msra.mxu1 %v8908_v20 }
 0x526   :  { %6023 = vmatprep.subr.bf16.mxu0 %v8909_v39  ;;  %6048 = vmatprep.subr.bf16.mxu1 %v8819_v55 }
 0x529   :  { %6025 = vmatpush1.bf16.msra.mxu0 %v8910_v62  ;;  %6050 = vmatpush3.bf16.msra.mxu1 %v8911_v2 }
 0x52a   :  { %6027 = vmatprep.subr.bf16.mxu0 %v8912_v17  ;;  %6051 = vmatprep.subr.bf16.mxu1 %v8819_v55 }
 0x52d   :  { %6029 = vmatpush1.bf16.msra.mxu0 %v8913_v47  ;;  %6053 = vmatpush3.bf16.msra.mxu1 %v8914_v50  ;;  %v8927_v50 = vld [vmem:[#allocation26_spill] sm:$0xff] }
 0x52e   :  { %6055 = vmatprep.subr.bf16.mxu0 %v8915_v33  ;;  %6086 = vmatprep.subr.bf16.mxu1 %v8819_v55  ;;  %v8926_v33 = vld [vmem:[#allocation25_spill] sm:$0xff] }
 0x530   :  { %2169 = vmatmul.mubr.f32.vlgmr.msra.gmra.mrb[16].mxu0 %v8051_v19  ;;  %4939 = vmatmul.mubr.f32.vlgmr.msra.gmra.mrb[24].mxu1 %v8051_v19 }
 0x531   :  { %6057 = vmatpush1.bf16.msra.mxu0 %v8916_v53  ;;  %6088 = vmatpush3.bf16.msra.mxu1 %v8917_v12  ;;  %v8923_v12 = vld [vmem:[#allocation22_spill] sm:$0xff]  ;;  %v8925_v53 = vld [vmem:[#allocation24_spill] sm:$0xff] }
 0x532   :  { %6059 = vmatprep.subr.bf16.mxu0 %v8918_v44  ;;  %6089 = vmatprep.subr.bf16.mxu1 %v8819_v55  ;;  %v8924_v44 = vld [vmem:[#allocation23_spill] sm:$0xff] }
 0x533   :  { %2331 = vmatprep.mubr.f32.mxu0 %v8821_v11  ;;  %4973 = vmatprep.mubr.msk.f32.mxu1 %vm6897_vm0, %v8821_v11 }
 0x535   :  { %6061 = vmatpush1.bf16.msra.mxu0 %v8919_v26  ;;  %6091 = vmatpush3.bf16.msra.mxu1 %v8920_v42  ;;  %v8928_v42 = vld [vmem:[#allocation27_spill] sm:$0xff]  ;;  %v8930_v26 = vld [vmem:[#allocation29_spill] sm:$0xff] }
 0x536   :  { %6063 = vmatprep.subr.bf16.mxu0 %v8921_v22  ;;  %6092 = vmatprep.subr.bf16.mxu1 %v8819_v55  ;;  %v8929_v22 = vld [vmem:[#allocation28_spill] sm:$0xff] }
 0x539   :  { %6065 = vmatpush1.bf16.msra.mxu0 %v8922_v27  ;;  %6094 = vmatpush3.bf16.msra.mxu1 %v8923_v12  ;;  %v8931_v12 = vld [vmem:[#allocation30_spill] sm:$0xff]  ;;  %v8933_v27 = vld [vmem:[#allocation32_spill] sm:$0xff] }
 0x53a   :  { %6067 = vmatprep.subr.bf16.mxu0 %v8924_v44  ;;  %6095 = vmatprep.subr.bf16.mxu1 %v8819_v55  ;;  %v8932_v44 = vld [vmem:[#allocation31_spill] sm:$0xff] }
 0x53d   :  { %6069 = vmatpush1.bf16.msra.mxu0 %v8925_v53  ;;  %6097 = vmatpush3.bf16.msra.mxu1 %v8926_v33  ;;  %v8934_v33 = vld [vmem:[#allocation33_spill] sm:$0xff]  ;;  %v8936_v53 = vld [vmem:[#allocation35_spill] sm:$0xff] }
 0x53e   :  { %6071 = vmatprep.subr.bf16.mxu0 %v8927_v50  ;;  %6098 = vmatprep.subr.bf16.mxu1 %v8819_v55  ;;  %v8935_v50 = vld [vmem:[#allocation34_spill] sm:$0xff] }
 0x541   :  { %6073 = vmatpush1.bf16.msra.mxu0 %v8928_v42  ;;  %6100 = vmatpush3.bf16.msra.mxu1 %v8929_v22  ;;  %v8937_v22 = vld [vmem:[#allocation36_spill] sm:$0xff]  ;;  %v8939_v42 = vld [vmem:[#allocation38_spill] sm:$0xff] }
 0x542   :  { %6075 = vmatprep.subr.bf16.mxu0 %v8930_v26  ;;  %6101 = vmatprep.subr.bf16.mxu1 %v8819_v55  ;;  %v8938_v26 = vld [vmem:[#allocation37_spill] sm:$0xff] }
 0x545   :  { %6077 = vmatpush1.bf16.msra.mxu0 %v8931_v12  ;;  %6103 = vmatpush3.bf16.msra.mxu1 %v8932_v44 }
 0x546   :  { %6079 = vmatprep.subr.bf16.mxu0 %v8933_v27  ;;  %6104 = vmatprep.subr.bf16.mxu1 %v8819_v55 }
 0x549   :  { %6081 = vmatpush1.bf16.msra.mxu0 %v8934_v33  ;;  %6106 = vmatpush3.bf16.msra.mxu1 %v8935_v50 }
 0x54a   :  { %6083 = vmatprep.subr.bf16.mxu0 %v8936_v53  ;;  %6107 = vmatprep.subr.bf16.mxu1 %v8819_v55 }
 0x54d   :  { %6085 = vmatpush1.bf16.msra.mxu0 %v8937_v22  ;;  %6109 = vmatpush3.bf16.msra.mxu1 %v8938_v26 }
 0x54e   :  { %6111 = vmatprep.subr.bf16.mxu0 %v8939_v42  ;;  %6142 = vmatprep.subr.bf16.mxu1 %v8819_v55 }
 0x5c3   :  { %v1931_v44 = vpop.f32.mrb[20].mxu1 }
 0x5c4   :  { %v4870_v27 = vpop.f32.mrb[21].mxu1  ;;  %v1932_v54 = vadd.f32 %v1931_v44, %v8872_v4 }
 0x5e3   :  { %v2001_v12 = vpop.f32.mrb[14].mxu0  ;;  %v2072_v47 = vpop.f32.mrb[22].mxu1 }
 0x5e4   :  { %v6676_v33 = vadd.f32 %v2001_v12, %v7743_v6  ;;  %v2003_v17 = vpop.f32.mrb[15].mxu0  ;;  %v4905_v50 = vpop.f32.mrb[23].mxu1  ;;  %v2090_v20 = vadd.f32 %v8871_v59, %v2072_v47 }
 0x5e5   :  { %v6677_v53 = vadd.f32 %v2003_v17, %v7745_v30  ;;  %v4046_v50 = vld [vmem:[%s8653_s0 + $0x60] sm:$0xff] }
 0x5e6   :  { %v4043_v2 = vmul.f32 -1.442695, %v6676_v33 }
 0x5e7   :  { %v4044_v62 = vmul.f32 -1.442695, %v6677_v53  ;;  %v4047_v53 = vld [vmem:[%s8653_s0 + $0x68] sm:$0xff] }
 0x5e8   :  { %6778 = vpow2.f32 %v4043_v2 }
 0x5e9   :  { %6780 = vpow2.f32 %v4044_v62 }
 0x5f2   :  { %v6779_v22 = vpop.eup %6778 }
 0x5f3   :  { %v2080_v26 = vadd.f32 1.0, %v6779_v22  ;;  %v6781_v42 = vpop.eup %6780 }
 0x5f4   :  { %v2087_v39 = vadd.f32 1.0, %v6781_v42 }
 0x5f5   :  { %6782 = vrcp.f32 %v2080_v26 }
 0x5f6   :  { %6784 = vrcp.f32 %v2087_v39 }
 0x5ff   :  { %v6783_v27 = vpop.eup %6782 }
 0x600   :  { %v2091_v60 = vmul.f32 %v6783_v27, %v2090_v20  ;;  %v6785_v20 = vpop.eup %6784 }
 0x601   :  { %v2094_v44 = vsub.f32 1.0, %v6785_v20 }
 0x602   :  { %v2092_v17 = vadd.f32 %v2091_v60, %v1932_v54  ;;  %v2096_v60 = vmul.f32 %v6785_v20, %v8035_v28 }
 0x603   :  { %v2170_v2 = vpop.f32.mrb[16].mxu0  ;;  %v2241_v33 = vpop.f32.mrb[24].mxu1 }
 0x604   :  { %6786 = vtanh.f32 %v2092_v17  ;;  %v2245_v62 = vadd.f32 %v4046_v50, %v2170_v2  ;;  %v2172_v12 = vpop.f32.mrb[17].mxu0  ;;  %v4940_v59 = vpop.f32.mrb[25].mxu1 }
 0x605   :  { %v2252_v26 = vadd.f32 %v4047_v53, %v2172_v12  ;;  %v4048_v12 = vld [vmem:[%s8653_s0 + $0x70] sm:$0xff] }
 0x606   :  { %v4049_v47 = vmul.f32 -1.442695, %v2245_v62  ;;  %v2259_v62 = vadd.f32 %v8044_v31, %v2241_v33  ;;  %v8941_v33 = vld [vmem:[#allocation6_spill] sm:$0xff] }
 0x607   :  { %v4050_v39 = vmul.f32 -1.442695, %v2252_v26 }
 0x608   :  { %6788 = vpow2.f32 %v4049_v47 }
 0x609   :  { %6790 = vpow2.f32 %v4050_v39 }
 0x60e   :  { %v6787_v42 = vpop.eup %6786 }
 0x60f   :  { %v2095_v22 = vmul.f32 %v6787_v42, %v2094_v44 }
 0x611   :  { %v8175_v54 = vadd.f32 %v2096_v60, %v2095_v22  ;;  %v8942_v22 = vld [vmem:[#allocation11_spill] sm:$0xff] }
 0x612   :  { %v6789_v27 = vpop.eup %6788  ;;  %v8943_v60 = vld [vmem:[#allocation7_spill] sm:$0xff] }
 0x613   :  { %v2249_v50 = vadd.f32 1.0, %v6789_v27  ;;  %4045 = vst [vmem:[%s8661_s8 + $0x18] sm:$0xff] %v8175_v54  ;;  %v6791_v17 = vpop.eup %6790  ;;  %v8944_v27 = vld [vmem:[#allocation8_spill] sm:$0xff] }
 0x614   :  { %v2256_v2 = vadd.f32 1.0, %v6791_v17  ;;  %v8946_v17 = vld [vmem:[#allocation9_spill] sm:$0xff] }
 0x615   :  { %6792 = vrcp.f32 %v2249_v50  ;;  %v8945_v50 = vld [vmem:[#allocation12_spill] sm:$0xff] }
 0x616   :  { %6794 = vrcp.f32 %v2256_v2  ;;  %v8947_v2 = vld [vmem:[#allocation10_spill] sm:$0xff] }
 0x61f   :  { %v6793_v53 = vpop.eup %6792 }
 0x620   :  { %v2260_v28 = vmul.f32 %v6793_v53, %v2259_v62  ;;  %v6795_v47 = vpop.eup %6794  ;;  %v8948_v62 = vld [vmem:[#allocation13_spill] sm:$0xff]  ;;  %v8949_v53 = vld [vmem:[#allocation14_spill] sm:$0xff] }
 0x621   :  { %v2263_v26 = vsub.f32 1.0, %v6795_v47  ;;  %v2265_v44 = vmul.f32 %v6795_v47, %v8051_v19  ;;  %v8940_v19 = vld [vmem:[#allocation5_spill] sm:$0xff]  ;;  %v8953_v47 = vld [vmem:[#allocation18_spill] sm:$0xff] }
 0x622   :  { %v2261_v59 = vadd.f32 %v4048_v12, %v2260_v28  ;;  %v8950_v12 = vld [vmem:[#allocation15_spill] sm:$0xff]  ;;  %v8951_v28 = vld [vmem:[#allocation16_spill] sm:$0xff] }
 0x624   :  { %6796 = vtanh.f32 %v2261_v59  ;;  %v8952_v59 = vld [vmem:[#allocation17_spill] sm:$0xff] }
 0x62e   :  { %v6797_v20 = vpop.eup %6796 }
 0x62f   :  { %v2264_v39 = vmul.f32 %v6797_v20, %v2263_v26  ;;  %v8954_v26 = vld [vmem:[#allocation19_spill] sm:$0xff]  ;;  %v8955_v20 = vld [vmem:[#allocation20_spill] sm:$0xff] }
 0x631   :  { %v8186_v42 = vadd.f32 %v2265_v44, %v2264_v39  ;;  %v8956_v39 = vld [vmem:[#allocation21_spill] sm:$0xff]  ;;  %v8957_v44 = vld [vmem:[#allocation22_spill] sm:$0xff] }
 0x633   :  { %2332 = vmatmul.mubr.f32.vlgmr.msra.gmra.mrb[18].mxu0 %v8186_v42  ;;  %4974 = vmatmul.mubr.f32.vlgmr.msra.gmra.mrb[26].mxu1 %v8186_v42 }
 0x634   :  { %6113 = vmatpush1.bf16.msra.mxu0 %v7456_v1  ;;  %6144 = vmatpush3.bf16.msra.mxu1 %v7458_v14 }
 0x635   :  { %6115 = vmatprep.subr.bf16.mxu0 %v8840_v49  ;;  %6145 = vmatprep.subr.bf16.mxu1 %v8819_v55 }
 0x636   :  { %2472 = vmatprep.mubr.f32.mxu0 %v8821_v11  ;;  %5008 = vmatprep.mubr.msk.f32.mxu1 %vm6897_vm0, %v8821_v11 }
 0x638   :  { %6117 = vmatpush1.bf16.msra.mxu0 %v8841_v63  ;;  %6147 = vmatpush3.bf16.msra.mxu1 %v8842_v5 }
 0x639   :  { %6119 = vmatprep.subr.bf16.mxu0 %v8843_v13  ;;  %6148 = vmatprep.subr.bf16.mxu1 %v8819_v55 }
 0x63c   :  { %6121 = vmatpush1.bf16.msra.mxu0 %v8844_v57  ;;  %6150 = vmatpush3.bf16.msra.mxu1 %v8845_v58 }
 0x63d   :  { %6123 = vmatprep.subr.bf16.mxu0 %v8846_v25  ;;  %6151 = vmatprep.subr.bf16.mxu1 %v8819_v55 }
 0x640   :  { %6125 = vmatpush1.bf16.msra.mxu0 %v8847_v24  ;;  %6153 = vmatpush3.bf16.msra.mxu1 %v8848_v7 }
 0x641   :  { %6127 = vmatprep.subr.bf16.mxu0 %v8849_v40  ;;  %6154 = vmatprep.subr.bf16.mxu1 %v8819_v55 }
 0x644   :  { %6129 = vmatpush1.bf16.msra.mxu0 %v8850_v56  ;;  %6156 = vmatpush3.bf16.msra.mxu1 %v8851_v48 }
 0x645   :  { %6131 = vmatprep.subr.bf16.mxu0 %v8852_v37  ;;  %6157 = vmatprep.subr.bf16.mxu1 %v8819_v55 }
 0x648   :  { %6133 = vmatpush1.bf16.msra.mxu0 %v8853_v38  ;;  %6159 = vmatpush3.bf16.msra.mxu1 %v7603_v45 }
 0x649   :  { %6135 = vmatprep.subr.bf16.mxu0 %v7610_v18  ;;  %6160 = vmatprep.subr.bf16.mxu1 %v8819_v55 }
 0x64c   :  { %6137 = vmatpush1.bf16.msra.mxu0 %v7629_v8  ;;  %6162 = vmatpush3.bf16.msra.mxu1 %v7631_v36 }
 0x64d   :  { %6139 = vmatprep.subr.bf16.mxu0 %v7638_v46  ;;  %6163 = vmatprep.subr.bf16.mxu1 %v8819_v55 }
 0x650   :  { %6141 = vmatpush1.bf16.msra.mxu0 %v7651_v51  ;;  %6165 = vmatpush3.bf16.msra.mxu1 %v7653_v0 }
 0x651   :  { %6167 = vmatprep.subr.bf16.mxu0 %v6960_v3  ;;  %6198 = vmatprep.subr.bf16.mxu1 %v8819_v55 }
 0x653   :  { %2473 = vmatmul.mubr.f32.vlgmr.msra.gmra.mrb[18].mxu0 %v8175_v54  ;;  %5009 = vmatmul.mubr.f32.vlgmr.msra.gmra.mrb[28].mxu1 %v8175_v54 }
 0x654   :  { %6169 = vmatpush1.bf16.msra.mxu0 %v6973_v9  ;;  %6200 = vmatpush3.bf16.msra.mxu1 %v7034_v29 }
 0x655   :  { %6171 = vmatprep.subr.bf16.mxu0 %v6975_v10  ;;  %6201 = vmatprep.subr.bf16.mxu1 %v8819_v55 }
 0x656   :  { %2641 = vmatprep.mubr.f32.mxu0 %v8821_v11  ;;  %5043 = vmatprep.mubr.msk.f32.mxu1 %vm6897_vm0, %v8821_v11 }
 0x658   :  { %6173 = vmatpush1.bf16.msra.mxu0 %v6993_v15  ;;  %6203 = vmatpush3.bf16.msra.mxu1 %v7049_v34 }
 0x659   :  { %6175 = vmatprep.subr.bf16.mxu0 %v6996_v16  ;;  %6204 = vmatprep.subr.bf16.mxu1 %v8819_v55 }
 0x65c   :  { %6177 = vmatpush1.bf16.msra.mxu0 %v7011_v21  ;;  %6206 = vmatpush3.bf16.msra.mxu1 %v7077_v43 }
 0x65d   :  { %6179 = vmatprep.subr.bf16.mxu0 %v7017_v23  ;;  %6207 = vmatprep.subr.bf16.mxu1 %v8819_v55 }
 0x660   :  { %6181 = vmatpush1.bf16.msra.mxu0 %v7043_v32  ;;  %6209 = vmatpush3.bf16.msra.mxu1 %v7105_v52 }
 0x661   :  { %6183 = vmatprep.subr.bf16.mxu0 %v7052_v35  ;;  %6210 = vmatprep.subr.bf16.mxu1 %v8819_v55 }
 0x664   :  { %6185 = vmatpush1.bf16.msra.mxu0 %v7071_v41  ;;  %6212 = vmatpush3.bf16.msra.mxu1 %v7133_v61 }
 0x665   :  { %6187 = vmatprep.subr.bf16.mxu0 %v8940_v19  ;;  %6213 = vmatprep.subr.bf16.mxu1 %v8819_v55 }
 0x668   :  { %6189 = vmatpush1.bf16.msra.mxu0 %v8941_v33  ;;  %6215 = vmatpush3.bf16.msra.mxu1 %v8942_v22 }
 0x669   :  { %6191 = vmatprep.subr.bf16.mxu0 %v8943_v60  ;;  %6216 = vmatprep.subr.bf16.mxu1 %v8819_v55 }
 0x66c   :  { %6193 = vmatpush1.bf16.msra.mxu0 %v8944_v27  ;;  %6218 = vmatpush3.bf16.msra.mxu1 %v8945_v50 }
 0x66d   :  { %6195 = vmatprep.subr.bf16.mxu0 %v8946_v17  ;;  %6219 = vmatprep.subr.bf16.mxu1 %v8819_v55 }
 0x670   :  { %6197 = vmatpush1.bf16.msra.mxu0 %v8947_v2  ;;  %6221 = vmatpush3.bf16.msra.mxu1 %v8948_v62 }
 0x671   :  { %6223 = vmatprep.subr.bf16.mxu0 %v8949_v53  ;;  %6254 = vmatprep.subr.bf16.mxu1 %v8819_v55  ;;  %v8961_v53 = vld [vmem:[#allocation26_spill] sm:$0xff] }
 0x673   :  { %2642 = vmatmul.mubr.f32.vlgmr.msra.gmra.mrb[20].mxu0 %v8186_v42  ;;  %5044 = vmatmul.mubr.f32.vlgmr.msra.gmra.mrb[30].mxu1 %v8186_v42 }
 0x674   :  { %6225 = vmatpush1.bf16.msra.mxu0 %v8950_v12  ;;  %6256 = vmatpush3.bf16.msra.mxu1 %v8951_v28  ;;  %v8959_v28 = vld [vmem:[#allocation24_spill] sm:$0xff]  ;;  %v8960_v12 = vld [vmem:[#allocation25_spill] sm:$0xff] }
 0x675   :  { %6227 = vmatprep.subr.bf16.mxu0 %v8952_v59  ;;  %6257 = vmatprep.subr.bf16.mxu1 %v8819_v55  ;;  %v8958_v59 = vld [vmem:[#allocation23_spill] sm:$0xff] }
 0x676   :  { %2804 = vmatprep.mubr.f32.mxu0 %v8821_v11  ;;  %5078 = vmatprep.mubr.msk.f32.mxu1 %vm6897_vm0, %v8821_v11 }
 0x678   :  { %6229 = vmatpush1.bf16.msra.mxu0 %v8953_v47  ;;  %6259 = vmatpush3.bf16.msra.mxu1 %v8954_v26  ;;  %v8962_v26 = vld [vmem:[#allocation27_spill] sm:$0xff]  ;;  %v8964_v47 = vld [vmem:[#allocation29_spill] sm:$0xff] }
 0x679   :  { %6231 = vmatprep.subr.bf16.mxu0 %v8955_v20  ;;  %6260 = vmatprep.subr.bf16.mxu1 %v8819_v55  ;;  %v8963_v20 = vld [vmem:[#allocation28_spill] sm:$0xff] }
 0x67c   :  { %6233 = vmatpush1.bf16.msra.mxu0 %v8956_v39  ;;  %6262 = vmatpush3.bf16.msra.mxu1 %v8957_v44  ;;  %v8965_v44 = vld [vmem:[#allocation30_spill] sm:$0xff]  ;;  %v8967_v39 = vld [vmem:[#allocation32_spill] sm:$0xff] }
 0x67d   :  { %6235 = vmatprep.subr.bf16.mxu0 %v8958_v59  ;;  %6263 = vmatprep.subr.bf16.mxu1 %v8819_v55  ;;  %v8966_v59 = vld [vmem:[#allocation31_spill] sm:$0xff] }
 0x680   :  { %6237 = vmatpush1.bf16.msra.mxu0 %v8959_v28  ;;  %6265 = vmatpush3.bf16.msra.mxu1 %v8960_v12  ;;  %v8968_v12 = vld [vmem:[#allocation33_spill] sm:$0xff]  ;;  %v8970_v28 = vld [vmem:[#allocation35_spill] sm:$0xff] }
 0x681   :  { %6239 = vmatprep.subr.bf16.mxu0 %v8961_v53  ;;  %6266 = vmatprep.subr.bf16.mxu1 %v8819_v55  ;;  %v8969_v53 = vld [vmem:[#allocation34_spill] sm:$0xff] }
 0x684   :  { %6241 = vmatpush1.bf16.msra.mxu0 %v8962_v26  ;;  %6268 = vmatpush3.bf16.msra.mxu1 %v8963_v20  ;;  %v8971_v20 = vld [vmem:[#allocation36_spill] sm:$0xff]  ;;  %v8973_v26 = vld [vmem:[#allocation38_spill] sm:$0xff] }
 0x685   :  { %6243 = vmatprep.subr.bf16.mxu0 %v8964_v47  ;;  %6269 = vmatprep.subr.bf16.mxu1 %v8819_v55  ;;  %v8972_v47 = vld [vmem:[#allocation37_spill] sm:$0xff] }
 0x688   :  { %6245 = vmatpush1.bf16.msra.mxu0 %v8965_v44  ;;  %6271 = vmatpush3.bf16.msra.mxu1 %v8966_v59 }
 0x689   :  { %6247 = vmatprep.subr.bf16.mxu0 %v8967_v39  ;;  %6272 = vmatprep.subr.bf16.mxu1 %v8819_v55 }
 0x68c   :  { %6249 = vmatpush1.bf16.msra.mxu0 %v8968_v12  ;;  %6274 = vmatpush3.bf16.msra.mxu1 %v8969_v53 }
 0x68d   :  { %6251 = vmatprep.subr.bf16.mxu0 %v8970_v28  ;;  %6275 = vmatprep.subr.bf16.mxu1 %v8819_v55 }
 0x690   :  { %6253 = vmatpush1.bf16.msra.mxu0 %v8971_v20  ;;  %6277 = vmatpush3.bf16.msra.mxu1 %v8972_v47 }
 0x691   :  { %6279 = vmatprep.subr.bf16.mxu0 %v8973_v26  ;;  %6310 = vmatprep.subr.bf16.mxu1 %v8819_v55 }
 0x706   :  { %v2404_v59 = vpop.f32.mrb[26].mxu1 }
 0x707   :  { %v4975_v39 = vpop.f32.mrb[27].mxu1 }
 0x708   :  { %v8304_v39 = vld [vmem:[%s8660_s7] ss:$0 sm:$0xff] }
 0x709   :  { %8974 = vst [vmem:[#allocation39_spill] sm:$0xff] %v8304_v39 }
 0x726   :  { %v2474_v44 = vpop.f32.mrb[18].mxu0  ;;  %v2545_v62 = vpop.f32.mrb[28].mxu1 }
 0x727   :  { %v6678_v12 = vadd.f32 %v2474_v44, %v7743_v6  ;;  %v2476_v2 = vpop.f32.mrb[19].mxu0  ;;  %v5010_v53 = vpop.f32.mrb[29].mxu1  ;;  %v2563_v44 = vadd.f32 %v8304_v39, %v2545_v62 }
 0x728   :  { %v6679_v28 = vadd.f32 %v2476_v2, %v7745_v30  ;;  %v2405_v53 = vadd.f32 %v2404_v59, %v8872_v4 }
 0x729   :  { %v4051_v17 = vmul.f32 -1.442695, %v6678_v12 }
 0x72a   :  { %v4052_v50 = vmul.f32 -1.442695, %v6679_v28 }
 0x72b   :  { %6798 = vpow2.f32 %v4051_v17 }
 0x72c   :  { %6800 = vpow2.f32 %v4052_v50  ;;  %v4054_v50 = vld [vmem:[%s8653_s0 + $0x78] sm:$0xff] }
 0x735   :  { %v6799_v20 = vpop.eup %6798 }
 0x736   :  { %v2553_v47 = vadd.f32 1.0, %v6799_v20  ;;  %v6801_v26 = vpop.eup %6800 }
 0x737   :  { %v2560_v27 = vadd.f32 1.0, %v6801_v26  ;;  %v4055_v26 = vld [vmem:[%s8653_s0 + $0x80] sm:$0xff] }
 0x738   :  { %6802 = vrcp.f32 %v2553_v47 }
 0x739   :  { %6804 = vrcp.f32 %v2560_v27 }
 0x742   :  { %v6803_v6 = vpop.eup %6802 }
 0x743   :  { %v2564_v12 = vmul.f32 %v6803_v6, %v2563_v44  ;;  %v6805_v6 = vpop.eup %6804 }
 0x744   :  { %v2567_v59 = vsub.f32 1.0, %v6805_v6 }
 0x745   :  { %v2565_v17 = vadd.f32 %v2564_v12, %v2405_v53  ;;  %v2569_v53 = vmul.f32 %v6805_v6, %v8175_v54 }
 0x746   :  { %v2643_v2 = vpop.f32.mrb[20].mxu0  ;;  %v2714_v28 = vpop.f32.mrb[30].mxu1 }
 0x747   :  { %6806 = vtanh.f32 %v2565_v17  ;;  %v2718_v47 = vadd.f32 %v4054_v50, %v2643_v2  ;;  %v2645_v20 = vpop.f32.mrb[21].mxu0  ;;  %v5045_v62 = vpop.f32.mrb[31].mxu1 }
 0x748   :  { %v2725_v30 = vadd.f32 %v4055_v26, %v2645_v20  ;;  %v4056_v26 = vld [vmem:[%s8653_s0 + $0x88] sm:$0xff] }
 0x749   :  { %v4057_v39 = vmul.f32 -1.442695, %v2718_v47 }
 0x74a   :  { %v4058_v27 = vmul.f32 -1.442695, %v2725_v30  ;;  %v2732_v30 = vadd.f32 %v8044_v31, %v2714_v28  ;;  %v8976_v28 = vld [vmem:[#allocation12_spill] sm:$0xff] }
 0x74b   :  { %6808 = vpow2.f32 %v4057_v39 }
 0x74c   :  { %6810 = vpow2.f32 %v4058_v27 }
 0x751   :  { %v6807_v44 = vpop.eup %6806 }
 0x752   :  { %v2568_v4 = vmul.f32 %v6807_v44, %v2567_v59 }
 0x754   :  { %v8315_v12 = vadd.f32 %v2569_v53, %v2568_v4  ;;  %v8977_v53 = vld [vmem:[#allocation9_spill] sm:$0xff] }
 0x755   :  { %v6809_v50 = vpop.eup %6808 }
 0x756   :  { %v2722_v17 = vadd.f32 1.0, %v6809_v50  ;;  %4053 = vst [vmem:[%s8661_s8 + $0x20] sm:$0xff] %v8315_v12  ;;  %v6811_v2 = vpop.eup %6810  ;;  %v8978_v50 = vld [vmem:[#allocation10_spill] sm:$0xff] }
 0x757   :  { %v2729_v39 = vadd.f32 1.0, %v6811_v2  ;;  %v8980_v2 = vld [vmem:[#allocation14_spill] sm:$0xff] }
 0x758   :  { %6812 = vrcp.f32 %v2722_v17  ;;  %v8979_v17 = vld [vmem:[#allocation13_spill] sm:$0xff] }
 0x759   :  { %6814 = vrcp.f32 %v2729_v39  ;;  %v8981_v39 = vld [vmem:[#allocation15_spill] sm:$0xff] }
 0x762   :  { %v6813_v47 = vpop.eup %6812 }
 0x763   :  { %v2733_v54 = vmul.f32 %v6813_v47, %v2732_v30  ;;  %v6815_v20 = vpop.eup %6814  ;;  %v8982_v30 = vld [vmem:[#allocation16_spill] sm:$0xff]  ;;  %v8983_v47 = vld [vmem:[#allocation17_spill] sm:$0xff] }
 0x764   :  { %v2736_v62 = vsub.f32 1.0, %v6815_v20  ;;  %v2738_v59 = vmul.f32 %v6815_v20, %v8186_v42  ;;  %v8975_v42 = vld [vmem:[#allocation8_spill] sm:$0xff]  ;;  %v8987_v20 = vld [vmem:[#allocation21_spill] sm:$0xff] }
 0x765   :  { %v2734_v4 = vadd.f32 %v4056_v26, %v2733_v54  ;;  %v8984_v26 = vld [vmem:[#allocation18_spill] sm:$0xff]  ;;  %v8985_v54 = vld [vmem:[#allocation19_spill] sm:$0xff] }
 0x767   :  { %6816 = vtanh.f32 %v2734_v4  ;;  %v8986_v4 = vld [vmem:[#allocation20_spill] sm:$0xff] }
 0x771   :  { %v6817_v6 = vpop.eup %6816 }
 0x772   :  { %v2737_v27 = vmul.f32 %v6817_v6, %v2736_v62  ;;  %v8988_v62 = vld [vmem:[#allocation22_spill] sm:$0xff]  ;;  %v8989_v6 = vld [vmem:[#allocation23_spill] sm:$0xff] }
 0x774   :  { %v8326_v44 = vadd.f32 %v2738_v59, %v2737_v27  ;;  %v8990_v27 = vld [vmem:[#allocation24_spill] sm:$0xff]  ;;  %v8991_v59 = vld [vmem:[#allocation25_spill] sm:$0xff] }
 0x776   :  { %2805 = vmatmul.mubr.f32.vlgmr.msra.gmra.mrb[22].mxu0 %v8326_v44  ;;  %5079 = vmatmul.mubr.f32.vlgmr.msra.gmra.mrb[32].mxu1 %v8326_v44 }
 0x777   :  { %6281 = vmatpush1.bf16.msra.mxu0 %v7456_v1  ;;  %6312 = vmatpush3.bf16.msra.mxu1 %v7458_v14 }
 0x778   :  { %6283 = vmatprep.subr.bf16.mxu0 %v8840_v49  ;;  %6313 = vmatprep.subr.bf16.mxu1 %v8819_v55 }
 0x779   :  { %2945 = vmatprep.mubr.f32.mxu0 %v8821_v11  ;;  %5113 = vmatprep.mubr.msk.f32.mxu1 %vm6897_vm0, %v8821_v11 }
 0x77b   :  { %6285 = vmatpush1.bf16.msra.mxu0 %v8841_v63  ;;  %6315 = vmatpush3.bf16.msra.mxu1 %v8842_v5 }
 0x77c   :  { %6287 = vmatprep.subr.bf16.mxu0 %v8843_v13  ;;  %6316 = vmatprep.subr.bf16.mxu1 %v8819_v55 }
 0x77f   :  { %6289 = vmatpush1.bf16.msra.mxu0 %v8844_v57  ;;  %6318 = vmatpush3.bf16.msra.mxu1 %v8845_v58 }
 0x780   :  { %6291 = vmatprep.subr.bf16.mxu0 %v8846_v25  ;;  %6319 = vmatprep.subr.bf16.mxu1 %v8819_v55 }
 0x783   :  { %6293 = vmatpush1.bf16.msra.mxu0 %v8847_v24  ;;  %6321 = vmatpush3.bf16.msra.mxu1 %v8848_v7 }
 0x784   :  { %6295 = vmatprep.subr.bf16.mxu0 %v8849_v40  ;;  %6322 = vmatprep.subr.bf16.mxu1 %v8819_v55 }
 0x787   :  { %6297 = vmatpush1.bf16.msra.mxu0 %v8850_v56  ;;  %6324 = vmatpush3.bf16.msra.mxu1 %v8851_v48 }
 0x788   :  { %6299 = vmatprep.subr.bf16.mxu0 %v8852_v37  ;;  %6325 = vmatprep.subr.bf16.mxu1 %v8819_v55 }
 0x78b   :  { %6301 = vmatpush1.bf16.msra.mxu0 %v8853_v38  ;;  %6327 = vmatpush3.bf16.msra.mxu1 %v7603_v45 }
 0x78c   :  { %6303 = vmatprep.subr.bf16.mxu0 %v7610_v18  ;;  %6328 = vmatprep.subr.bf16.mxu1 %v8819_v55 }
 0x78f   :  { %6305 = vmatpush1.bf16.msra.mxu0 %v7629_v8  ;;  %6330 = vmatpush3.bf16.msra.mxu1 %v7631_v36 }
 0x790   :  { %6307 = vmatprep.subr.bf16.mxu0 %v7638_v46  ;;  %6331 = vmatprep.subr.bf16.mxu1 %v8819_v55 }
 0x793   :  { %6309 = vmatpush1.bf16.msra.mxu0 %v7651_v51  ;;  %6333 = vmatpush3.bf16.msra.mxu1 %v7653_v0 }
 0x794   :  { %6335 = vmatprep.subr.bf16.mxu0 %v6960_v3  ;;  %6366 = vmatprep.subr.bf16.mxu1 %v8819_v55 }
 0x796   :  { %2946 = vmatmul.mubr.f32.vlgmr.msra.gmra.mrb[22].mxu0 %v8315_v12  ;;  %5114 = vmatmul.mubr.f32.vlgmr.msra.gmra.mrb[34].mxu1 %v8315_v12 }
 0x797   :  { %6337 = vmatpush1.bf16.msra.mxu0 %v6973_v9  ;;  %6368 = vmatpush3.bf16.msra.mxu1 %v7034_v29 }
 0x798   :  { %6339 = vmatprep.subr.bf16.mxu0 %v6975_v10  ;;  %6369 = vmatprep.subr.bf16.mxu1 %v8819_v55 }
 0x799   :  { %3114 = vmatprep.mubr.f32.mxu0 %v8821_v11  ;;  %5148 = vmatprep.mubr.msk.f32.mxu1 %vm6897_vm0, %v8821_v11 }
 0x79b   :  { %6341 = vmatpush1.bf16.msra.mxu0 %v6993_v15  ;;  %6371 = vmatpush3.bf16.msra.mxu1 %v7049_v34 }
 0x79c   :  { %6343 = vmatprep.subr.bf16.mxu0 %v6996_v16  ;;  %6372 = vmatprep.subr.bf16.mxu1 %v8819_v55 }
 0x79f   :  { %6345 = vmatpush1.bf16.msra.mxu0 %v7011_v21  ;;  %6374 = vmatpush3.bf16.msra.mxu1 %v7077_v43 }
 0x7a0   :  { %6347 = vmatprep.subr.bf16.mxu0 %v7017_v23  ;;  %6375 = vmatprep.subr.bf16.mxu1 %v8819_v55 }
 0x7a3   :  { %6349 = vmatpush1.bf16.msra.mxu0 %v7043_v32  ;;  %6377 = vmatpush3.bf16.msra.mxu1 %v7105_v52 }
 0x7a4   :  { %6351 = vmatprep.subr.bf16.mxu0 %v7052_v35  ;;  %6378 = vmatprep.subr.bf16.mxu1 %v8819_v55 }
 0x7a7   :  { %6353 = vmatpush1.bf16.msra.mxu0 %v7071_v41  ;;  %6380 = vmatpush3.bf16.msra.mxu1 %v7133_v61 }
 0x7a8   :  { %6355 = vmatprep.subr.bf16.mxu0 %v8940_v19  ;;  %6381 = vmatprep.subr.bf16.mxu1 %v8819_v55 }
 0x7ab   :  { %6357 = vmatpush1.bf16.msra.mxu0 %v8941_v33  ;;  %6383 = vmatpush3.bf16.msra.mxu1 %v8942_v22  ;;  %v9008_v22 = vld [vmem:[#allocation57_spill] sm:$0xff] }
 0x7ac   :  { %6359 = vmatprep.subr.bf16.mxu0 %v8943_v60  ;;  %6384 = vmatprep.subr.bf16.mxu1 %v8819_v55 }
 0x7af   :  { %6361 = vmatpush1.bf16.msra.mxu0 %v8975_v42  ;;  %6386 = vmatpush3.bf16.msra.mxu1 %v8976_v28  ;;  %v9007_v42 = vld [vmem:[#allocation39_spill] sm:$0xff] }
 0x7b0   :  { %6363 = vmatprep.subr.bf16.mxu0 %v8977_v53  ;;  %6387 = vmatprep.subr.bf16.mxu1 %v8819_v55 }
 0x7b3   :  { %6365 = vmatpush1.bf16.msra.mxu0 %v8978_v50  ;;  %6389 = vmatpush3.bf16.msra.mxu1 %v8979_v17 }
 0x7b4   :  { %6391 = vmatprep.subr.bf16.mxu0 %v8980_v2  ;;  %6422 = vmatprep.subr.bf16.mxu1 %v8819_v55 }
 0x7b6   :  { %3115 = vmatmul.mubr.f32.vlgmr.msra.gmra.mrb[24].mxu0 %v8326_v44  ;;  %5149 = vmatmul.mubr.f32.vlgmr.msra.gmra.mrb[36].mxu1 %v8326_v44 }
 0x7b7   :  { %6393 = vmatpush1.bf16.msra.mxu0 %v8981_v39  ;;  %6424 = vmatpush3.bf16.msra.mxu1 %v8982_v30  ;;  %v9005_v39 = vld [vmem:[#allocation54_spill] sm:$0xff] }
 0x7b8   :  { %6395 = vmatprep.subr.bf16.mxu0 %v8983_v47  ;;  %6425 = vmatprep.subr.bf16.mxu1 %v8819_v55  ;;  %v8992_v47 = vld [vmem:[#allocation26_spill] sm:$0xff] }
 0x7b9   :  { %3277 = vmatprep.mubr.f32.mxu0 %v8821_v11  ;;  %5183 = vmatprep.mubr.msk.f32.mxu1 %vm6897_vm0, %v8821_v11 }
 0x7bb   :  { %6397 = vmatpush1.bf16.msra.mxu0 %v8984_v26  ;;  %6427 = vmatpush3.bf16.msra.mxu1 %v8985_v54  ;;  %v8993_v54 = vld [vmem:[#allocation27_spill] sm:$0xff]  ;;  %v8995_v26 = vld [vmem:[#allocation29_spill] sm:$0xff] }
 0x7bc   :  { %6399 = vmatprep.subr.bf16.mxu0 %v8986_v4  ;;  %6428 = vmatprep.subr.bf16.mxu1 %v8819_v55  ;;  %v8994_v4 = vld [vmem:[#allocation28_spill] sm:$0xff] }
 0x7bf   :  { %6401 = vmatpush1.bf16.msra.mxu0 %v8987_v20  ;;  %6430 = vmatpush3.bf16.msra.mxu1 %v8988_v62  ;;  %v8996_v62 = vld [vmem:[#allocation30_spill] sm:$0xff]  ;;  %v8998_v20 = vld [vmem:[#allocation32_spill] sm:$0xff] }
 0x7c0   :  { %6403 = vmatprep.subr.bf16.mxu0 %v8989_v6  ;;  %6431 = vmatprep.subr.bf16.mxu1 %v8819_v55  ;;  %v8997_v6 = vld [vmem:[#allocation31_spill] sm:$0xff] }
 0x7c3   :  { %6405 = vmatpush1.bf16.msra.mxu0 %v8990_v27  ;;  %6433 = vmatpush3.bf16.msra.mxu1 %v8991_v59  ;;  %v8999_v59 = vld [vmem:[#allocation33_spill] sm:$0xff]  ;;  %v9001_v27 = vld [vmem:[#allocation35_spill] sm:$0xff] }
 0x7c4   :  { %6407 = vmatprep.subr.bf16.mxu0 %v8992_v47  ;;  %6434 = vmatprep.subr.bf16.mxu1 %v8819_v55  ;;  %v9000_v47 = vld [vmem:[#allocation34_spill] sm:$0xff] }
 0x7c7   :  { %6409 = vmatpush1.bf16.msra.mxu0 %v8993_v54  ;;  %6436 = vmatpush3.bf16.msra.mxu1 %v8994_v4  ;;  %v9002_v4 = vld [vmem:[#allocation36_spill] sm:$0xff]  ;;  %v9004_v54 = vld [vmem:[#allocation38_spill] sm:$0xff] }
 0x7c8   :  { %6411 = vmatprep.subr.bf16.mxu0 %v8995_v26  ;;  %6437 = vmatprep.subr.bf16.mxu1 %v8819_v55  ;;  %v9003_v26 = vld [vmem:[#allocation37_spill] sm:$0xff] }
 0x7cb   :  { %6413 = vmatpush1.bf16.msra.mxu0 %v8996_v62  ;;  %6439 = vmatpush3.bf16.msra.mxu1 %v8997_v6 }
 0x7cc   :  { %6415 = vmatprep.subr.bf16.mxu0 %v8998_v20  ;;  %6440 = vmatprep.subr.bf16.mxu1 %v8819_v55 }
 0x7cf   :  { %6417 = vmatpush1.bf16.msra.mxu0 %v8999_v59  ;;  %6442 = vmatpush3.bf16.msra.mxu1 %v9000_v47 }
 0x7d0   :  { %6419 = vmatprep.subr.bf16.mxu0 %v9001_v27  ;;  %6443 = vmatprep.subr.bf16.mxu1 %v8819_v55  ;;  %v9006_v27 = vld [vmem:[#allocation55_spill] sm:$0xff] }
 0x7d3   :  { %6421 = vmatpush1.bf16.msra.mxu0 %v9002_v4  ;;  %6445 = vmatpush3.bf16.msra.mxu1 %v9003_v26 }
 0x7d4   :  { %6447 = vmatprep.subr.bf16.mxu0 %v9004_v54  ;;  %6478 = vmatprep.subr.bf16.mxu1 %v8819_v55 }
 0x849   :  { %v2877_v6 = vpop.f32.mrb[32].mxu1 }
 0x84a   :  { %v5080_v20 = vpop.f32.mrb[33].mxu1  ;;  %v2878_v33 = vadd.f32 %v2877_v6, %v9008_v22 }
 0x869   :  { %v2947_v62 = vpop.f32.mrb[22].mxu0  ;;  %v3018_v30 = vpop.f32.mrb[34].mxu1 }
 0x86a   :  { %v6680_v59 = vadd.f32 %v2947_v62, %v9005_v39  ;;  %v2949_v2 = vpop.f32.mrb[23].mxu0  ;;  %v5115_v47 = vpop.f32.mrb[35].mxu1  ;;  %v3036_v60 = vadd.f32 %v9007_v42, %v3018_v30 }
 0x86b   :  { %v6681_v50 = vadd.f32 %v2949_v2, %v9006_v27  ;;  %v4062_v47 = vld [vmem:[%s8653_s0 + $0x90] sm:$0xff] }
 0x86c   :  { %v4059_v17 = vmul.f32 -1.442695, %v6680_v59 }
 0x86d   :  { %v4060_v53 = vmul.f32 -1.442695, %v6681_v50 }
 0x86e   :  { %6818 = vpow2.f32 %v4059_v17 }
 0x86f   :  { %6820 = vpow2.f32 %v4060_v53 }
 0x878   :  { %v6819_v4 = vpop.eup %6818 }
 0x879   :  { %v3026_v26 = vadd.f32 1.0, %v6819_v4  ;;  %v6821_v54 = vpop.eup %6820 }
 0x87a   :  { %v3033_v28 = vadd.f32 1.0, %v6821_v54 }
 0x87b   :  { %6822 = vrcp.f32 %v3026_v26  ;;  %v4063_v26 = vld [vmem:[%s8653_s0 + $0x98] sm:$0xff] }
 0x87c   :  { %6824 = vrcp.f32 %v3033_v28 }
 0x885   :  { %v6823_v20 = vpop.eup %6822 }
 0x886   :  { %v3037_v19 = vmul.f32 %v6823_v20, %v3036_v60  ;;  %v6825_v60 = vpop.eup %6824 }
 0x887   :  { %v3040_v6 = vsub.f32 1.0, %v6825_v60 }
 0x888   :  { %v3038_v2 = vadd.f32 %v3037_v19, %v2878_v33  ;;  %v3042_v19 = vmul.f32 %v6825_v60, %v8315_v12 }
 0x889   :  { %v3116_v17 = vpop.f32.mrb[24].mxu0  ;;  %v3187_v50 = vpop.f32.mrb[36].mxu1 }
 0x88a   :  { %6826 = vtanh.f32 %v3038_v2  ;;  %v3191_v53 = vadd.f32 %v4062_v47, %v3116_v17  ;;  %v3118_v54 = vpop.f32.mrb[25].mxu0  ;;  %v5150_v30 = vpop.f32.mrb[37].mxu1 }
 0x88b   :  { %v3198_v62 = vadd.f32 %v4063_v26, %v3118_v54  ;;  %v3205_v26 = vadd.f32 %v8044_v31, %v3187_v50  ;;  %v4064_v30 = vld [vmem:[%s8653_s0 + $0xa0] sm:$0xff]  ;;  %v9024_v31 = vld [vmem:[#allocation20_spill] sm:$0xff]  ;;  %v9026_v50 = vld [vmem:[#allocation22_spill] sm:$0xff] }
 0x88c   :  { %v4065_v4 = vmul.f32 -1.442695, %v3191_v53 }
 0x88d   :  { %v4066_v28 = vmul.f32 -1.442695, %v3198_v62 }
 0x88e   :  { %6828 = vpow2.f32 %v4065_v4 }
 0x88f   :  { %6830 = vpow2.f32 %v4066_v28 }
 0x894   :  { %v6827_v59 = vpop.eup %6826 }
 0x895   :  { %v3041_v20 = vmul.f32 %v6827_v59, %v3040_v6 }
 0x897   :  { %v8450_v33 = vadd.f32 %v3042_v19, %v3041_v20  ;;  %v9027_v19 = vld [vmem:[#allocation23_spill] sm:$0xff] }
 0x898   :  { %v6829_v47 = vpop.eup %6828 }
 0x899   :  { %v3195_v2 = vadd.f32 1.0, %v6829_v47  ;;  %4061 = vst [vmem:[%s8661_s8 + $0x28] sm:$0xff] %v8450_v33  ;;  %v6831_v17 = vpop.eup %6830  ;;  %v9028_v47 = vld [vmem:[#allocation24_spill] sm:$0xff] }
 0x89a   :  { %v3202_v53 = vadd.f32 1.0, %v6831_v17  ;;  %v9030_v17 = vld [vmem:[#allocation26_spill] sm:$0xff] }
 0x89b   :  { %6832 = vrcp.f32 %v3195_v2  ;;  %v9029_v2 = vld [vmem:[#allocation25_spill] sm:$0xff] }
 0x89c   :  { %6834 = vrcp.f32 %v3202_v53  ;;  %v9031_v53 = vld [vmem:[#allocation27_spill] sm:$0xff] }
 0x8a5   :  { %v6833_v54 = vpop.eup %6832 }
 0x8a6   :  { %v3206_v12 = vmul.f32 %v6833_v54, %v3205_v26  ;;  %v6835_v62 = vpop.eup %6834  ;;  %v9032_v26 = vld [vmem:[#allocation28_spill] sm:$0xff]  ;;  %v9033_v54 = vld [vmem:[#allocation29_spill] sm:$0xff] }
 0x8a7   :  { %v3209_v60 = vsub.f32 1.0, %v6835_v62  ;;  %v3211_v59 = vmul.f32 %v6835_v62, %v8326_v44  ;;  %v9025_v44 = vld [vmem:[#allocation21_spill] sm:$0xff] }
 0x8a8   :  { %v3207_v4 = vadd.f32 %v4064_v30, %v3206_v12  ;;  %v9034_v30 = vld [vmem:[#allocation30_spill] sm:$0xff]  ;;  %v9035_v12 = vld [vmem:[#allocation31_spill] sm:$0xff]  ;;  %v9037_v62 = vld [vmem:[#allocation33_spill] sm:$0xff] }
 0x8aa   :  { %6836 = vtanh.f32 %v3207_v4  ;;  %v9036_v4 = vld [vmem:[#allocation32_spill] sm:$0xff] }
 0x8b4   :  { %v6837_v28 = vpop.eup %6836 }
 0x8b5   :  { %v3210_v6 = vmul.f32 %v6837_v28, %v3209_v60  ;;  %v9038_v60 = vld [vmem:[#allocation34_spill] sm:$0xff]  ;;  %v9039_v28 = vld [vmem:[#allocation35_spill] sm:$0xff] }
 0x8b7   :  { %v8461_v20 = vadd.f32 %v3211_v59, %v3210_v6  ;;  %v9040_v6 = vld [vmem:[#allocation36_spill] sm:$0xff]  ;;  %v9041_v59 = vld [vmem:[#allocation37_spill] sm:$0xff] }
 0x8b9   :  { %3278 = vmatmul.mubr.f32.vlgmr.msra.gmra.mrb[26].mxu0 %v8461_v20  ;;  %5184 = vmatmul.mubr.f32.vlgmr.msra.gmra.mrb[38].mxu1 %v8461_v20 }
 0x8ba   :  { %6449 = vmatpush1.bf16.msra.mxu0 %v7456_v1  ;;  %6480 = vmatpush3.bf16.msra.mxu1 %v7458_v14 }
 0x8bb   :  { %6451 = vmatprep.subr.bf16.mxu0 %v8840_v49  ;;  %6481 = vmatprep.subr.bf16.mxu1 %v8819_v55 }
 0x8bc   :  { %3418 = vmatprep.mubr.f32.mxu0 %v8821_v11  ;;  %5218 = vmatprep.mubr.msk.f32.mxu1 %vm6897_vm0, %v8821_v11 }
 0x8be   :  { %6453 = vmatpush1.bf16.msra.mxu0 %v8841_v63  ;;  %6483 = vmatpush3.bf16.msra.mxu1 %v8842_v5 }
 0x8bf   :  { %6455 = vmatprep.subr.bf16.mxu0 %v8843_v13  ;;  %6484 = vmatprep.subr.bf16.mxu1 %v8819_v55 }
 0x8c2   :  { %6457 = vmatpush1.bf16.msra.mxu0 %v8844_v57  ;;  %6486 = vmatpush3.bf16.msra.mxu1 %v8845_v58 }
 0x8c3   :  { %6459 = vmatprep.subr.bf16.mxu0 %v8846_v25  ;;  %6487 = vmatprep.subr.bf16.mxu1 %v8819_v55 }
 0x8c6   :  { %6461 = vmatpush1.bf16.msra.mxu0 %v8847_v24  ;;  %6489 = vmatpush3.bf16.msra.mxu1 %v8848_v7 }
 0x8c7   :  { %6463 = vmatprep.subr.bf16.mxu0 %v8849_v40  ;;  %6490 = vmatprep.subr.bf16.mxu1 %v8819_v55 }
 0x8ca   :  { %6465 = vmatpush1.bf16.msra.mxu0 %v8850_v56  ;;  %6492 = vmatpush3.bf16.msra.mxu1 %v8851_v48 }
 0x8cb   :  { %6467 = vmatprep.subr.bf16.mxu0 %v8852_v37  ;;  %6493 = vmatprep.subr.bf16.mxu1 %v8819_v55 }
 0x8ce   :  { %6469 = vmatpush1.bf16.msra.mxu0 %v8853_v38  ;;  %6495 = vmatpush3.bf16.msra.mxu1 %v7603_v45 }
 0x8cf   :  { %6471 = vmatprep.subr.bf16.mxu0 %v7610_v18  ;;  %6496 = vmatprep.subr.bf16.mxu1 %v8819_v55 }
 0x8d2   :  { %6473 = vmatpush1.bf16.msra.mxu0 %v7629_v8  ;;  %6498 = vmatpush3.bf16.msra.mxu1 %v7631_v36 }
 0x8d3   :  { %6475 = vmatprep.subr.bf16.mxu0 %v7638_v46  ;;  %6499 = vmatprep.subr.bf16.mxu1 %v8819_v55 }
 0x8d6   :  { %6477 = vmatpush1.bf16.msra.mxu0 %v7651_v51  ;;  %6501 = vmatpush3.bf16.msra.mxu1 %v7653_v0 }
 0x8d7   :  { %6503 = vmatprep.subr.bf16.mxu0 %v6960_v3  ;;  %6534 = vmatprep.subr.bf16.mxu1 %v8819_v55  ;;  %v9009_v3 = vld [vmem:[#allocation5_spill] sm:$0xff] }
 0x8d9   :  { %3419 = vmatmul.mubr.f32.vlgmr.msra.gmra.mrb[26].mxu0 %v8450_v33  ;;  %5219 = vmatmul.mubr.f32.vlgmr.msra.gmra.mrb[40].mxu1 %v8450_v33 }
 0x8da   :  { %6505 = vmatpush1.bf16.msra.mxu0 %v6973_v9  ;;  %6536 = vmatpush3.bf16.msra.mxu1 %v7034_v29  ;;  %v9010_v9 = vld [vmem:[#allocation6_spill] sm:$0xff] }
 0x8db   :  { %6507 = vmatprep.subr.bf16.mxu0 %v6975_v10  ;;  %6537 = vmatprep.subr.bf16.mxu1 %v8819_v55  ;;  %v9011_v10 = vld [vmem:[#allocation11_spill] sm:$0xff]  ;;  %v9016_v29 = vld [vmem:[#allocation10_spill] sm:$0xff] }
 0x8dc   :  { %3587 = vmatprep.mubr.f32.mxu0 %v8821_v11  ;;  %5253 = vmatprep.mubr.msk.f32.mxu1 %vm6897_vm0, %v8821_v11 }
 0x8de   :  { %6509 = vmatpush1.bf16.msra.mxu0 %v6993_v15  ;;  %6539 = vmatpush3.bf16.msra.mxu1 %v7049_v34  ;;  %v9012_v15 = vld [vmem:[#allocation7_spill] sm:$0xff]  ;;  %v9018_v34 = vld [vmem:[#allocation14_spill] sm:$0xff] }
 0x8df   :  { %6511 = vmatprep.subr.bf16.mxu0 %v6996_v16  ;;  %6540 = vmatprep.subr.bf16.mxu1 %v8819_v55  ;;  %v9013_v16 = vld [vmem:[#allocation8_spill] sm:$0xff] }
 0x8e2   :  { %6513 = vmatpush1.bf16.msra.mxu0 %v7011_v21  ;;  %6542 = vmatpush3.bf16.msra.mxu1 %v7077_v43  ;;  %v9014_v21 = vld [vmem:[#allocation12_spill] sm:$0xff]  ;;  %v9021_v43 = vld [vmem:[#allocation17_spill] sm:$0xff] }
 0x8e3   :  { %6515 = vmatprep.subr.bf16.mxu0 %v7017_v23  ;;  %6543 = vmatprep.subr.bf16.mxu1 %v8819_v55  ;;  %v9015_v23 = vld [vmem:[#allocation9_spill] sm:$0xff] }
 0x8e6   :  { %6517 = vmatpush1.bf16.msra.mxu0 %v7043_v32  ;;  %6545 = vmatpush3.bf16.msra.mxu1 %v7105_v52  ;;  %v9017_v32 = vld [vmem:[#allocation13_spill] sm:$0xff]  ;;  %v9022_v52 = vld [vmem:[#allocation18_spill] sm:$0xff] }
 0x8e7   :  { %6519 = vmatprep.subr.bf16.mxu0 %v7052_v35  ;;  %6546 = vmatprep.subr.bf16.mxu1 %v8819_v55  ;;  %v9019_v35 = vld [vmem:[#allocation15_spill] sm:$0xff] }
 0x8ea   :  { %6521 = vmatpush1.bf16.msra.mxu0 %v7071_v41  ;;  %6548 = vmatpush3.bf16.msra.mxu1 %v7133_v61  ;;  %v9020_v41 = vld [vmem:[#allocation16_spill] sm:$0xff]  ;;  %v9023_v61 = vld [vmem:[#allocation19_spill] sm:$0xff] }
 0x8eb   :  { %6523 = vmatprep.subr.bf16.mxu0 %v9009_v3  ;;  %6549 = vmatprep.subr.bf16.mxu1 %v8819_v55  ;;  %v9042_v3 = vld [vmem:[#allocation38_spill] sm:$0xff] }
 0x8ee   :  { %6525 = vmatpush1.bf16.msra.mxu0 %v9010_v9  ;;  %6551 = vmatpush3.bf16.msra.mxu1 %v9011_v10 }
 0x8ef   :  { %6527 = vmatprep.subr.bf16.mxu0 %v9012_v15  ;;  %6552 = vmatprep.subr.bf16.mxu1 %v8819_v55 }
 0x8f2   :  { %6529 = vmatpush1.bf16.msra.mxu0 %v9013_v16  ;;  %6554 = vmatpush3.bf16.msra.mxu1 %v9014_v21 }
 0x8f3   :  { %6531 = vmatprep.subr.bf16.mxu0 %v9015_v23  ;;  %6555 = vmatprep.subr.bf16.mxu1 %v8819_v55 }
 0x8f6   :  { %6533 = vmatpush1.bf16.msra.mxu0 %v9016_v29  ;;  %6557 = vmatpush3.bf16.msra.mxu1 %v9017_v32 }
 0x8f7   :  { %6559 = vmatprep.subr.bf16.mxu0 %v9018_v34  ;;  %6590 = vmatprep.subr.bf16.mxu1 %v8819_v55 }
 0x8f9   :  { %3588 = vmatmul.mubr.f32.vlgmr.msra.gmra.mrb[28].mxu0 %v8461_v20  ;;  %5254 = vmatmul.mubr.f32.vlgmr.msra.gmra.mrb[42].mxu1 %v8461_v20 }
 0x8fa   :  { %6561 = vmatpush1.bf16.msra.mxu0 %v9019_v35  ;;  %6592 = vmatpush3.bf16.msra.mxu1 %v9020_v41 }
 0x8fb   :  { %6563 = vmatprep.subr.bf16.mxu0 %v9021_v43  ;;  %6593 = vmatprep.subr.bf16.mxu1 %v8819_v55 }
 0x8fc   :  { %3750 = vmatprep.mubr.f32.mxu0 %v8821_v11  ;;  %5288 = vmatprep.mubr.msk.f32.mxu1 %vm6897_vm0, %v8821_v11 }
 0x8fe   :  { %6565 = vmatpush1.bf16.msra.mxu0 %v9022_v52  ;;  %6595 = vmatpush3.bf16.msra.mxu1 %v9023_v61 }
 0x8ff   :  { %6567 = vmatprep.subr.bf16.mxu0 %v9024_v31  ;;  %6596 = vmatprep.subr.bf16.mxu1 %v8819_v55 }
 0x902   :  { %6569 = vmatpush1.bf16.msra.mxu0 %v9025_v44  ;;  %6598 = vmatpush3.bf16.msra.mxu1 %v9026_v50 }
 0x903   :  { %6571 = vmatprep.subr.bf16.mxu0 %v9027_v19  ;;  %6599 = vmatprep.subr.bf16.mxu1 %v8819_v55 }
 0x906   :  { %6573 = vmatpush1.bf16.msra.mxu0 %v9028_v47  ;;  %6601 = vmatpush3.bf16.msra.mxu1 %v9029_v2  ;;  %v4070_v47 = vld [vmem:[%s8653_s0 + $0xa8] sm:$0xff] }
 0x907   :  { %6575 = vmatprep.subr.bf16.mxu0 %v9030_v17  ;;  %6602 = vmatprep.subr.bf16.mxu1 %v8819_v55 }
 0x90a   :  { %6577 = vmatpush1.bf16.msra.mxu0 %v9031_v53  ;;  %6604 = vmatpush3.bf16.msra.mxu1 %v9032_v26 }
 0x90b   :  { %6579 = vmatprep.subr.bf16.mxu0 %v9033_v54  ;;  %6605 = vmatprep.subr.bf16.mxu1 %v8819_v55  ;;  %v4071_v54 = vld [vmem:[%s8653_s0 + $0xb0] sm:$0xff] }
 0x90e   :  { %6581 = vmatpush1.bf16.msra.mxu0 %v9034_v30  ;;  %6607 = vmatpush3.bf16.msra.mxu1 %v9035_v12 }
 0x90f   :  { %6583 = vmatprep.subr.bf16.mxu0 %v9036_v4  ;;  %6608 = vmatprep.subr.bf16.mxu1 %v8819_v55 }
 0x912   :  { %6585 = vmatpush1.bf16.msra.mxu0 %v9037_v62  ;;  %6610 = vmatpush3.bf16.msra.mxu1 %v9038_v60 }
 0x913   :  { %6587 = vmatprep.subr.bf16.mxu0 %v9039_v28  ;;  %6611 = vmatprep.subr.bf16.mxu1 %v8819_v55 }
 0x916   :  { %6589 = vmatpush1.bf16.msra.mxu0 %v9040_v6  ;;  %6613 = vmatpush3.bf16.msra.mxu1 %v9041_v59 }
 0x917   :  { %6615 = vmatprep.subr.bf16.mxu0 %v9042_v3  ;;  %6646 = vmatprep.subr.bf16.mxu1 %v8819_v55 }
 0x98c   :  { %v3350_v9 = vpop.f32.mrb[38].mxu1 }
 0x98d   :  { %v5185_v10 = vpop.f32.mrb[39].mxu1  ;;  %v3351_v50 = vadd.f32 %v3350_v9, %v9008_v22 }
 0x9ac   :  { %v3420_v15 = vpop.f32.mrb[26].mxu0  ;;  %v3491_v16 = vpop.f32.mrb[40].mxu1 }
 0x9ad   :  { %v6682_v21 = vadd.f32 %v3420_v15, %v9005_v39  ;;  %v3422_v23 = vpop.f32.mrb[27].mxu0  ;;  %v5220_v29 = vpop.f32.mrb[41].mxu1  ;;  %v3509_v31 = vadd.f32 %v9007_v42, %v3491_v16 }
 0x9ae   :  { %v6683_v34 = vadd.f32 %v3422_v23, %v9006_v27  ;;  %v6870_v29 = vld [vmem:[%s8659_s6] ss:$0 sm:$0xff] }
 0x9af   :  { %v4067_v32 = vmul.f32 -1.442695, %v6682_v21 }
 0x9b0   :  { %v4068_v35 = vmul.f32 -1.442695, %v6683_v34 }
 0x9b1   :  { %6838 = vpow2.f32 %v4067_v32 }
 0x9b2   :  { %6840 = vpow2.f32 %v4068_v35 }
 0x9bb   :  { %v6839_v41 = vpop.eup %6838 }
 0x9bc   :  { %v3499_v43 = vadd.f32 1.0, %v6839_v41  ;;  %v6841_v52 = vpop.eup %6840 }
 0x9bd   :  { %v3506_v61 = vadd.f32 1.0, %v6841_v52 }
 0x9be   :  { %6842 = vrcp.f32 %v3499_v43 }
 0x9bf   :  { %6844 = vrcp.f32 %v3506_v61 }
 0x9c8   :  { %v6843_v44 = vpop.eup %6842 }
 0x9c9   :  { %v3510_v19 = vmul.f32 %v6843_v44, %v3509_v31  ;;  %v6845_v60 = vpop.eup %6844 }
 0x9ca   :  { %v3513_v6 = vsub.f32 1.0, %v6845_v60  ;;  %v3515_v9 = vmul.f32 %v6845_v60, %v8450_v33  ;;  %v4072_v33 = vld [vmem:[%s8653_s0 + $0xb8] sm:$0xff]  ;;  %s6898_s0 = smov [#allocation2]  }
 0x9cb   :  { %v3511_v2 = vadd.f32 %v3510_v19, %v3351_v50  ;;  %s4002_s6 = sshll.u32 %s6898_s0, 4  ;;  %s4003_s6 = int_to_ptr.vmem [resolvable:$true] %s4002_s6 }
 0x9cc   :  { %v3589_v17 = vpop.f32.mrb[28].mxu0  ;;  %v3660_v53 = vpop.f32.mrb[42].mxu1  ;;  %s6871_s12 = scalar_lea.vmem %s4003_s6, 256  ;;  %p6876_p1 = scmp.lt.s32.totalorder %s4003_s6, %s4003_s6 }
 0x9cd   :  { %6846 = vtanh.f32 %v3511_v2  ;;  %v3664_v26 = vadd.f32 %v4070_v47, %v3589_v17  ;;  %v3591_v30 = vpop.f32.mrb[29].mxu0  ;;  %v5255_v12 = vpop.f32.mrb[43].mxu1  ;;  %v3678_v32 = vadd.f32 %v6870_v29, %v3660_v53  ;;  %p6872_p0 = scmp.ne.s32.totalorder %s4003_s6, %s6871_s12  ;;  %p6877_p2 = scmp.lt.s32.totalorder %s6871_s12, %s6871_s12 }
 0x9ce   :  { %v3671_v62 = vadd.f32 %v4071_v54, %v3591_v30 }
 0x9cf   :  { %v4073_v4 = vmul.f32 -1.442695, %v3664_v26  ;;  %p6878_p3 = por %p6877_p2, %p6876_p1 }
 0x9d0   :  { %v4074_v28 = vmul.f32 -1.442695, %v3671_v62 }
 0x9d1   :  { %6848 = vpow2.f32 %v4073_v4  ;;  %p6879_p4 = pnand %p6878_p3, %p6872_p0 }
 0x9d2   :  { %6850 = vpow2.f32 %v4074_v28 }
 0x9d7   :  { %v6847_v59 = vpop.eup %6846 }
 0x9d8   :  { %v3514_v3 = vmul.f32 %v6847_v59, %v3513_v6 }
 0x9da   :  { %v8585_v10 = vadd.f32 %v3515_v9, %v3514_v3 }
 0x9db   :  { %v6849_v15 = vpop.eup %6848 }
 0x9dc   :  { %v3668_v16 = vadd.f32 1.0, %v6849_v15  ;;  %4069 = vst [vmem:[%s8661_s8 + $0x30] sm:$0xff] %v8585_v10  ;;  %v6851_v21 = vpop.eup %6850 }
 0x9dd   :  { %v3675_v23 = vadd.f32 1.0, %v6851_v21 }
 0x9de   :  { %6852 = vrcp.f32 %v3668_v16 }
 0x9df   :  { %6854 = vrcp.f32 %v3675_v23 }
 0x9e8   :  { %v6853_v34 = vpop.eup %6852 }
 0x9e9   :  { %v3679_v35 = vmul.f32 %v6853_v34, %v3678_v32  ;;  %v6855_v43 = vpop.eup %6854 }
 0x9ea   :  { %v3682_v52 = vsub.f32 1.0, %v6855_v43  ;;  %v3684_v44 = vmul.f32 %v6855_v43, %v8461_v20 }
 0x9eb   :  { %v3680_v41 = vadd.f32 %v4072_v33, %v3679_v35 }
 0x9ed   :  { %6856 = vtanh.f32 %v3680_v41 }
 0x9f7   :  { %v6857_v61 = vpop.eup %6856 }
 0x9f8   :  { %v3683_v31 = vmul.f32 %v6857_v61, %v3682_v52 }
 0x9fa   :  { %v3685_v50 = vadd.f32 %v3684_v44, %v3683_v31 }
 0x9fc   :  { %3751 = vmatmul.mubr.f32.vlgmr.msra.gmra.mrb[30].mxu0 %v3685_v50  ;;  %3992 = vst [vmem:[#allocation2] sm:$0xff] %v3685_v50  ;;  %5289 = vmatmul.mubr.f32.vlgmr.msra.gmra.mrb[44].mxu1 %v3685_v50 }
 0x9fd   :  { %6617 = vmatpush1.bf16.msra.mxu0 %v7456_v1  ;;  %6648 = vmatpush3.bf16.msra.mxu1 %v7458_v14 }
 0x9fe   :  { %6619 = vmatprep.subr.bf16.mxu0 %v8840_v49  ;;  %6649 = vmatprep.subr.bf16.mxu1 %v8819_v55 }
 0x9ff   :  { %3891 = vmatprep.mubr.f32.mxu0 %v8821_v11  ;;  %5323 = vmatprep.mubr.msk.f32.mxu1 %vm6897_vm0, %v8821_v11 }
 0xa01   :  { %6621 = vmatpush1.bf16.msra.mxu0 %v8841_v63  ;;  %6651 = vmatpush3.bf16.msra.mxu1 %v8842_v5 }
 0xa02   :  { %6623 = vmatprep.subr.bf16.mxu0 %v8843_v13  ;;  %6652 = vmatprep.subr.bf16.mxu1 %v8819_v55 }
 0xa05   :  { %6625 = vmatpush1.bf16.msra.mxu0 %v8844_v57  ;;  %6654 = vmatpush3.bf16.msra.mxu1 %v8845_v58 }
 0xa06   :  { %6627 = vmatprep.subr.bf16.mxu0 %v8846_v25  ;;  %6655 = vmatprep.subr.bf16.mxu1 %v8819_v55 }
 0xa09   :  { %6629 = vmatpush1.bf16.msra.mxu0 %v8847_v24  ;;  %6657 = vmatpush3.bf16.msra.mxu1 %v8848_v7 }
 0xa0a   :  { %6631 = vmatprep.subr.bf16.mxu0 %v8849_v40  ;;  %6658 = vmatprep.subr.bf16.mxu1 %v8819_v55 }
 0xa0d   :  { %6633 = vmatpush1.bf16.msra.mxu0 %v8850_v56  ;;  %6660 = vmatpush3.bf16.msra.mxu1 %v8851_v48 }
 0xa0e   :  { %6635 = vmatprep.subr.bf16.mxu0 %v8852_v37  ;;  %6661 = vmatprep.subr.bf16.mxu1 %v8819_v55 }
 0xa11   :  { %6637 = vmatpush1.bf16.msra.mxu0 %v8853_v38  ;;  %6663 = vmatpush3.bf16.msra.mxu1 %v7603_v45 }
 0xa12   :  { %6639 = vmatprep.subr.bf16.mxu0 %v7610_v18  ;;  %6664 = vmatprep.subr.bf16.mxu1 %v8819_v55 }
 0xa15   :  { %6641 = vmatpush1.bf16.msra.mxu0 %v7629_v8  ;;  %6666 = vmatpush3.bf16.msra.mxu1 %v7631_v36 }
 0xa16   :  { %6643 = vmatprep.subr.bf16.mxu0 %v7638_v46  ;;  %6667 = vmatprep.subr.bf16.mxu1 %v8819_v55 }
 0xa19   :  { %6645 = vmatpush1.bf16.msra.mxu0 %v7651_v51  ;;  %6669 = vmatpush3.bf16.msra.mxu1 %v7653_v0 }
 0xa1c   :  { %3892 = vmatmul.mubr.f32.vlgmr.msra.gmra.mrb[30].mxu0 %v8585_v10  ;;  %5324 = vmatmul.mubr.f32.vlgmr.msra.gmra.mrb[46].mxu1 %v8585_v10 }
 0xacf   :  { %v3823_v1 = vpop.f32.mrb[44].mxu1 }
 0xad0   :  { %v5290_v14 = vpop.f32.mrb[45].mxu1  ;;  %v3824_v58 = vadd.f32 %v3823_v1, %v9008_v22 }
 0xaef   :  { %v3893_v11 = vpop.f32.mrb[30].mxu0  ;;  %v3964_v18 = vpop.f32.mrb[46].mxu1 }
 0xaf0   :  { %v6684_v45 = vadd.f32 %v3893_v11, %v9005_v39  ;;  %v3895_v8 = vpop.f32.mrb[31].mxu0  ;;  %v5325_v36 = vpop.f32.mrb[47].mxu1  ;;  %v3982_v13 = vadd.f32 %v9007_v42, %v3964_v18 }
 0xaf1   :  { %v6685_v46 = vadd.f32 %v3895_v8, %v9006_v27 }
 0xaf2   :  { %v4075_v49 = vmul.f32 -1.442695, %v6684_v45 }
 0xaf3   :  { %v4076_v55 = vmul.f32 -1.442695, %v6685_v46 }
 0xaf4   :  { %6858 = vpow2.f32 %v4075_v49 }
 0xaf5   :  { %6860 = vpow2.f32 %v4076_v55 }
 0xafe   :  { %v6859_v51 = vpop.eup %6858 }
 0xaff   :  { %v3972_v0 = vadd.f32 1.0, %v6859_v51  ;;  %v6861_v63 = vpop.eup %6860 }
 0xb00   :  { %v3979_v5 = vadd.f32 1.0, %v6861_v63 }
 0xb01   :  { %6862 = vrcp.f32 %v3972_v0 }
 0xb02   :  { %6864 = vrcp.f32 %v3979_v5 }
 0xb0b   :  { %v6863_v57 = vpop.eup %6862 }
 0xb0c   :  { %v3983_v25 = vmul.f32 %v6863_v57, %v3982_v13  ;;  %v6865_v7 = vpop.eup %6864 }
 0xb0d   :  { %v3986_v40 = vsub.f32 1.0, %v6865_v7  ;;  %v3988_v37 = vmul.f32 %v6865_v7, %v8585_v10 }
 0xb0e   :  { %v3984_v24 = vadd.f32 %v3983_v25, %v3824_v58 }
 0xb10   :  { %6866 = vtanh.f32 %v3984_v24 }
 0xb1a   :  { %v6867_v56 = vpop.eup %6866 }
 0xb1b   :  { %v3987_v48 = vmul.f32 %v6867_v56, %v3986_v40 }
 0xb1d   :  { %v3989_v38 = vadd.f32 %v3988_v37, %v3987_v48 }
 0xb1f   :  { %4077 = vst [vmem:[%s8661_s8 + $0x38] sm:$0xff] %v3989_v38  ;;  %3994 = vst [vmem:[#allocation2 + $0x8] sm:$0xff] %v3989_v38 }
 0xb20   :  { %6882 = shalt.err (!%p6879_p4)
}
 0xb21   :  { %s6883_s7 = scalar_lea.hbm %s8662_s9, 256 }
 0xb22   :  { %p6884_p5 = scmp.ne.s32.totalorder %s8662_s9, %s6883_s7  ;;  %p6887_p6 = scmp.lt.u32.totalorder %s6883_s7, %s8662_s9 }
 0xb24   :  { %p6889_p7 = pnand %p6887_p6, %p6884_p5 }
 0xb26   :  { %6892 = shalt.err (!%p6889_p7)
}
 0xb27   :  { %s6899_s8 = smov 128   ;;  %s6900_s18 = smov 8  }
 0xb28   :  { %4008 = dma.vmem_to_hbm [thread:$0]  %s4003_s6, 256, %s8662_s9, [#allocation3], %s6899_s8, %s6899_s8, %s6900_s18  }
 0xb29   :  { %6893 = dma.done.wait [#allocation3], 256  }
 0xb2a   :  { %6894 = vsyncadd [#allocation3], 4294967040 }
 0xb2b   :  { %4014 = vsyncpa [#allocation3], 1 }

</bundles_post_ra>
